<compile_context>
chip_gen: v5e
topology: v5e:2x2
jax: 0.10.0
libtpu: 0.0.40
codegen_flags: <defaults>
</compile_context>

<pallas_src>
import functools

import jax
import jax.numpy as jnp
from jax import lax
from jax.experimental import pallas as pl
from jax.experimental.pallas import tpu as pltpu


_NEG_INF = -1e30  # finite "minus infinity": exp() underflows to exactly 0 in f32


def _qga_kernel(q_ref, k_ref, o_ref, *, inv_temperature, block_q, valid_s,
                padded_s, matmul_in_bf16):
    """One grid step: TB batch elements x TQ query rows against all SP keys.

    q_ref: (TB, TQ, D)  query-side embeddings block.
    k_ref: (TB, SP, D)  full (padded) key-side embeddings block.
    o_ref: (TB, TQ, SP) attention-weight output block.
    """
    qi = pl.program_id(1)

    q = q_ref[...]
    k = k_ref[...]

    # Self dot-products on the MXU: contract the last dim of both operands
    # (batched A @ B^T) -> no explicit transpose / XLU pass.
    dn = (((2,), (2,)), ((0,), (0,)))
    if matmul_in_bf16:
        dots = lax.dot_general(q.astype(jnp.bfloat16), k.astype(jnp.bfloat16),
                               dimension_numbers=dn,
                               preferred_element_type=jnp.float32)
    else:
        dots = lax.dot_general(q, k, dimension_numbers=dn,
                               preferred_element_type=jnp.float32)  # (TB,TQ,SP)

    # Squared norms in f32 (keeps the |.|^2 + |.|^2 - 2<.,.> cancellation safe).
    qn = jnp.sum(q * q, axis=-1, keepdims=True)     # (TB, TQ, 1)
    kn = jnp.sum(k * k, axis=-1)[:, None, :]        # (TB, 1, SP)

    sq = qn + kn - 2.0 * dots
    dist = jnp.sqrt(jnp.maximum(sq, 1e-12))

    # Zero the diagonal (eye_mask): global query row = qi * TQ + local row.
    row = lax.broadcasted_iota(jnp.int32, dist.shape, 1) + qi * block_q
    col = lax.broadcasted_iota(jnp.int32, dist.shape, 2)
    dist = jnp.where(row == col, 0.0, dist)

    # Temperature division folded into a constant multiply.
    scaled = dist * (-inv_temperature)
    if valid_s != padded_s:
        # Padded key columns must receive zero softmax mass.
        scaled = jnp.where(col < valid_s, scaled, _NEG_INF)

    m = jnp.max(scaled, axis=-1, keepdims=True)
    e = jnp.exp(scaled - m)
    denom = jnp.sum(e, axis=-1, keepdims=True)
    # One exact reciprocal per row + broadcast multiply (preserves ~1e-5 accuracy).
    o_ref[...] = (e * (1.0 / denom)).astype(o_ref.dtype)


def _step_vmem_bytes(tb, tq, sp, d):
    """Approximate per-grid-step VMEM footprint (double-buffered I/O + temps)."""
    in_q = 2 * tb * tq * d * 4
    in_k = 2 * tb * sp * d * 4
    out = 2 * tb * tq * sp * 4
    tmps = 4 * tb * tq * sp * 4      # dots, dist, scaled/e, misc scratch
    return in_q + in_k + out + tmps


_VMEM_BUDGET = 28 * 1024 * 1024   # conservative: fits v7x 64 MiB physical VMEM


def quantum_geometric_attention(embeddings, temperature=1.0, *,
                                block_q=None, block_b=None,
                                matmul_in_bf16=False):
    """embeddings: (B, S, D) float32 -> attention weights (B, S, S) float32."""
    B, S, D = embeddings.shape
    embeddings = embeddings.astype(jnp.float32)

    # Pad sequence to a lane-dense multiple of 128.
    SP = max(128, ((S + 127) // 128) * 128)
    if SP != S:
        emb_p = jnp.zeros((B, SP, D), jnp.float32).at[:, :S, :].set(embeddings)
    else:
        emb_p = embeddings

    # Query-tile size: largest candidate dividing SP that fits the VMEM budget.
    if block_q is None:
        block_q = 8
        for cand in (512, 256, 128, 64, 32, 16, 8):
            if cand <= SP and SP % cand == 0 and \
               _step_vmem_bytes(1, cand, SP, D) <= _VMEM_BUDGET:
                block_q = cand
                break
    TQ = block_q

    # Batch-tile size: pack batches per step for tiny problems (amortize the
    # fixed per-grid-step overhead) while staying inside the VMEM budget.
    if block_b is None:
        block_b = 1
        for cand in range(B, 0, -1):
            if B % cand == 0 and \
               _step_vmem_bytes(cand, TQ, SP, D) <= _VMEM_BUDGET:
                block_b = cand
                break
    TB = block_b

    grid = (B // TB, SP // TQ)

    kernel = functools.partial(
        _qga_kernel,
        inv_temperature=float(1.0 / temperature),
        block_q=TQ,
        valid_s=S,
        padded_s=SP,
        matmul_in_bf16=matmul_in_bf16,
    )

    needed = _step_vmem_bytes(TB, TQ, SP, D)
    vmem_limit = int(max(32 * 1024 * 1024,
                         min(needed + 8 * 1024 * 1024, 60 * 1024 * 1024)))

    cost = pl.CostEstimate(
        flops=2 * B * SP * SP * D + 10 * B * SP * SP,
        transcendentals=B * SP * SP,
        bytes_accessed=4 * (2 * B * SP * D + B * SP * SP),
    )

    out_p = pl.pallas_call(
        kernel,
        out_shape=jax.ShapeDtypeStruct((B, SP, SP), jnp.float32),
        grid_spec=pltpu.PrefetchScalarGridSpec(
            num_scalar_prefetch=0,
            grid=grid,
            in_specs=[
                pl.BlockSpec((TB, TQ, D), lambda b, q: (b, q, 0)),   # queries
                pl.BlockSpec((TB, SP, D), lambda b, q: (b, 0, 0)),   # all keys
            ],
            out_specs=pl.BlockSpec((TB, TQ, SP), lambda b, q: (b, q, 0)),
        ),
        compiler_params=pltpu.CompilerParams(
            dimension_semantics=("parallel", "parallel"),
            vmem_limit_bytes=vmem_limit,
        ),
        cost_estimate=cost,
    )(emb_p, emb_p)

    if SP != S:
        return out_p[:, :S, :S]
    return out_p


def _reference(embeddings, temperature=1.0):
    """Pure-JAX reference mirroring the PyTorch forward exactly."""
    hp = lax.Precision.HIGHEST
    norms = jnp.einsum("bsi,bsi->bs", embeddings, embeddings, precision=hp)
    dots = jnp.einsum("bsd,btd->bst", embeddings, embeddings, precision=hp)
    sq = norms[:, :, None] + norms[:, None, :] - 2.0 * dots
    dist = jnp.sqrt(jnp.maximum(sq, 1e-12))
    S = embeddings.shape[1]
    eye_mask = 1.0 - jnp.eye(S, dtype=embeddings.dtype)[None]
    dist = dist * eye_mask
    scaled = -dist / temperature
    return jax.nn.softmax(scaled, axis=-1)


if __name__ == "__main__":
    # Module has no learnable weights (eye_mask is rebuilt in-kernel via iota;
    # the PyTorch dist_buffers are a host-side memory-reuse detail only).
    key = jax.random.PRNGKey(0)
    k1, k2 = jax.random.split(key)

    # Case 1: module-sized small input (exercises the lane-padding path).
    B, S, D = 2, 8, 32
    temperature = 1.0
    emb = jax.random.normal(k1, (B, S, D), dtype=jnp.float32)
    out = jax.block_until_ready(quantum_geometric_attention(emb, temperature))
    ref = _reference(emb, temperature)
    assert out.shape == (B, S, S)
    assert jnp.allclose(out, ref, atol=1e-5, rtol=1e-4), "case 1 mismatch"
    assert jnp.allclose(jnp.sum(out, axis=-1), 1.0, atol=1e-5)

    # Case 2: multi-tile query grid (diagonal offsets) + non-unit temperature.
    B2, S2, D2 = 2, 256, 64
    temp2 = 0.7
    emb2 = jax.random.normal(k2, (B2, S2, D2), dtype=jnp.float32)
    out2 = jax.block_until_ready(
        quantum_geometric_attention(emb2, temp2, block_q=64, block_b=1))
    ref2 = _reference(emb2, temp2)
    assert out2.shape == (B2, S2, S2)
    assert jnp.allclose(out2, ref2, atol=1e-5, rtol=1e-4), "case 2 mismatch"
    assert jnp.allclose(jnp.sum(out2, axis=-1), 1.0, atol=1e-5)

    print("KERNEL_OK")
</pallas_src>

<mosaic_0001>
module attributes {stable_mosaic.version = 11 : i64} {
  func.func @_qga_kernel(%arg0: i32, %arg1: i32, %arg2: memref<2x128x32xf32, #tpu.memory_space<vmem>>, %arg3: memref<2x128x32xf32, #tpu.memory_space<vmem>>, %arg4: memref<2x128x128xf32, #tpu.memory_space<vmem>>) attributes {dimension_semantics = [#tpu.dimension_semantics<parallel>, #tpu.dimension_semantics<parallel>], iteration_bounds = array<i64: 1, 1>, scalar_prefetch = 0 : i64, scratch_operands = 0 : i64, tpu.core_type = #tpu.core_type<tc>, window_params = [{transform_indices = @transform_0, window_bounds = array<i64: 2, 128, 32>}, {transform_indices = @transform_1, window_bounds = array<i64: 2, 128, 32>}, {transform_indices = @transform_2, window_bounds = array<i64: 2, 128, 128>}]} {
    %c0 = arith.constant 0 : index
    %c0_0 = arith.constant 0 : index
    %c0_1 = arith.constant 0 : index
    %0 = vector.load %arg2[%c0, %c0_0, %c0_1] : memref<2x128x32xf32, #tpu.memory_space<vmem>>, vector<2x128x32xf32>
    %c0_2 = arith.constant 0 : index
    %c0_3 = arith.constant 0 : index
    %c0_4 = arith.constant 0 : index
    %1 = vector.load %arg3[%c0_2, %c0_3, %c0_4] : memref<2x128x32xf32, #tpu.memory_space<vmem>>, vector<2x128x32xf32>
    %cst = arith.constant dense<0.000000e+00> : vector<2x128x128xf32>
    %2 = tpu.matmul %0, %1, %cst {dimension_numbers = #tpu.dot_dimension_numbers<[2], [2], [1], [1], [0, 0, 0, 1, 1, 1], [0], [0]>} : vector<2x128x32xf32>, vector<2x128x32xf32>, vector<2x128x128xf32> -> vector<2x128x128xf32>
    %3 = arith.mulf %0, %0 : vector<2x128x32xf32>
    %cst_5 = arith.constant dense<0.000000e+00> : vector<2x128xf32>
    %4 = vector.multi_reduction <add>, %3, %cst_5 [2] : vector<2x128x32xf32> to vector<2x128xf32>
    %5 = vector.shape_cast %4 : vector<2x128xf32> to vector<2x128x1xf32>
    %6 = arith.mulf %1, %1 : vector<2x128x32xf32>
    %cst_6 = arith.constant dense<0.000000e+00> : vector<2x128xf32>
    %7 = vector.multi_reduction <add>, %6, %cst_6 [2] : vector<2x128x32xf32> to vector<2x128xf32>
    %8 = vector.shape_cast %7 : vector<2x128xf32> to vector<2x1x128xf32>
    %9 = vector.broadcast %5 : vector<2x128x1xf32> to vector<2x128x128xf32>
    %10 = vector.broadcast %8 : vector<2x1x128xf32> to vector<2x128x128xf32>
    %11 = arith.addf %9, %10 : vector<2x128x128xf32>
    %cst_7 = arith.constant 2.000000e+00 : f32
    %12 = vector.broadcast %cst_7 : f32 to vector<2x128x128xf32>
    %13 = arith.mulf %12, %2 : vector<2x128x128xf32>
    %14 = arith.subf %11, %13 : vector<2x128x128xf32>
    %cst_8 = arith.constant 9.99999996E-13 : f32
    %15 = vector.broadcast %cst_8 : f32 to vector<2x128x128xf32>
    %16 = arith.maximumf %14, %15 : vector<2x128x128xf32>
    %17 = math.sqrt %16 : vector<2x128x128xf32>
    %18 = tpu.iota {dimensions = array<i32: 1>} : vector<2x128x128xi32>
    %c128_i32 = arith.constant 128 : i32
    %19 = arith.muli %arg1, %c128_i32 : i32
    %20 = vector.broadcast %19 : i32 to vector<2x128x128xi32>
    %21 = arith.addi %18, %20 : vector<2x128x128xi32>
    %22 = tpu.iota {dimensions = array<i32: 2>} : vector<2x128x128xi32>
    %23 = arith.cmpi eq, %21, %22 : vector<2x128x128xi32>
    %cst_9 = arith.constant 0.000000e+00 : f32
    %24 = vector.broadcast %cst_9 : f32 to vector<2x128x128xf32>
    %25 = arith.select %23, %24, %17 : vector<2x128x128xi1>, vector<2x128x128xf32>
    %cst_10 = arith.constant -1.000000e+00 : f32
    %26 = vector.broadcast %cst_10 : f32 to vector<2x128x128xf32>
    %27 = arith.mulf %25, %26 : vector<2x128x128xf32>
    %c8_i32 = arith.constant 8 : i32
    %28 = vector.broadcast %c8_i32 : i32 to vector<2x128x128xi32>
    %29 = arith.cmpi slt, %22, %28 : vector<2x128x128xi32>
    %cst_11 = arith.constant -1.000000e+30 : f32
    %30 = vector.broadcast %cst_11 : f32 to vector<2x128x128xf32>
    %31 = arith.select %29, %27, %30 : vector<2x128x128xi1>, vector<2x128x128xf32>
    %cst_12 = arith.constant dense<0xFF800000> : vector<2x128xf32>
    %32 = vector.multi_reduction <maximumf>, %31, %cst_12 [2] : vector<2x128x128xf32> to vector<2x128xf32>
    %33 = vector.shape_cast %32 : vector<2x128xf32> to vector<2x128x1xf32>
    %34 = vector.broadcast %33 : vector<2x128x1xf32> to vector<2x128x128xf32>
    %35 = arith.subf %31, %34 : vector<2x128x128xf32>
    %36 = math.exp %35 : vector<2x128x128xf32>
    %cst_13 = arith.constant dense<0.000000e+00> : vector<2x128xf32>
    %37 = vector.multi_reduction <add>, %36, %cst_13 [2] : vector<2x128x128xf32> to vector<2x128xf32>
    %38 = vector.shape_cast %37 : vector<2x128xf32> to vector<2x128x1xf32>
    %cst_14 = arith.constant 1.000000e+00 : f32
    %39 = vector.broadcast %cst_14 : f32 to vector<2x128x1xf32>
    %40 = arith.divf %39, %38 : vector<2x128x1xf32>
    %41 = vector.broadcast %40 : vector<2x128x1xf32> to vector<2x128x128xf32>
    %42 = arith.mulf %36, %41 : vector<2x128x128xf32>
    %c0_15 = arith.constant 0 : index
    %c0_16 = arith.constant 0 : index
    %c0_17 = arith.constant 0 : index
    %43 = vector.load %arg4[%c0_15, %c0_16, %c0_17] : memref<2x128x128xf32, #tpu.memory_space<vmem>>, vector<2x128x128xf32>
    tpu.vector_store %arg4[%c0_15, %c0_16, %c0_17], %42 {strides = array<i32>} : memref<2x128x128xf32, #tpu.memory_space<vmem>>, vector<2x128x128xf32>,
    return
  }
  func.func @transform_0(%arg0: i32, %arg1: i32) -> (i32, i32, i32) {
    %c0_i32 = arith.constant 0 : i32
    %c0_i32_0 = arith.constant 0 : i32
    return %arg0, %arg1, %c0_i32 : i32, i32, i32
  }
  func.func @transform_1(%arg0: i32, %arg1: i32) -> (i32, i32, i32) {
    %c0_i32 = arith.constant 0 : i32
    %c0_i32_0 = arith.constant 0 : i32
    %c0_i32_1 = arith.constant 0 : i32
    return %arg0, %c0_i32, %c0_i32_0 : i32, i32, i32
  }
  func.func @transform_2(%arg0: i32, %arg1: i32) -> (i32, i32, i32) {
    %c0_i32 = arith.constant 0 : i32
    %c0_i32_0 = arith.constant 0 : i32
    return %arg0, %arg1, %c0_i32 : i32, i32, i32
  }
}

</mosaic_0001>

<bundles_post_ra>
// kernel: tpu_custom_call.1
= control target key start
LH: loop header
LB: loop body
LE: loop exit
PB: predicated region body
PF: predicated region fallthrough
CT: control target
= control target key end

     0   :  { %vm76_vm0 = vcmask 261120   ;;  %s4873_s0 = inlined_call_operand.vmem [shape: f32[2,128,32], index: 0, kind: input, shape index: {}]   ;;  %s4874_s1 = inlined_call_operand.vmem [shape: f32[2,128,32], index: 1, kind: input, shape index: {}]   ;;  %s4875_s2 = inlined_call_operand.hbm [shape: f32[2,128,128], index: 2, kind: output, shape index: {}]  }
   0x1   :  { %v2585_v0 = vld [vmem:[%s4874_s1 + $0x78] sm:$0xff]  ;;  %v2590_v1 = vld [vmem:[%s4873_s0 + $0x10] sm:$0xff]  ;;  %v2595_v2 = vld [vmem:[%s4873_s0] sm:$0xff] }
   0x2   :  { %2247 = vmatpush.xpose.msk.msra.mxu0 %vm76_vm0, %v2585_v0  ;;  %2311 = vmatpush.xpose.msk.msra.mxu2 %vm76_vm0, %v2585_v0  ;;  %v401_v3 = vmul.f32 %v2590_v1, %v2590_v1  ;;  %v399_v4 = vmul.f32 %v2595_v2, %v2595_v2  ;;  %v2608_v5 = vld [vmem:[%s4873_s0 + $0x20] sm:$0xff]  ;;  %v2613_v6 = vld [vmem:[%s4874_s1 + $0x70] sm:$0xff]  ;;  %v2620_v8 = vld [vmem:[%s4873_s0 + $0x18] sm:$0xff] }
   0x3   :  { %v403_v7 = vmul.f32 %v2608_v5, %v2608_v5  ;;  %v2625_v9 = vld [vmem:[%s4873_s0 + $0x8] sm:$0xff]  ;;  %v402_v14 = vmul.f32 %v2620_v8, %v2620_v8  ;;  %v2653_v18 = vld [vmem:[%s4874_s1 + $0xf8] sm:$0xff]  ;;  %v2664_v21 = vld [vmem:[%s4874_s1 + $0x60] sm:$0xff] }
   0x4   :  { %v437_v10 = vsel %vm76_vm0, %v401_v3, 0.0  ;;  %v431_v11 = vsel %vm76_vm0, %v399_v4, 0.0  ;;  %v2633_v13 = vld [vmem:[%s4873_s0 + $0x28] sm:$0xff]  ;;  %v400_v15 = vmul.f32 %v2625_v9, %v2625_v9  ;;  %4891 = vst [vmem:[#allocation5_spill] sm:$0xff] %v2653_v18  ;;  %v2669_v22 = vld [vmem:[%s4873_s0 + $0x38] sm:$0xff]  ;;  %v2674_v23 = vld [vmem:[%s4873_s0 + $0x30] sm:$0xff]  ;;  %2327 = vmatpush.xpose.msk.msra.mxu3 %vm76_vm0, %v2653_v18  ;;  %2279 = vmatpush.xpose.msk.msra.mxu1 %vm76_vm0, %v2653_v18 }
   0x5   :  { %438 = vadd.xlane.f32.xlu1 %v437_v10  ;;  %432 = vadd.xlane.f32.xlu0 %v431_v11  ;;  %v443_v12 = vsel %vm76_vm0, %v403_v7, 0.0  ;;  %v2646_v16 = vld [vmem:[%s4874_s1 + $0x68] sm:$0xff]  ;;  %v404_v17 = vmul.f32 %v2633_v13, %v2633_v13  ;;  %v440_v19 = vsel %vm76_vm0, %v402_v14, 0.0 }
   0x6   :  { %2248 = vmatpush.xpose.msk.msra.mxu0 %vm76_vm0, %v2613_v6  ;;  %2312 = vmatpush.xpose.msk.msra.mxu2 %vm76_vm0, %v2613_v6  ;;  %v434_v20 = vsel %vm76_vm0, %v400_v15, 0.0 }
   0x7   :  { %444 = vadd.xlane.f32.xlu2 %v443_v12 }
   0xa   :  { %2249 = vmatpush.xpose.msk.msra.mxu0 %vm76_vm0, %v2646_v16  ;;  %2313 = vmatpush.xpose.msk.msra.mxu2 %vm76_vm0, %v2646_v16 }
   0xb   :  { %7 = vsyncpa [#allocation3], 0  ;;  %v446_v24 = vsel %vm76_vm0, %v404_v17, 0.0  ;;  %v2684_v25 = vld [vmem:[%s4874_s1 + $0xf0] sm:$0xff]  ;;  %v2689_v26 = vld [vmem:[%s4873_s0 + $0x40] sm:$0xff]  ;;  %v406_v27 = vmul.f32 %v2669_v22, %v2669_v22  ;;  %v405_v28 = vmul.f32 %v2674_v23, %v2674_v23  ;;  %vm692_vm1 = vcmask 130112  }
   0xc   :  { %4892 = vst [vmem:[#allocation6_spill] sm:$0xff] %v2684_v25  ;;  %v2702_v29 = vld [vmem:[%s4874_s1 + $0x58] sm:$0xff]  ;;  %2328 = vmatpush.xpose.msk.msra.mxu3 %vm76_vm0, %v2684_v25  ;;  %v407_v30 = vmul.f32 %v2689_v26, %v2689_v26  ;;  %v2711_v31 = vld [vmem:[%s4874_s1 + $0xe8] sm:$0xff]  ;;  %2280 = vmatpush.xpose.msk.msra.mxu1 %vm76_vm0, %v2684_v25  ;;  %v2724_v34 = vld [vmem:[%s4874_s1 + $0x50] sm:$0xff]  ;;  %vm696_vm2 = vcmask 195712   ;;  %vm700_vm3 = vcmask 261312  }
   0xd   :  { %441 = vadd.xlane.f32.xlu1 %v440_v19  ;;  %435 = vadd.xlane.f32.xlu0 %v434_v20  ;;  %4893 = vst [vmem:[#allocation7_spill] sm:$0xff] %v2711_v31  ;;  %v452_v32 = vsel %vm76_vm0, %v406_v27, 0.0  ;;  %v449_v33 = vsel %vm76_vm0, %v405_v28, 0.0  ;;  %v2729_v35 = vld [vmem:[%s4873_s0 + $0x50] sm:$0xff]  ;;  %v2734_v36 = vld [vmem:[%s4873_s0 + $0x48] sm:$0xff]  ;;  %v2742_v38 = vld [vmem:[%s4874_s1 + $0xe0] sm:$0xff] }
   0xe   :  { %2250 = vmatpush.xpose.msk.msra.mxu0 %vm76_vm0, %v2664_v21  ;;  %2314 = vmatpush.xpose.msk.msra.mxu2 %vm76_vm0, %v2664_v21  ;;  %v455_v37 = vsel %vm76_vm0, %v407_v30, 0.0  ;;  %v2749_v39 = vld [vmem:[%s4873_s0 + $0x58] sm:$0xff]  ;;  %v409_v40 = vmul.f32 %v2729_v35, %v2729_v35  ;;  %v408_v41 = vmul.f32 %v2734_v36, %v2734_v36  ;;  %v2762_v42 = vld [vmem:[%s4874_s1 + $0x48] sm:$0xff]  ;;  %v2784_v47 = vld [vmem:[%s4874_s1 + $0x40] sm:$0xff]  ;;  %vm704_vm4 = vcmask 326912   ;;  %s2235_s27 = sshll.u32 %s4875_s2, 4  ;;  %s2236_s27 = int_to_ptr.hbm [resolvable:$true] %s2235_s27 }
   0xf   :  { %447 = vadd.xlane.f32.xlu2 %v446_v24  ;;  %v410_v43 = vmul.f32 %v2749_v39, %v2749_v39  ;;  %v2771_v44 = vld [vmem:[%s4874_s1 + $0xd8] sm:$0xff]  ;;  %v2789_v48 = vld [vmem:[%s4873_s0 + $0x68] sm:$0xff]  ;;  %v2794_v49 = vld [vmem:[%s4873_s0 + $0x60] sm:$0xff]  ;;  %vm708_vm5 = vcmask 392512   ;;  %vm712_vm6 = vcmask 458112   ;;  %vm716_vm7 = vcmask 523712  }
  0x10   :  { %2329 = vmatpush.xpose.msk.msra.mxu3 %vm76_vm0, %v2711_v31  ;;  %2281 = vmatpush.xpose.msk.msra.mxu1 %vm76_vm0, %v2711_v31  ;;  %v461_v45 = vsel %vm76_vm0, %v409_v40, 0.0  ;;  %v458_v46 = vsel %vm76_vm0, %v408_v41, 0.0  ;;  %v2802_v51 = vld [vmem:[%s4874_s1 + $0xd0] sm:$0xff]  ;;  %v412_v53 = vmul.f32 %v2789_v48, %v2789_v48  ;;  %v411_v54 = vmul.f32 %v2794_v49, %v2794_v49  ;;  %v2822_v55 = vld [vmem:[%s4874_s1 + $0x38] sm:$0xff]  ;;  %v2833_v57 = vld [vmem:[%s4874_s1 + $0xc8] sm:$0xff]  ;;  %s2565_s28 = smov 128  }
  0x11   :  { %v464_v50 = vsel %vm76_vm0, %v410_v43, 0.0  ;;  %v2809_v52 = vld [vmem:[%s4873_s0 + $0x70] sm:$0xff]  ;;  %v2849_v61 = vld [vmem:[%s4873_s0 + $0x80] sm:$0xff]  ;;  %v2854_v62 = vld [vmem:[%s4873_s0 + $0x78] sm:$0xff]  ;;  %vm720_vm8 = vcmask 589312   ;;  %vm724_vm9 = vcmask 654912  }
  0x12   :  { %2251 = vmatpush.xpose.msk.msra.mxu0 %vm76_vm0, %v2702_v29  ;;  %2315 = vmatpush.xpose.msk.msra.mxu2 %vm76_vm0, %v2702_v29  ;;  %v413_v56 = vmul.f32 %v2809_v52, %v2809_v52  ;;  %v470_v58 = vsel %vm76_vm0, %v412_v53, 0.0  ;;  %v467_v59 = vsel %vm76_vm0, %v411_v54, 0.0  ;;  %v2844_v60 = vld [vmem:[%s4874_s1 + $0x30] sm:$0xff]  ;;  %v2862_v3 = vld [vmem:[%s4874_s1 + $0xc0] sm:$0xff]  ;;  %v2869_v4 = vld [vmem:[%s4873_s0 + $0x88] sm:$0xff]  ;;  %v415_v7 = vmul.f32 %v2849_v61, %v2849_v61  ;;  %s2566_s29 = smov 8  }
  0x13   :  { %v414_v10 = vmul.f32 %v2854_v62, %v2854_v62  ;;  %v2882_v11 = vld [vmem:[%s4874_s1 + $0x28] sm:$0xff]  ;;  %v416_v12 = vmul.f32 %v2869_v4, %v2869_v4  ;;  %v2893_v14 = vld [vmem:[%s4874_s1 + $0xb8] sm:$0xff]  ;;  %v2904_v19 = vld [vmem:[%s4874_s1 + $0x20] sm:$0xff]  ;;  %vm728_vm10 = vcmask 720512   ;;  %vm732_vm11 = vcmask 786112  }
  0x14   :  { %2330 = vmatpush.xpose.msk.msra.mxu3 %vm76_vm0, %v2742_v38  ;;  %2282 = vmatpush.xpose.msk.msra.mxu1 %vm76_vm0, %v2742_v38  ;;  %v473_v63 = vsel %vm76_vm0, %v413_v56, 0.0  ;;  %v479_v15 = vsel %vm76_vm0, %v415_v7, 0.0  ;;  %v2909_v20 = vld [vmem:[%s4873_s0 + $0x98] sm:$0xff]  ;;  %v2914_v24 = vld [vmem:[%s4873_s0 + $0x90] sm:$0xff]  ;;  %v2929_v30 = vld [vmem:[%s4873_s0 + $0xa0] sm:$0xff]  ;;  %vm736_vm12 = vcmask 851712  }
  0x15   :  { %453 = vadd.xlane.f32.xlu1 %v452_v32  ;;  %450 = vadd.xlane.f32.xlu0 %v449_v33  ;;  %v476_v17 = vsel %vm76_vm0, %v414_v10, 0.0  ;;  %v482_v27 = vsel %vm76_vm0, %v416_v12, 0.0  ;;  %v2922_v28 = vld [vmem:[%s4874_s1 + $0xb0] sm:$0xff]  ;;  %v418_v32 = vmul.f32 %v2909_v20, %v2909_v20  ;;  %v417_v33 = vmul.f32 %v2914_v24, %v2914_v24  ;;  %v2953_v41 = vld [vmem:[%s4874_s1 + $0xa8] sm:$0xff]  ;;  %v2982_v56 = vld [vmem:[%s4874_s1 + $0xa0] sm:$0xff] }
  0x16   :  { %2252 = vmatpush.xpose.msk.msra.mxu0 %vm76_vm0, %v2724_v34  ;;  %2316 = vmatpush.xpose.msk.msra.mxu2 %vm76_vm0, %v2724_v34  ;;  %v419_v40 = vmul.f32 %v2929_v30, %v2929_v30  ;;  %v2974_v53 = vld [vmem:[%s4873_s0 + $0xa8] sm:$0xff]  ;;  %v3013_v12 = vld [vmem:[%s4874_s1 + $0x98] sm:$0xff]  ;;  %v3106_v31 = vld [vmem:[%s4873_s0 + $0xf0] sm:$0xff]  ;;  %vm740_vm13 = vcmask 917312   ;;  %vm744_vm14 = vcmask 982912   ;;  %vm748_vm15 = vcmask 1048512  }
  0x17   :  { %456 = vadd.xlane.f32.xlu2 %v455_v37  ;;  %v2942_v37 = vld [vmem:[%s4874_s1 + $0x18] sm:$0xff]  ;;  %v488_v43 = vsel %vm76_vm0, %v418_v32, 0.0  ;;  %v3002_v7 = vld [vmem:[%s4874_s1 + $0x8] sm:$0xff] }
  0x18   :  { %2331 = vmatpush.xpose.msk.msra.mxu3 %vm76_vm0, %v2771_v44  ;;  %2283 = vmatpush.xpose.msk.msra.mxu1 %vm76_vm0, %v2771_v44  ;;  %v491_v54 = vsel %vm76_vm0, %v419_v40, 0.0  ;;  %v37_v32 = vld [vmem:[%s4873_s0 + $0xc8] sm:$0xff] }
  0x1a   :  { %2253 = vmatpush.xpose.msk.msra.mxu0 %vm76_vm0, %v2762_v42  ;;  %2317 = vmatpush.xpose.msk.msra.mxu2 %vm76_vm0, %v2762_v42 }
  0x1c   :  { %2332 = vmatpush.xpose.msk.msra.mxu3 %vm76_vm0, %v2802_v51  ;;  %2284 = vmatpush.xpose.msk.msra.mxu1 %vm76_vm0, %v2802_v51 }
  0x1d   :  { %462 = vadd.xlane.f32.xlu1 %v461_v45  ;;  %459 = vadd.xlane.f32.xlu0 %v458_v46  ;;  %v485_v45 = vsel %vm76_vm0, %v417_v33, 0.0  ;;  %v2964_v46 = vld [vmem:[%s4874_s1 + $0x10] sm:$0xff]  ;;  %v36_v33 = vld [vmem:[%s4873_s0 + $0xc0] sm:$0xff] }
  0x1e   :  { %2254 = vmatpush.xpose.msk.msra.mxu0 %vm76_vm0, %v2784_v47  ;;  %2318 = vmatpush.xpose.msk.msra.mxu2 %vm76_vm0, %v2784_v47 }
  0x1f   :  { %465 = vadd.xlane.f32.xlu2 %v464_v50  ;;  %v2969_v50 = vld [vmem:[%s4873_s0 + $0xb0] sm:$0xff] }
  0x20   :  { %2333 = vmatpush.xpose.msk.msra.mxu3 %vm76_vm0, %v2833_v57  ;;  %2285 = vmatpush.xpose.msk.msra.mxu1 %vm76_vm0, %v2833_v57 }
  0x22   :  { %2255 = vmatpush.xpose.msk.msra.mxu0 %vm76_vm0, %v2822_v55  ;;  %2319 = vmatpush.xpose.msk.msra.mxu2 %vm76_vm0, %v2822_v55 }
  0x24   :  { %2334 = vmatpush.xpose.msk.msra.mxu3 %vm76_vm0, %v2862_v3  ;;  %2286 = vmatpush.xpose.msk.msra.mxu1 %vm76_vm0, %v2862_v3 }
  0x25   :  { %471 = vadd.xlane.f32.xlu1 %v470_v58  ;;  %468 = vadd.xlane.f32.xlu0 %v467_v59  ;;  %v2989_v58 = vld [vmem:[%s4873_s0 + $0xb8] sm:$0xff]  ;;  %v421_v59 = vmul.f32 %v2969_v50, %v2969_v50 }
  0x26   :  { %2256 = vmatpush.xpose.msk.msra.mxu0 %vm76_vm0, %v2844_v60  ;;  %2320 = vmatpush.xpose.msk.msra.mxu2 %vm76_vm0, %v2844_v60  ;;  %v422_v10 = vmul.f32 %v2989_v58, %v2989_v58 }
  0x27   :  { %474 = vadd.xlane.f32.xlu2 %v473_v63  ;;  %v420_v63 = vmul.f32 %v2974_v53, %v2974_v53 }
  0x28   :  { %2335 = vmatpush.xpose.msk.msra.mxu3 %vm76_vm0, %v2893_v14  ;;  %2287 = vmatpush.xpose.msk.msra.mxu1 %vm76_vm0, %v2893_v14  ;;  %v500_v40 = vsel %vm76_vm0, %v422_v10, 0.0  ;;  %v3056_v10 = vld [vmem:[%s4874_s1 + $0x88] sm:$0xff] }
  0x2a   :  { %2257 = vmatpush.xpose.msk.msra.mxu0 %vm76_vm0, %v2882_v11  ;;  %2321 = vmatpush.xpose.msk.msra.mxu2 %vm76_vm0, %v2882_v11 }
  0x2c   :  { %2336 = vmatpush.xpose.msk.msra.mxu3 %vm76_vm0, %v2922_v28  ;;  %2288 = vmatpush.xpose.msk.msra.mxu1 %vm76_vm0, %v2922_v28 }
  0x2d   :  { %480 = vadd.xlane.f32.xlu1 %v479_v15  ;;  %477 = vadd.xlane.f32.xlu0 %v476_v17  ;;  %v497_v15 = vsel %vm76_vm0, %v421_v59, 0.0  ;;  %v494_v17 = vsel %vm76_vm0, %v420_v63, 0.0  ;;  %v423_v59 = vmul.f32 %v36_v33, %v36_v33 }
  0x2e   :  { %2258 = vmatpush.xpose.msk.msra.mxu0 %vm76_vm0, %v2904_v19  ;;  %2322 = vmatpush.xpose.msk.msra.mxu2 %vm76_vm0, %v2904_v19 }
  0x2f   :  { %483 = vadd.xlane.f32.xlu2 %v482_v27  ;;  %v44_v27 = vld [vmem:[%s4874_s1] sm:$0xff] }
  0x30   :  { %2337 = vmatpush.xpose.msk.msra.mxu3 %vm76_vm0, %v2953_v41  ;;  %2289 = vmatpush.xpose.msk.msra.mxu1 %vm76_vm0, %v2953_v41 }
  0x32   :  { %2259 = vmatpush.xpose.msk.msra.mxu0 %vm76_vm0, %v2942_v37  ;;  %2323 = vmatpush.xpose.msk.msra.mxu2 %vm76_vm0, %v2942_v37 }
  0x34   :  { %2338 = vmatpush.xpose.msk.msra.mxu3 %vm76_vm0, %v2982_v56  ;;  %2290 = vmatpush.xpose.msk.msra.mxu1 %vm76_vm0, %v2982_v56 }
  0x35   :  { %489 = vadd.xlane.f32.xlu1 %v488_v43  ;;  %486 = vadd.xlane.f32.xlu0 %v485_v45  ;;  %v3036_v43 = vld [vmem:[%s4874_s1 + $0x90] sm:$0xff] }
  0x36   :  { %2260 = vmatpush.xpose.msk.msra.mxu0 %vm76_vm0, %v2964_v46  ;;  %2324 = vmatpush.xpose.msk.msra.mxu2 %vm76_vm0, %v2964_v46  ;;  %v38_v45 = vld [vmem:[%s4873_s0 + $0xd0] sm:$0xff] }
  0x37   :  { %492 = vadd.xlane.f32.xlu2 %v491_v54  ;;  %v424_v54 = vmul.f32 %v37_v32, %v37_v32  ;;  %v425_v63 = vmul.f32 %v38_v45, %v38_v45 }
  0x38   :  { %2339 = vmatpush.xpose.msk.msra.mxu3 %vm76_vm0, %v3013_v12  ;;  %2291 = vmatpush.xpose.msk.msra.mxu1 %vm76_vm0, %v3013_v12 }
  0x3a   :  { %2261 = vmatpush.xpose.msk.msra.mxu0 %vm76_vm0, %v3002_v7  ;;  %2325 = vmatpush.xpose.msk.msra.mxu2 %vm76_vm0, %v3002_v7 }
  0x3c   :  { %2340 = vmatpush.xpose.msk.msra.mxu3 %vm76_vm0, %v3036_v43  ;;  %2292 = vmatpush.xpose.msk.msra.mxu1 %vm76_vm0, %v3036_v43 }
  0x3d   :  { %498 = vadd.xlane.f32.xlu1 %v497_v15  ;;  %495 = vadd.xlane.f32.xlu0 %v494_v17  ;;  %v506_v15 = vsel %vm76_vm0, %v424_v54, 0.0  ;;  %v503_v17 = vsel %vm76_vm0, %v423_v59, 0.0  ;;  %v3074_v54 = vld [vmem:[%s4874_s1 + $0x80] sm:$0xff]  ;;  %v3081_v59 = vld [vmem:[%s4873_s0 + $0xe8] sm:$0xff] }
  0x3e   :  { %2262 = vmatpush.xpose.msk.msra.mxu0 %vm76_vm0, %v44_v27  ;;  %2326 = vmatpush.xpose.msk.msra.mxu2 %vm76_vm0, %v44_v27 }
  0x3f   :  { %501 = vadd.xlane.f32.xlu2 %v500_v40  ;;  %v3063_v40 = vld [vmem:[%s4873_s0 + $0xe0] sm:$0xff] }
  0x40   :  { %2341 = vmatpush.xpose.msk.msra.mxu3 %vm76_vm0, %v3056_v10  ;;  %2293 = vmatpush.xpose.msk.msra.mxu1 %vm76_vm0, %v3056_v10  ;;  %v427_v18 = vmul.f32 %v3063_v40, %v3063_v40 }
  0x41   :  { %2263 = vmatmul.msk.f32.vlgmr.msra.gmra.mxu0 %vm76_vm0, %v2595_v2  ;;  %2271 = vmatmul.msk.f32.vlgmr.msra.gmra.mxu2 %vm76_vm0, %v2689_v26  ;;  %v39_v2 = vld [vmem:[%s4873_s0 + $0xd8] sm:$0xff]  ;;  %v509_v26 = vsel %vm76_vm0, %v425_v63, 0.0  ;;  %v428_v63 = vmul.f32 %v3081_v59, %v3081_v59 }
  0x42   :  { %v426_v25 = vmul.f32 %v39_v2, %v39_v2 }
  0x44   :  { %2342 = vmatpush.xpose.msk.msra.mxu3 %vm76_vm0, %v3074_v54  ;;  %2294 = vmatpush.xpose.msk.msra.mxu1 %vm76_vm0, %v3074_v54 }
  0x45   :  { %507 = vadd.xlane.f32.xlu1 %v506_v15  ;;  %504 = vadd.xlane.f32.xlu0 %v503_v17  ;;  %v515_v15 = vsel %vm76_vm0, %v427_v18, 0.0  ;;  %v512_v17 = vsel %vm76_vm0, %v426_v25, 0.0  ;;  %v429_v25 = vmul.f32 %v3106_v31, %v3106_v31 }
  0x47   :  { %510 = vadd.xlane.f32.xlu2 %v509_v26  ;;  %2303 = vmatmul.msk.f32.vlgmr.msra.gmra.mxu3 %vm76_vm0, %v36_v33  ;;  %v3101_v26 = vld [vmem:[%s4873_s0 + $0xf8] sm:$0xff]  ;;  %v521_v33 = vsel %vm76_vm0, %v429_v25, 0.0  ;;  %s2564_s0 = smov [#allocation2]  }
  0x48   :  { %2295 = vmatmul.msk.f32.vlgmr.msra.gmra.mxu1 %vm76_vm0, %v2849_v61  ;;  %v430_v18 = vmul.f32 %v3101_v26, %v3101_v26  ;;  %s2233_s24 = sshll.u32 %s2564_s0, 4  ;;  %s2234_s24 = int_to_ptr.vmem [resolvable:$true] %s2233_s24 }
  0x49   :  { %2264 = vmatmul.msk.f32.gmra.mxu0 %vm76_vm0, %v2625_v9  ;;  %2272 = vmatmul.msk.f32.gmra.mxu2 %vm76_vm0, %v2734_v36  ;;  %v518_v9 = vsel %vm76_vm0, %v428_v63, 0.0  ;;  %v527_v36 = vmul.f32 %v44_v27, %v44_v27  ;;  %v529_v27 = vmul.f32 %v2964_v46, %v2964_v46 }
  0x4a   :  { %v524_v61 = vsel %vm76_vm0, %v430_v18, 0.0 }
  0x4b   :  { %v559_v63 = vsel %vm76_vm0, %v527_v36, 0.0 }
  0x4d   :  { %516 = vadd.xlane.f32.xlu1 %v515_v15  ;;  %513 = vadd.xlane.f32.xlu0 %v512_v17 }
  0x4f   :  { %519 = vadd.xlane.f32.xlu2 %v518_v9  ;;  %2304 = vmatmul.msk.f32.gmra.mxu3 %vm76_vm0, %v37_v32 }
  0x50   :  { %2296 = vmatmul.msk.f32.gmra.mxu1 %vm76_vm0, %v2869_v4  ;;  %v565_v4 = vsel %vm76_vm0, %v529_v27, 0.0 }
  0x51   :  { %2265 = vmatmul.msk.f32.gmra.mxu0 %vm76_vm0, %v2590_v1  ;;  %2273 = vmatmul.msk.f32.gmra.mxu2 %vm76_vm0, %v2729_v35  ;;  %v528_v1 = vmul.f32 %v3002_v7, %v3002_v7  ;;  %v530_v35 = vmul.f32 %v2942_v37, %v2942_v37  ;;  %v532_v37 = vmul.f32 %v2882_v11, %v2882_v11 }
  0x53   :  { %v562_v32 = vsel %vm76_vm0, %v528_v1, 0.0  ;;  %v568_v46 = vsel %vm76_vm0, %v530_v35, 0.0 }
  0x55   :  { %525 = vadd.xlane.f32.xlu1 %v524_v61  ;;  %522 = vadd.xlane.f32.xlu0 %v521_v33  ;;  %v551_v33 = vmul.f32 %v2862_v3, %v2862_v3 }
  0x57   :  { %560 = vadd.xlane.f32.xlu2 %v559_v63  ;;  %2305 = vmatmul.msk.f32.gmra.mxu3 %vm76_vm0, %v38_v45  ;;  %v542_v45 = vmul.f32 %v2585_v0, %v2585_v0  ;;  %v631_v35 = vsel %vm76_vm0, %v551_v33, 0.0 }
  0x58   :  { %2297 = vmatmul.msk.f32.gmra.mxu1 %vm76_vm0, %v2914_v24  ;;  %v574_v24 = vsel %vm76_vm0, %v532_v37, 0.0 }
  0x59   :  { %2266 = vmatmul.msk.f32.gmra.mxu0 %vm76_vm0, %v2620_v8  ;;  %2274 = vmatmul.msk.f32.gmra.mxu2 %vm76_vm0, %v2749_v39  ;;  %v531_v8 = vmul.f32 %v2904_v19, %v2904_v19  ;;  %v533_v39 = vmul.f32 %v2844_v60, %v2844_v60  ;;  %v535_v60 = vmul.f32 %v2784_v47, %v2784_v47  ;;  %v604_v0 = vsel %vm76_vm0, %v542_v45, 0.0 }
  0x5b   :  { %v571_v7 = vsel %vm76_vm0, %v531_v8, 0.0  ;;  %v577_v11 = vsel %vm76_vm0, %v533_v39, 0.0  ;;  %v583_v19 = vsel %vm76_vm0, %v535_v60, 0.0 }
  0x5d   :  { %566 = vadd.xlane.f32.xlu1 %v565_v4  ;;  %563 = vadd.xlane.f32.xlu0 %v562_v32  ;;  %v554_v32 = vmul.f32 %v2771_v44, %v2771_v44 }
  0x5f   :  { %569 = vadd.xlane.f32.xlu2 %v568_v46  ;;  %2306 = vmatmul.msk.f32.gmra.mxu3 %vm76_vm0, %v39_v2  ;;  %v640_v39 = vsel %vm76_vm0, %v554_v32, 0.0 }
  0x60   :  { %2298 = vmatmul.msk.f32.gmra.mxu1 %vm76_vm0, %v2909_v20 }
  0x61   :  { %2267 = vmatmul.msk.f32.gmra.mxu0 %vm76_vm0, %v2608_v5  ;;  %2275 = vmatmul.msk.f32.gmra.mxu2 %vm76_vm0, %v2794_v49  ;;  %v534_v5 = vmul.f32 %v2822_v55, %v2822_v55  ;;  %v536_v49 = vmul.f32 %v2762_v42, %v2762_v42  ;;  %v537_v42 = vmul.f32 %v2724_v34, %v2724_v34 }
  0x63   :  { %v580_v20 = vsel %vm76_vm0, %v534_v5, 0.0  ;;  %v586_v47 = vsel %vm76_vm0, %v536_v49, 0.0 }
  0x65   :  { %575 = vadd.xlane.f32.xlu1 %v574_v24  ;;  %572 = vadd.xlane.f32.xlu0 %v571_v7 }
  0x67   :  { %578 = vadd.xlane.f32.xlu2 %v577_v11  ;;  %2307 = vmatmul.msk.f32.gmra.mxu3 %vm76_vm0, %v3063_v40  ;;  %v4900_v11 = vld [vmem:[#allocation6_spill] sm:$0xff] }
  0x68   :  { %2299 = vmatmul.msk.f32.gmra.mxu1 %vm76_vm0, %v2929_v30  ;;  %v589_v30 = vsel %vm76_vm0, %v537_v42, 0.0  ;;  %v557_v60 = vmul.f32 %v4900_v11, %v4900_v11 }
  0x69   :  { %2268 = vmatmul.msk.f32.gmra.mxu0 %vm76_vm0, %v2633_v13  ;;  %2276 = vmatmul.msk.f32.gmra.mxu2 %vm76_vm0, %v2789_v48  ;;  %v538_v13 = vmul.f32 %v2702_v29, %v2702_v29  ;;  %v539_v48 = vmul.f32 %v2664_v21, %v2664_v21  ;;  %v541_v21 = vmul.f32 %v2613_v6, %v2613_v6 }
  0x6b   :  { %v592_v55 = vsel %vm76_vm0, %v538_v13, 0.0  ;;  %v595_v29 = vsel %vm76_vm0, %v539_v48, 0.0  ;;  %v601_v6 = vsel %vm76_vm0, %v541_v21, 0.0 }
  0x6d   :  { %584 = vadd.xlane.f32.xlu1 %v583_v19  ;;  %581 = vadd.xlane.f32.xlu0 %v580_v20  ;;  %v649_v20 = vsel %vm76_vm0, %v557_v60, 0.0 }
  0x6f   :  { %587 = vadd.xlane.f32.xlu2 %v586_v47  ;;  %2308 = vmatmul.msk.f32.gmra.mxu3 %vm76_vm0, %v3081_v59 }
  0x70   :  { %2300 = vmatmul.msk.f32.gmra.mxu1 %vm76_vm0, %v2974_v53 }
  0x71   :  { %2269 = vmatmul.msk.f32.gmra.mxu0 %vm76_vm0, %v2674_v23  ;;  %2277 = vmatmul.msk.f32.gmra.mxu2 %vm76_vm0, %v2809_v52  ;;  %v540_v23 = vmul.f32 %v2646_v16, %v2646_v16 }
  0x73   :  { %v598_v16 = vsel %vm76_vm0, %v540_v23, 0.0 }
  0x75   :  { %593 = vadd.xlane.f32.xlu1 %v592_v55  ;;  %590 = vadd.xlane.f32.xlu0 %v589_v30 }
  0x77   :  { %596 = vadd.xlane.f32.xlu2 %v595_v29  ;;  %2309 = vmatmul.msk.f32.gmra.mxu3 %vm76_vm0, %v3106_v31  ;;  %v545_v31 = vmul.f32 %v3036_v43, %v3036_v43  ;;  %v547_v43 = vmul.f32 %v2982_v56, %v2982_v56  ;;  %v549_v56 = vmul.f32 %v2922_v28, %v2922_v28 }
  0x78   :  { %v3195_v34 = vpop.xlane.xlu1 %438  ;;  %v3197_v52 = vpop.xlane.xlu0 %432  ;;  %2301 = vmatmul.msk.f32.gmra.mxu1 %vm76_vm0, %v2969_v50  ;;  %v553_v28 = vmul.f32 %v2802_v51, %v2802_v51  ;;  %v555_v51 = vmul.f32 %v2742_v38, %v2742_v38  ;;  %v4901_v38 = vld [vmem:[#allocation5_spill] sm:$0xff] }
  0x79   :  { %2278 = vmatmul.msk.f32.gmra.mxu2 %vm76_vm0, %v2854_v62  ;;  %2270 = vmatmul.msk.f32.gmra.mxu0 %vm76_vm0, %v2669_v22  ;;  %v544_v62 = vmul.f32 %v3056_v10, %v3056_v10  ;;  %v543_v22 = vmul.f32 %v3074_v54, %v3074_v54  ;;  %v613_v10 = vsel %vm76_vm0, %v545_v31, 0.0  ;;  %v546_v54 = vmul.f32 %v3013_v12, %v3013_v12 }
  0x7a   :  { %v3205_v53 = vpop.xlane.xlu2 %444  ;;  %v619_v25 = vsel %vm76_vm0, %v547_v43, 0.0  ;;  %v550_v12 = vmul.f32 %v2893_v14, %v2893_v14  ;;  %v625_v27 = vsel %vm76_vm0, %v549_v56, 0.0  ;;  %v552_v14 = vmul.f32 %v2833_v57, %v2833_v57  ;;  %v4899_v57 = vld [vmem:[#allocation7_spill] sm:$0xff] }
  0x7b   :  { %4894 = vst [vmem:[#allocation8_spill] sm:$0xff] %v3205_v53  ;;  %v610_v50 = vsel %vm76_vm0, %v544_v62, 0.0  ;;  %v607_v15 = vsel %vm76_vm0, %v543_v22, 0.0  ;;  %v637_v8 = vsel %vm76_vm0, %v553_v28, 0.0  ;;  %v556_v24 = vmul.f32 %v4899_v57, %v4899_v57 }
  0x7c   :  { %v628_v1 = vsel %vm76_vm0, %v550_v12, 0.0  ;;  %v634_v37 = vsel %vm76_vm0, %v552_v14, 0.0  ;;  %v643_v49 = vsel %vm76_vm0, %v555_v51, 0.0  ;;  %v558_v47 = vmul.f32 %v4901_v38, %v4901_v38 }
  0x7d   :  { %602 = vadd.xlane.f32.xlu1 %v601_v6  ;;  %599 = vadd.xlane.f32.xlu0 %v598_v16  ;;  %v646_v19 = vsel %vm76_vm0, %v556_v24, 0.0  ;;  %v4879_v31 = vlaneseq }
  0x7e   :  { %v652_v55 = vsel %vm76_vm0, %v558_v47, 0.0 }
  0x7f   :  { %605 = vadd.xlane.f32.xlu2 %v604_v0  ;;  %2310 = vmatmul.msk.f32.gmra.mxu3 %vm76_vm0, %v3101_v26  ;;  %v548_v26 = vmul.f32 %v2953_v41, %v2953_v41  ;;  %v3329_v43 = vand.u32 127, %v4879_v31 }
  0x80   :  { %v3218_v40 = vpop.xlane.xlu1 %441  ;;  %v3220_v2 = vpop.xlane.xlu0 %435  ;;  %2302 = vmatmul.msk.f32.gmra.mxu1 %vm76_vm0, %v2989_v58  ;;  %v616_v58 = vsel %vm76_vm0, %v546_v54, 0.0 }
  0x81   :  { %v622_v36 = vsel %vm76_vm0, %v548_v26, 0.0  ;;  %v3337_v56 = vadd.s32 4294967280, %v3329_v43  ;;  %v3348_v28 = vadd.s32 4294967264, %v3329_v43  ;;  %v3355_v57 = vadd.s32 4294967256, %v3329_v43 }
  0x82   :  { %v3224_v59 = vpop.xlane.xlu2 %447  ;;  %v3365_v38 = vadd.s32 4294967240, %v3329_v43 }
  0x83   :  { %4895 = vst [vmem:[#allocation9_spill] sm:$0xff] %v3224_v59 }
  0x85   :  { %611 = vadd.xlane.f32.xlu1 %v610_v50  ;;  %608 = vadd.xlane.f32.xlu0 %v607_v15 }
  0x87   :  { %614 = vadd.xlane.f32.xlu2 %v613_v10 }
  0x88   :  { %v3237_v17 = vpop.xlane.xlu1 %453  ;;  %v3239_v9 = vpop.xlane.xlu0 %450 }
  0x89   :  { %4896 = vst [vmem:[#allocation10_spill] sm:$0xff] %v3239_v9 }
  0x8a   :  { %v3243_v18 = vpop.xlane.xlu2 %456 }
  0x8d   :  { %617 = vadd.xlane.f32.xlu0 %v616_v58  ;;  %620 = vadd.xlane.f32.xlu1 %v619_v25  ;;  %v3334_v58 = vadd.s32 4294967288, %v3329_v43 }
  0x8f   :  { %623 = vadd.xlane.f32.xlu2 %v622_v36 }
  0x90   :  { %v3252_v61 = vpop.xlane.xlu1 %462  ;;  %v3254_v41 = vpop.xlane.xlu0 %459 }
  0x92   :  { %v3258_v63 = vpop.xlane.xlu2 %465 }
  0x95   :  { %626 = vadd.xlane.f32.xlu0 %v625_v27  ;;  %629 = vadd.xlane.f32.xlu1 %v628_v1 }
  0x97   :  { %632 = vadd.xlane.f32.xlu2 %v631_v35  ;;  %v3344_v35 = vadd.s32 4294967272, %v3329_v43 }
  0x98   :  { %v3267_v4 = vpop.xlane.xlu1 %471  ;;  %v3269_v3 = vpop.xlane.xlu0 %468 }
  0x99   :  { %4897 = vst [vmem:[#allocation11_spill] sm:$0xff] %v3267_v4 }
  0x9a   :  { %4898 = vst [vmem:[#allocation12_spill] sm:$0xff] %v3269_v3  ;;  %v3273_v46 = vpop.xlane.xlu2 %474 }
  0x9d   :  { %635 = vadd.xlane.f32.xlu0 %v634_v37  ;;  %638 = vadd.xlane.f32.xlu1 %v637_v8 }
  0x9f   :  { %641 = vadd.xlane.f32.xlu2 %v640_v39 }
  0xa0   :  { %v3282_v7 = vpop.xlane.xlu1 %480  ;;  %v3284_v44 = vpop.xlane.xlu0 %477 }
  0xa2   :  { %v3288_v5 = vpop.xlane.xlu2 %483 }
  0xa5   :  { %644 = vadd.xlane.f32.xlu0 %v643_v49  ;;  %647 = vadd.xlane.f32.xlu1 %v646_v19  ;;  %v3360_v49 = vadd.s32 4294967248, %v3329_v43 }
  0xa7   :  { %650 = vadd.xlane.f32.xlu2 %v649_v20 }
  0xa8   :  { %v3295_v13 = vpop.xlane.xlu1 %489  ;;  %v3297_v42 = vpop.xlane.xlu0 %486 }
  0xa9   :  { %4902 = vst [vmem:[#allocation7_spill] sm:$0xff] %v3295_v13 }
  0xaa   :  { %v3299_v48 = vpop.xlane.xlu2 %492 }
  0xab   :  { %4903 = vst [vmem:[#allocation6_spill] sm:$0xff] %v3299_v48 }
  0xad   :  { %653 = vadd.xlane.f32.xlu0 %v652_v55 }
  0xb0   :  { %v3302_v30 = vpop.xlane.xlu1 %498  ;;  %v3304_v29 = vpop.xlane.xlu0 %495 }
  0xb1   :  { %4904 = vst [vmem:[#allocation5_spill] sm:$0xff] %v3302_v30 }
  0xb2   :  { %4905 = vst [vmem:[#allocation13_spill] sm:$0xff] %v3304_v29  ;;  %v3306_v21 = vpop.xlane.xlu2 %501  ;;  %v3420_v29 = vadd.s32 4294967176, %v3329_v43 }
  0xb3   :  { %4906 = vst [vmem:[#allocation14_spill] sm:$0xff] %v3306_v21 }
  0xb8   :  { %v3308_v23 = vpop.xlane.xlu1 %507  ;;  %v3310_v45 = vpop.xlane.xlu0 %504 }
  0xb9   :  { %4907 = vst [vmem:[#allocation15_spill] sm:$0xff] %v3308_v23 }
  0xba   :  { %v3312_v6 = vpop.xlane.xlu2 %510 }
  0xbb   :  { %4908 = vst [vmem:[#allocation16_spill] sm:$0xff] %v3312_v6 }
  0xbe   :  { %v3320_v22 = vpop.f32.mrf.mxu0 }
  0xc0   :  { %v3314_v16 = vpop.xlane.xlu1 %516  ;;  %v3316_v0 = vpop.xlane.xlu0 %513 }
  0xc1   :  { %4909 = vst [vmem:[#allocation17_spill] sm:$0xff] %v3314_v16 }
  0xc2   :  { %4910 = vst [vmem:[#allocation18_spill] sm:$0xff] %v3316_v0  ;;  %v3318_v62 = vpop.xlane.xlu2 %519 }
  0xc3   :  { %4911 = vst [vmem:[#allocation19_spill] sm:$0xff] %v3318_v62 }
  0xc4   :  { %v3326_v54 = vpop.f32.mrf.mxu2 }
  0xc5   :  { %v3367_v47 = vpop.f32.mrf.mxu1  ;;  %v841_v48 = vmul.f32 2.0, %v3326_v54 }
  0xc6   :  { %v3331_v26 = vpop.f32.mrf.mxu0 }
  0xc7   :  { %v834_v54 = vmul.f32 2.0, %v3331_v26 }
  0xc8   :  { %v3322_v50 = vpop.xlane.xlu1 %525  ;;  %v3324_v15 = vpop.xlane.xlu0 %522 }
  0xc9   :  { %4912 = vst [vmem:[#allocation20_spill] sm:$0xff] %v3322_v50 }
  0xca   :  { %4913 = vst [vmem:[#allocation21_spill] sm:$0xff] %v3324_v15  ;;  %v561_v10 = vpop.xlane.xlu2 %560 }
  0xcb   :  { %v689_v33 = vperm.slane %v561_v10, %v3329_v43 }
  0xcc   :  { %v3341_v1 = vpop.f32.mrf.mxu2 }
  0xce   :  { %v3350_v32 = vpop.f32.mrf.mxu0 }
  0xd0   :  { %v567_v25 = vpop.xlane.xlu1 %566  ;;  %v564_v36 = vpop.xlane.xlu0 %563 }
  0xd1   :  { %v691_v27 = vperm.slane %v564_v36, %v3334_v58  ;;  %v695_v14 = vperm.slane %v567_v25, %v3337_v56  ;;  %v3372_v25 = vpop.f32.mrf.mxu3 }
  0xd2   :  { %v570_v12 = vpop.xlane.xlu2 %569 }
  0xd3   :  { %v693_v37 = vsel %vm692_vm1, %v691_v27, %v689_v33  ;;  %v699_v51 = vperm.slane %v570_v12, %v3344_v35  ;;  %v3376_v12 = vadd.s32 4294967232, %v3329_v43 }
  0xd4   :  { %v697_v24 = vsel %vm696_vm2, %v695_v14, %v693_v37  ;;  %v3370_v10 = vpop.f32.mrf.mxu2 }
  0xd5   :  { %v701_v19 = vsel %vm700_vm3, %v699_v51, %v697_v24  ;;  %v3383_v51 = vadd.s32 4294967224, %v3329_v43 }
  0xd6   :  { %v3378_v14 = vpop.f32.mrf.mxu0 }
  0xd8   :  { %v576_v8 = vpop.xlane.xlu1 %575  ;;  %v573_v39 = vpop.xlane.xlu0 %572 }
  0xd9   :  { %v703_v11 = vperm.slane %v573_v39, %v3348_v28  ;;  %v707_v20 = vperm.slane %v576_v8, %v3355_v57 }
  0xda   :  { %v579_v60 = vpop.xlane.xlu2 %578 }
  0xdb   :  { %v705_v55 = vsel %vm704_vm4, %v703_v11, %v701_v19  ;;  %v711_v36 = vperm.slane %v579_v60, %v3360_v49  ;;  %v3389_v19 = vadd.s32 4294967216, %v3329_v43 }
  0xdc   :  { %v709_v37 = vsel %vm708_vm5, %v707_v20, %v705_v55  ;;  %v3393_v20 = vadd.s32 4294967208, %v3329_v43  ;;  %v3395_v55 = vpop.f32.mrf.mxu1 }
  0xdd   :  { %v713_v24 = vsel %vm712_vm6, %v711_v36, %v709_v37  ;;  %v3398_v37 = vpop.f32.mrf.mxu2 }
  0xde   :  { %v3406_v30 = vpop.f32.mrf.mxu0 }
  0xe0   :  { %v585_v33 = vpop.xlane.xlu1 %584  ;;  %v582_v27 = vpop.xlane.xlu0 %581 }
  0xe1   :  { %v715_v8 = vperm.slane %v582_v27, %v3365_v38  ;;  %v719_v11 = vperm.slane %v585_v33, %v3376_v12 }
  0xe2   :  { %v588_v39 = vpop.xlane.xlu2 %587 }
  0xe3   :  { %v717_v60 = vsel %vm716_vm7, %v715_v8, %v713_v24  ;;  %v723_v31 = vperm.slane %v588_v39, %v3383_v51  ;;  %v3401_v8 = vpop.f32.mrf.mxu3  ;;  %v3404_v24 = vadd.s32 4294967200, %v3329_v43 }
  0xe4   :  { %v721_v27 = vsel %vm720_vm8, %v719_v11, %v717_v60  ;;  %v3412_v60 = vadd.s32 4294967184, %v3329_v43  ;;  %v357_v50 = vpop.f32.mrf.mxu1 }
  0xe5   :  { %v725_v9 = vsel %vm724_vm9, %v723_v31, %v721_v27 }
  0xe6   :  { %v205_v13 = vpop.f32.mrf.mxu0 }
  0xe8   :  { %v594_v15 = vpop.xlane.xlu1 %593  ;;  %v591_v36 = vpop.xlane.xlu0 %590 }
  0xe9   :  { %v727_v33 = vperm.slane %v591_v36, %v3389_v19  ;;  %v731_v62 = vperm.slane %v594_v15, %v3393_v20  ;;  %v3415_v36 = vadd.s32 4294967192, %v3329_v43 }
  0xea   :  { %v597_v39 = vpop.xlane.xlu2 %596 }
  0xeb   :  { %v729_v11 = vsel %vm728_vm10, %v727_v33, %v725_v9  ;;  %v735_v16 = vperm.slane %v597_v39, %v3404_v24  ;;  %v226_v39 = vpop.f32.mrf.mxu2 }
  0xec   :  { %v733_v4 = vsel %vm732_vm11, %v731_v62, %v729_v11  ;;  %v381_v11 = vpop.f32.mrf.mxu3 }
  0xed   :  { %v737_v33 = vsel %vm736_vm12, %v735_v16, %v733_v4  ;;  %v842_v4 = vmul.f32 2.0, %v3341_v1 }
  0xf0   :  { %v603_v31 = vpop.xlane.xlu1 %602  ;;  %v600_v15 = vpop.xlane.xlu0 %599 }
  0xf1   :  { %v743_v9 = vperm.slane %v603_v31, %v3412_v60  ;;  %v739_v27 = vperm.slane %v600_v15, %v3415_v36  ;;  %v833_v15 = vmul.f32 2.0, %v3320_v22 }
  0xf2   :  { %v606_v59 = vpop.xlane.xlu2 %605 }
  0xf3   :  { %v741_v53 = vsel %vm740_vm13, %v739_v27, %v737_v33  ;;  %v747_v62 = vperm.slane %v606_v59, %v3420_v29  ;;  %v229_v6 = vpop.f32.mrf.mxu2 }
  0xf4   :  { %v745_v0 = vsel %vm744_vm14, %v743_v9, %v741_v53  ;;  %v384_v26 = vpop.f32.mrf.mxu3 }
  0xf5   :  { %v3430_v31 = vsel %vm748_vm15, %v747_v62, %v745_v0 }
  0xf6   :  { %v809_v16 = vadd.f32 %v3430_v31, %v3243_v18  ;;  %v801_v27 = vadd.f32 %v3430_v31, %v3197_v52  ;;  %v810_v59 = vadd.f32 %v3430_v31, %v3254_v41  ;;  %v802_v0 = vadd.f32 %v3430_v31, %v3220_v2  ;;  %v360_v18 = vpop.f32.mrf.mxu1 }
  0xf7   :  { %v835_v2 = vmul.f32 2.0, %v3350_v32  ;;  %v803_v32 = vadd.f32 %v3430_v31, %v3195_v34 }
  0xf8   :  { %v612_v53 = vpop.xlane.xlu1 %611  ;;  %v609_v9 = vpop.xlane.xlu0 %608  ;;  %v873_v33 = vsub.f32 %v809_v16, %v841_v48  ;;  %v865_v62 = vsub.f32 %v801_v27, %v833_v15  ;;  %v874_v1 = vsub.f32 %v810_v59, %v842_v4  ;;  %v866_v48 = vsub.f32 %v802_v0, %v834_v54 }
  0xf9   :  { %v751_v41 = vperm.slane %v612_v53, %v3334_v58  ;;  %v750_v23 = vperm.slane %v609_v9, %v3329_v43  ;;  %v3452_v16 = vmul.f32 2.0, %v3367_v47  ;;  %v3457_v15 = vmul.f32 2.0, %v3370_v10  ;;  %v3462_v27 = vpop.f32.mrf.mxu0 }
  0xfa   :  { %v615_v22 = vpop.xlane.xlu2 %614  ;;  %v3443_v21 = vmax.f32 %v873_v33, 1e-12  ;;  %v3445_v3 = vmax.f32 %v865_v62, 1e-12  ;;  %v3447_v52 = vmax.f32 %v874_v1, 1e-12  ;;  %v4914_v9 = vlaneseq }
  0xfb   :  { %v3460_v4 = vmul.f32 2.0, %v3372_v25  ;;  %v3466_v58 = vmul.f32 2.0, %v3395_v55  ;;  %v753_v47 = vperm.slane %v615_v22, %v3337_v56  ;;  %v752_v10 = vsel %vm692_vm1, %v751_v41, %v750_v23 }
  0xfc   :  { %2346 = vrsqrt.f32 %v3443_v21  ;;  %v3475_v54 = vshrl.u32 %v4914_v9, 7  ;;  %v3477_v33 = vmax.f32 %v866_v48, 1e-12  ;;  %v3480_v55 = vmul.f32 2.0, %v3378_v14  ;;  %v387_v9 = vpop.f32.mrf.mxu3 }
  0xfd   :  { %2348 = vrsqrt.f32 %v3445_v3  ;;  %v3483_v56 = vmul.f32 2.0, %v3398_v37  ;;  %v3486_v0 = vmul.f32 2.0, %v3401_v8  ;;  %v3488_v22 = vmul.f32 2.0, %v357_v50 }
  0xfe   :  { %2350 = vrsqrt.f32 %v3447_v52  ;;  %v3491_v23 = vmul.f32 2.0, %v3406_v30  ;;  %v3495_v62 = vmul.f32 2.0, %v381_v11  ;;  %v3497_v1 = vmul.f32 2.0, %v360_v18 }
  0xff   :  { %v754_v41 = vsel %vm696_vm2, %v753_v47, %v752_v10  ;;  %v3501_v48 = vmul.f32 2.0, %v384_v26  ;;  %v867_v8 = vsub.f32 %v803_v32, %v835_v2  ;;  %2352 = vrsqrt.f32 %v3477_v33  ;;  %v363_v47 = vpop.f32.mrf.mxu1  ;;  %v232_v32 = vpop.f32.mrf.mxu2 }
 0x100   :  { %v618_v59 = vpop.xlane.xlu0 %617  ;;  %v621_v53 = vpop.xlane.xlu1 %620  ;;  %4915 = vst [vmem:[#allocation22_spill] sm:$0xff] %v3491_v23  ;;  %v3511_v18 = vmul.f32 2.0, %v205_v13  ;;  %v811_v2 = vadd.f32 %v3430_v31, %v3252_v61  ;;  %vm1348_vm1 = vcmp.eq.s32.totalorder %v3475_v54, %v3329_v43  ;;  %vm1428_vm2 = vcmp.lt.s32.totalorder %v3329_v43, 8 }
 0x101   :  { %v755_v25 = vperm.slane %v618_v59, %v3344_v35  ;;  %v3493_v35 = vmul.f32 2.0, %v226_v39  ;;  %v757_v37 = vperm.slane %v621_v53, %v3348_v28  ;;  %4916 = vst [vmem:[#allocation23_spill] sm:$0xff] %v3501_v48  ;;  %v3506_v39 = vadd.s32 64, %v3475_v54 }
 0x102   :  { %v624_v34 = vpop.xlane.xlu2 %623  ;;  %v2347_v14 = vpop.eup %2346  ;;  %4917 = vst [vmem:[#allocation24_spill] sm:$0xff] %v3511_v18  ;;  %v3514_v26 = vmax.f32 %v867_v8, 1e-12  ;;  %v3518_v53 = vmul.f32 2.0, %v229_v6  ;;  %v3528_v6 = vmul.f32 2.0, %v387_v9 }
 0x103   :  { %v2349_v50 = vpop.eup %2348  ;;  %v756_v59 = vsel %vm700_vm3, %v755_v25, %v754_v41  ;;  %v1026_v30 = vmul.f32 %v2347_v14, %v3443_v21  ;;  %v759_v10 = vperm.slane %v624_v34, %v3355_v57  ;;  %v3521_v25 = vmul.f32 2.0, %v363_v47  ;;  %v211_v34 = vpop.f32.mrf.mxu0 }
 0x104   :  { %v3509_v11 = vpop.eup %2350  ;;  %v930_v28 = vmul.f32 %v2349_v50, %v3445_v3  ;;  %4918 = vst [vmem:[#allocation25_spill] sm:$0xff] %v3518_v53  ;;  %v758_v13 = vsel %vm704_vm4, %v757_v37, %v756_v59  ;;  %2354 = vrsqrt.f32 %v3514_v26  ;;  %vm1356_vm0 = vcmp.eq.s32.totalorder %v3506_v39, %v3329_v43 }
 0x105   :  { %v1027_v41 = vmul.f32 %v2347_v14, %v1026_v30  ;;  %v1038_v8 = vmul.f32 %v3509_v11, %v3447_v52  ;;  %4919 = vst [vmem:[#allocation26_spill] sm:$0xff] %v3528_v6  ;;  %v3532_v57 = vmul.f32 2.0, %v232_v32  ;;  %v875_v30 = vsub.f32 %v811_v2, %v3457_v15  ;;  %v3537_v47 = vpop.eup %2352 }
 0x106   :  { %v931_v48 = vmul.f32 %v2349_v50, %v930_v28  ;;  %v3551_v15 = vadd.f32 %v3430_v31, %v3237_v17  ;;  %v3553_v2 = vmul.f32 2.0, %v211_v34  ;;  %vm1032_vm3 = vcmp.eq.f32.partialorder %v3443_v21, inf }
 0x107   :  { %v1028_v53 = vmul.f32 0.5, %v1027_v41  ;;  %v3547_v41 = vmax.f32 %v875_v30, 1e-12  ;;  %vm1034_vm4 = vcmp.eq.f32.partialorder %v3443_v21, 0.0  ;;  %v1035_v34 = vand.u32 2147483648, %v3443_v21 }
 0x108   :  { %v627_v18 = vpop.xlane.xlu0 %626  ;;  %v630_v23 = vpop.xlane.xlu1 %629  ;;  %v932_v59 = vmul.f32 0.5, %v931_v48  ;;  %v1039_v48 = vmul.f32 %v3509_v11, %v1038_v8 }
 0x109   :  { %v761_v61 = vperm.slane %v627_v18, %v3360_v49  ;;  %v3541_v49 = vadd.f32 %v3430_v31, %v3273_v46  ;;  %v760_v18 = vsel %vm708_vm5, %v759_v10, %v758_v13  ;;  %v1029_v28 = vsub.f32 1.5, %v1028_v53 }
 0x10a   :  { %v633_v37 = vpop.xlane.xlu2 %632  ;;  %v763_v32 = vperm.slane %v630_v23, %v3365_v38  ;;  %v933_v9 = vsub.f32 1.5, %v932_v59  ;;  %v3556_v10 = vpop.eup %2354  ;;  %v942_v23 = vmul.f32 %v3537_v47, %v3477_v33  ;;  %2356 = vrsqrt.f32 %v3547_v41 }
 0x10b   :  { %v762_v46 = vsel %vm712_vm6, %v761_v61, %v760_v18  ;;  %v1030_v6 = vmul.f32 %v2347_v14, %v1029_v28  ;;  %v765_v53 = vperm.slane %v633_v37, %v3376_v12  ;;  %v954_v13 = vmul.f32 %v3556_v10, %v3514_v26 }
 0x10c   :  { %v934_v38 = vmul.f32 %v2349_v50, %v933_v9  ;;  %v764_v14 = vsel %vm716_vm7, %v763_v32, %v762_v46  ;;  %v1040_v59 = vmul.f32 0.5, %v1039_v48  ;;  %vm936_vm5 = vcmp.eq.f32.partialorder %v3445_v3, inf  ;;  %v366_v48 = vpop.f32.mrf.mxu1 }
 0x10d   :  { %v1031_v17 = vmul.f32 %v1030_v6, %v3443_v21  ;;  %v939_v6 = vand.u32 2147483648, %v3445_v3  ;;  %vm938_vm6 = vcmp.eq.f32.partialorder %v3445_v3, 0.0  ;;  %v955_v32 = vmul.f32 %v3556_v10, %v954_v13 }
 0x10e   :  { %v935_v50 = vmul.f32 %v934_v38, %v3445_v3  ;;  %v766_v9 = vsel %vm720_vm8, %v765_v53, %v764_v14  ;;  %v943_v38 = vmul.f32 %v3537_v47, %v942_v23  ;;  %v879_v53 = vsub.f32 %v3541_v49, %v3532_v57 }
 0x10f   :  { %v1033_v12 = vsel %vm1032_vm3, %v3443_v21, %v1031_v17  ;;  %v235_v17 = vpop.f32.mrf.mxu2  ;;  %v812_v23 = vadd.f32 %v3430_v31, %v3258_v63  ;;  %v816_v57 = vadd.f32 %v3430_v31, %v3284_v44  ;;  %vm1044_vm8 = vcmp.eq.f32.partialorder %v3447_v52, inf }
 0x110   :  { %v636_v8 = vpop.xlane.xlu0 %635  ;;  %v639_v61 = vpop.xlane.xlu1 %638  ;;  %v1036_v18 = vsel %vm1034_vm4, %v1035_v34, %v1033_v12  ;;  %v937_v28 = vsel %vm936_vm5, %v3445_v3, %v935_v50  ;;  %v1041_v34 = vsub.f32 1.5, %v1040_v59  ;;  %v3596_v12 = vmul.f32 2.0, %v3462_v27 }
 0x111   :  { %v767_v30 = vperm.slane %v636_v8, %v3383_v51  ;;  %v1372_v51 = vsel %vm1356_vm0, 0.0, %v1036_v18  ;;  %v940_v46 = vsel %vm938_vm6, %v939_v6, %v937_v28  ;;  %v769_v21 = vperm.slane %v639_v61, %v3389_v19  ;;  %v3588_v13 = vpop.eup %2356 }
 0x112   :  { %v642_v37 = vpop.xlane.xlu2 %641  ;;  %v1404_v8 = vmul.f32 -1.0, %v1372_v51  ;;  %v1364_v3 = vsel %vm1348_vm1, 0.0, %v940_v46  ;;  %4920 = vst [vmem:[#allocation27_spill] sm:$0xff] %v3596_v12  ;;  %v872_v19 = vsub.f32 %v3551_v15, %v3553_v2  ;;  %v956_v59 = vmul.f32 0.5, %v955_v32 }
 0x113   :  { %v768_v14 = vsel %vm724_vm9, %v767_v30, %v766_v9  ;;  %v1396_v50 = vmul.f32 -1.0, %v1364_v3  ;;  %v848_v49 = vmul.f32 2.0, %v235_v17  ;;  %v771_v30 = vperm.slane %v642_v37, %v3393_v20  ;;  %v390_v20 = vpop.f32.mrf.mxu3 }
 0x114   :  { %v3602_v61 = vsel %vm1428_vm2, %v1404_v8, -1e+30  ;;  %v770_v27 = vsel %vm728_vm10, %v769_v21, %v768_v14  ;;  %v1042_v6 = vmul.f32 %v3509_v11, %v1041_v34  ;;  %v944_v18 = vmul.f32 0.5, %v943_v38  ;;  %v369_v14 = vpop.f32.mrf.mxu1 }
 0x115   :  { %4921 = vst [vmem:[#allocation28_spill] sm:$0xff] %v3602_v61  ;;  %1477 = vmax.xlane.f32.xlu0 %v3602_v61  ;;  %v3610_v63 = vsel %vm1428_vm2, %v1396_v50, -1e+30  ;;  %v1050_v44 = vmul.f32 %v3588_v13, %v3547_v41  ;;  %v3617_v28 = vmax.f32 %v879_v53, 1e-12  ;;  %v957_v32 = vsub.f32 1.5, %v956_v59 }
 0x116   :  { %4922 = vst [vmem:[#allocation29_spill] sm:$0xff] %v3610_v63  ;;  %1461 = vmax.xlane.f32.xlu1 %v3610_v63  ;;  %v876_v9 = vsub.f32 %v812_v23, %v3483_v56  ;;  %v3621_v51 = vmax.f32 %v872_v19, 1e-12  ;;  %v3623_v46 = vmul.f32 2.0, %v366_v48  ;;  %v3626_v17 = vadd.s32 8, %v3475_v54 }
 0x117   :  { %v3629_v11 = vadd.s32 72, %v3475_v54  ;;  %v880_v38 = vsub.f32 %v816_v57, %v848_v49  ;;  %v772_v21 = vsel %vm732_vm11, %v771_v30, %v770_v27  ;;  %v3632_v8 = vmul.f32 2.0, %v390_v20 }
 0x118   :  { %v645_v15 = vpop.xlane.xlu0 %644  ;;  %v648_v2 = vpop.xlane.xlu1 %647  ;;  %4923 = vst [vmem:[#allocation30_spill] sm:$0xff] %v3621_v51  ;;  %v1043_v34 = vmul.f32 %v1042_v6, %v3447_v52  ;;  %v945_v48 = vsub.f32 1.5, %v944_v18  ;;  %v1051_v53 = vmul.f32 %v3588_v13, %v1050_v44  ;;  %2358 = vrsqrt.f32 %v3617_v28 }
 0x119   :  { %v773_v37 = vperm.slane %v645_v15, %v3404_v24  ;;  %v775_v24 = vperm.slane %v648_v2, %v3415_v36  ;;  %v958_v50 = vmul.f32 %v3556_v10, %v957_v32  ;;  %v3640_v23 = vmax.f32 %v876_v9, 1e-12 }
 0x11a   :  { %v651_v3 = vpop.xlane.xlu2 %650  ;;  %v804_v19 = vadd.f32 %v3430_v31, %v3218_v40  ;;  %2360 = vrsqrt.f32 %v3621_v51  ;;  %v3646_v59 = vmul.f32 2.0, %v369_v14  ;;  %vm4888_vm7 = vcmp.eq.s32.totalorder %v3629_v11, %v3329_v43  ;;  %v4929_v14 = vld [vmem:[#allocation16_spill] sm:$0xff] }
 0x11b   :  { %v774_v56 = vsel %vm736_vm12, %v773_v37, %v772_v21  ;;  %v777_v36 = vperm.slane %v651_v3, %v3412_v60  ;;  %v3650_v57 = vmax.f32 %v880_v38, 1e-12  ;;  %v1045_v40 = vsel %vm1044_vm8, %v3447_v52, %v1043_v34 }
 0x11c   :  { %4924 = vst [vmem:[#allocation31_spill] sm:$0xff] %v3646_v59  ;;  %v776_v49 = vsel %vm740_vm13, %v775_v24, %v774_v56  ;;  %v868_v10 = vsub.f32 %v804_v19, %v3480_v55  ;;  %v1047_v27 = vand.u32 2147483648, %v3447_v52  ;;  %v946_v60 = vmul.f32 %v3537_v47, %v945_v48  ;;  %v3669_v47 = vpop.f32.mrf.mxu3 }
 0x11d   :  { %4925 = vst [vmem:[#allocation32_spill] sm:$0xff] %v3650_v57  ;;  %v1052_v15 = vmul.f32 0.5, %v1051_v53  ;;  %v959_v6 = vmul.f32 %v958_v50, %v3514_v26  ;;  %2362 = vrsqrt.f32 %v3640_v23  ;;  %v778_v44 = vsel %vm744_vm14, %v777_v36, %v776_v49  ;;  %v4928_v53 = vld [vmem:[#allocation15_spill] sm:$0xff] }
 0x11e   :  { %v3661_v18 = vmax.f32 %v868_v10, 1e-12  ;;  %vm1046_vm9 = vcmp.eq.f32.partialorder %v3447_v52, 0.0  ;;  %vm948_vm10 = vcmp.eq.f32.partialorder %v3477_v33, inf  ;;  %v951_v55 = vand.u32 2147483648, %v3477_v33  ;;  %v3667_v20 = vpop.eup %2358  ;;  %4926 = vst [vmem:[#allocation33_spill] sm:$0xff] %v3669_v47 }
 0x11f   :  { %v1048_v37 = vsel %vm1046_vm9, %v1047_v27, %v1045_v40  ;;  %vm960_vm11 = vcmp.eq.f32.partialorder %v3514_v26, inf  ;;  %v3676_v32 = vadd.s32 16, %v3475_v54  ;;  %vm1349_vm12 = vcmp.eq.s32.totalorder %v3626_v17, %v3329_v43  ;;  %v4930_v27 = vld [vmem:[#allocation12_spill] sm:$0xff] }
 0x120   :  { %v654_v30 = vpop.xlane.xlu0 %653  ;;  %v3678_v9 = vpop.eup %2360  ;;  %v947_v21 = vmul.f32 %v946_v60, %v3477_v33  ;;  %v1053_v24 = vsub.f32 1.5, %v1052_v15  ;;  %v961_v56 = vsel %vm960_vm11, %v3514_v26, %v959_v6  ;;  %2364 = vrsqrt.f32 %v3661_v18 }
 0x121   :  { %v779_v2 = vperm.slane %v654_v30, %v3420_v29  ;;  %4927 = vst [vmem:[#allocation34_spill] sm:$0xff] %v3678_v9  ;;  %v963_v36 = vand.u32 2147483648, %v3514_v26  ;;  %vm4889_vm13 = vcmp.eq.s32.totalorder %v3676_v32, %v3329_v43  ;;  %vm962_vm14 = vcmp.eq.f32.partialorder %v3514_v26, 0.0 }
 0x122   :  { %v949_v49 = vsel %vm948_vm10, %v3477_v33, %v947_v21  ;;  %v1054_v40 = vmul.f32 %v3588_v13, %v1053_v24  ;;  %2366 = vrsqrt.f32 %v3650_v57  ;;  %v3733_v13 = vadd.s32 80, %v3475_v54 }
 0x123   :  { %v3672_v29 = vsel %vm748_vm15, %v779_v2, %v778_v44  ;;  %v3699_v19 = vpop.eup %2362  ;;  %v964_v30 = vsel %vm962_vm14, %v963_v36, %v961_v56  ;;  %vm950_vm15 = vcmp.eq.f32.partialorder %v3477_v33, 0.0  ;;  %vm1056_vm3 = vcmp.eq.f32.partialorder %v3547_v41, inf }
 0x124   :  { %v818_v52 = vadd.f32 %v3672_v29, %v3288_v5  ;;  %v817_v38 = vadd.f32 %v3672_v29, %v3282_v7  ;;  %v825_v3 = vadd.f32 %v3672_v29, %v3310_v45  ;;  %v819_v34 = vadd.f32 %v3672_v29, %v3297_v42 }
 0x125   :  { %v826_v7 = vadd.f32 %v3672_v29, %v4928_v53  ;;  %v827_v50 = vadd.f32 %v3672_v29, %v4929_v14  ;;  %v1062_v6 = vmul.f32 %v3699_v19, %v3640_v23  ;;  %v1055_v33 = vmul.f32 %v1054_v40, %v3547_v41 }
 0x126   :  { %v882_v5 = vsub.f32 %v818_v52, %v3466_v58  ;;  %v881_v48 = vsub.f32 %v817_v38, %v3452_v16  ;;  %v889_v45 = vsub.f32 %v825_v3, %v3460_v4  ;;  %v883_v42 = vsub.f32 %v819_v34, %v3488_v22  ;;  %v372_v4 = vpop.f32.mrf.mxu1  ;;  %v3726_v44 = vpop.eup %2364 }
 0x127   :  { %v1373_v16 = vsel %vm4888_vm7, 0.0, %v1048_v37  ;;  %v813_v22 = vadd.f32 %v3430_v31, %v4930_v27  ;;  %v890_v15 = vsub.f32 %v826_v7, %v3486_v0  ;;  %v891_v2 = vsub.f32 %v827_v50, %v3495_v62  ;;  %v396_v52 = vpop.f32.mrf.mxu3 }
 0x128   :  { %v3706_v58 = vmax.f32 %v882_v5, 1e-12  ;;  %v3715_v10 = vmax.f32 %v881_v48, 1e-12  ;;  %v3720_v60 = vmax.f32 %v889_v45, 1e-12  ;;  %v952_v0 = vsel %vm950_vm15, %v951_v55, %v949_v49 }
 0x129   :  { %v3730_v26 = vmax.f32 %v883_v42, 1e-12  ;;  %v3735_v37 = vmul.f32 2.0, %v372_v4  ;;  %v1366_v62 = vsel %vm4889_vm13, 0.0, %v964_v30  ;;  %v1405_v38 = vmul.f32 -1.0, %v1373_v16 }
 0x12a   :  { %2368 = vrsqrt.f32 %v3706_v58  ;;  %v877_v21 = vsub.f32 %v813_v22, %v3493_v35  ;;  %v3745_v24 = vmax.f32 %v890_v15, 1e-12  ;;  %v3747_v3 = vmax.f32 %v891_v2, 1e-12  ;;  %v3761_v35 = vpop.eup %2366  ;;  %v4932_v15 = vld [vmem:[#allocation14_spill] sm:$0xff] }
 0x12b   :  { %2370 = vrsqrt.f32 %v3715_v10  ;;  %v1063_v55 = vmul.f32 %v3699_v19, %v1062_v6  ;;  %v1365_v56 = vsel %vm1349_vm12, 0.0, %v952_v0  ;;  %v1398_v34 = vmul.f32 -1.0, %v1366_v62  ;;  %4931 = vst [vmem:[#allocation15_spill] sm:$0xff] %v3761_v35 }
 0x12c   :  { %2372 = vrsqrt.f32 %v3720_v60  ;;  %v966_v5 = vmul.f32 %v3726_v44, %v3661_v18  ;;  %v3756_v48 = vmul.f32 2.0, %v396_v52  ;;  %vm1058_vm4 = vcmp.eq.f32.partialorder %v3547_v41, 0.0 }
 0x12d   :  { %2374 = vrsqrt.f32 %v3730_v26  ;;  %vm4890_vm5 = vcmp.eq.s32.totalorder %v3733_v13, %v3329_v43  ;;  %v1057_v53 = vsel %vm1056_vm3, %v3547_v41, %v1055_v33  ;;  %v1059_v7 = vand.u32 2147483648, %v3547_v41 }
 0x12e   :  { %2376 = vrsqrt.f32 %v3745_v24  ;;  %v3768_v14 = vmax.f32 %v877_v21, 1e-12  ;;  %v3772_v45 = vsel %vm1428_vm2, %v1405_v38, -1e+30  ;;  %v3774_v36 = vmul.f32 -1.0, %v1365_v56 }
 0x12f   :  { %2378 = vrsqrt.f32 %v3747_v3  ;;  %v1064_v42 = vmul.f32 0.5, %v1063_v55  ;;  %v967_v16 = vmul.f32 %v3726_v44, %v966_v5  ;;  %v3780_v30 = vsel %vm1428_vm2, %v1398_v34, -1e+30 }
 0x130   :  { %v2369_v50 = vpop.eup %2368  ;;  %v3784_v27 = vadd.s32 88, %v3475_v54  ;;  %v3788_v2 = vadd.f32 %v3672_v29, %v4932_v15  ;;  %v1060_v0 = vsel %vm1058_vm4, %v1059_v7, %v1057_v53  ;;  %v1143_v33 = vand.u32 2147483648, %v3706_v58 }
 0x131   :  { %v2371_v49 = vpop.eup %2370  ;;  %v1134_v4 = vmul.f32 %v2369_v50, %v3706_v58  ;;  %v968_v62 = vmul.f32 0.5, %v967_v16  ;;  %2380 = vrsqrt.f32 %v3768_v14  ;;  %vm1140_vm6 = vcmp.eq.f32.partialorder %v3706_v58, inf }
 0x132   :  { %v2373_v22 = vpop.eup %2372  ;;  %v1122_v6 = vmul.f32 %v2371_v49, %v3715_v10  ;;  %v1131_v34 = vand.u32 2147483648, %v3715_v10  ;;  %v1065_v15 = vsub.f32 1.5, %v1064_v42  ;;  %vm1142_vm8 = vcmp.eq.f32.partialorder %v3706_v58, 0.0 }
 0x133   :  { %v2375_v52 = vpop.eup %2374  ;;  %v1135_v38 = vmul.f32 %v2369_v50, %v1134_v4  ;;  %v1218_v21 = vmul.f32 %v2373_v22, %v3720_v60  ;;  %vm1128_vm9 = vcmp.eq.f32.partialorder %v3715_v10, inf  ;;  %v969_v4 = vsub.f32 1.5, %v968_v62 }
 0x134   :  { %v2377_v55 = vpop.eup %2376  ;;  %v1123_v56 = vmul.f32 %v2371_v49, %v1122_v6  ;;  %v1146_v5 = vmul.f32 %v2375_v52, %v3730_v26  ;;  %vm1130_vm10 = vcmp.eq.f32.partialorder %v3715_v10, 0.0  ;;  %vm1224_vm11 = vcmp.eq.f32.partialorder %v3720_v60, inf }
 0x135   :  { %v2379_v41 = vpop.eup %2378  ;;  %v1136_v53 = vmul.f32 0.5, %v1135_v38  ;;  %v1219_v7 = vmul.f32 %v2373_v22, %v1218_v21  ;;  %v1230_v16 = vmul.f32 %v2377_v55, %v3745_v24  ;;  %v1227_v6 = vand.u32 2147483648, %v3720_v60 }
 0x136   :  { %v1124_v40 = vmul.f32 0.5, %v1123_v56  ;;  %v1147_v61 = vmul.f32 %v2375_v52, %v1146_v5  ;;  %v1242_v42 = vmul.f32 %v2379_v41, %v3747_v3  ;;  %vm1226_vm14 = vcmp.eq.f32.partialorder %v3720_v60, 0.0 }
 0x137   :  { %v1137_v63 = vsub.f32 1.5, %v1136_v53  ;;  %v1220_v38 = vmul.f32 0.5, %v1219_v7  ;;  %v1231_v21 = vmul.f32 %v2377_v55, %v1230_v16  ;;  %v1066_v56 = vmul.f32 %v3699_v19, %v1065_v15  ;;  %v3809_v57 = vpop.eup %2380  ;;  %v4933_v15 = vld [vmem:[#allocation7_spill] sm:$0xff] }
 0x138   :  { %v1125_v51 = vsub.f32 1.5, %v1124_v40  ;;  %v1148_v35 = vmul.f32 0.5, %v1147_v61  ;;  %v1243_v62 = vmul.f32 %v2379_v41, %v1242_v42  ;;  %vm1068_vm15 = vcmp.eq.f32.partialorder %v3640_v23, inf }
 0x139   :  { %v1138_v47 = vmul.f32 %v2369_v50, %v1137_v63  ;;  %v1221_v59 = vsub.f32 1.5, %v1220_v38  ;;  %v1232_v12 = vmul.f32 0.5, %v1231_v21  ;;  %v970_v5 = vmul.f32 %v3726_v44, %v969_v4 }
 0x13a   :  { %v1126_v53 = vmul.f32 %v2371_v49, %v1125_v51  ;;  %v1149_v7 = vsub.f32 1.5, %v1148_v35  ;;  %vm1152_vm3 = vcmp.eq.f32.partialorder %v3730_v26, inf  ;;  %v1244_v9 = vmul.f32 0.5, %v1243_v62 }
 0x13b   :  { %v3817_v61 = vsel %vm4890_vm5, 0.0, %v1060_v0  ;;  %v1139_v19 = vmul.f32 %v1138_v47, %v3706_v58  ;;  %v1222_v40 = vmul.f32 %v2373_v22, %v1221_v59  ;;  %v1233_v63 = vsub.f32 1.5, %v1232_v12 }
 0x13c   :  { %v1239_v50 = vand.u32 2147483648, %v3745_v24  ;;  %v1127_v44 = vmul.f32 %v1126_v53, %v3715_v10  ;;  %v1150_v51 = vmul.f32 %v2375_v52, %v1149_v7  ;;  %v1245_v35 = vsub.f32 1.5, %v1244_v9 }
 0x13d   :  { %vm1248_vm7 = vcmp.eq.f32.partialorder %v3747_v3, inf  ;;  %v1067_v49 = vmul.f32 %v1066_v56, %v3640_v23  ;;  %vm1070_vm13 = vcmp.eq.f32.partialorder %v3640_v23, 0.0  ;;  %v1141_v47 = vsel %vm1140_vm6, %v3706_v58, %v1139_v19 }
 0x13e   :  { %v1223_v12 = vmul.f32 %v1222_v40, %v3720_v60  ;;  %vm1154_vm5 = vcmp.eq.f32.partialorder %v3730_v26, 0.0  ;;  %v1234_v59 = vmul.f32 %v2377_v55, %v1233_v63  ;;  %vm1359_vm4 = vcmp.eq.s32.totalorder %v3784_v27, %v3329_v43 }
 0x13f   :  { %v971_v9 = vmul.f32 %v970_v5, %v3661_v18  ;;  %v1144_v22 = vsel %vm1142_vm8, %v1143_v33, %v1141_v47  ;;  %v1129_v0 = vsel %vm1128_vm9, %v3715_v10, %v1127_v44  ;;  %v1151_v52 = vmul.f32 %v1150_v51, %v3730_v26  ;;  %v4936_v47 = vld [vmem:[#allocation6_spill] sm:$0xff] }
 0x140   :  { %vm1238_vm6 = vcmp.eq.f32.partialorder %v3745_v24, 0.0  ;;  %v820_v16 = vadd.f32 %v3672_v29, %v4933_v15  ;;  %v1381_v55 = vsel %vm1349_vm12, 0.0, %v1144_v22  ;;  %v1132_v4 = vsel %vm1130_vm10, %v1131_v34, %v1129_v0  ;;  %v4938_v15 = vld [vmem:[#allocation18_spill] sm:$0xff] }
 0x141   :  { %v1225_v58 = vsel %vm1224_vm11, %v3720_v60, %v1223_v12  ;;  %v1246_v33 = vmul.f32 %v2379_v41, %v1245_v35  ;;  %vm1250_vm8 = vcmp.eq.f32.partialorder %v3747_v3, 0.0  ;;  %v1413_v42 = vmul.f32 -1.0, %v1381_v55  ;;  %v4939_v55 = vld [vmem:[#allocation8_spill] sm:$0xff] }
 0x142   :  { %v1380_v38 = vsel %vm1348_vm1, 0.0, %v1132_v4  ;;  %v1228_v21 = vsel %vm1226_vm14, %v1227_v6, %v1225_v58  ;;  %v1235_v17 = vmul.f32 %v1234_v59, %v3745_v24  ;;  %v1251_v34 = vand.u32 2147483648, %v3747_v3 }
 0x143   :  { %v1412_v62 = vmul.f32 -1.0, %v1380_v38  ;;  %v1388_v10 = vsel %vm1356_vm0, 0.0, %v1228_v21  ;;  %vm972_vm12 = vcmp.eq.f32.partialorder %v3661_v18, inf  ;;  %v3865_v41 = vsel %vm1428_vm2, %v1413_v42, -1e+30 }
 0x144   :  { %v1420_v56 = vmul.f32 -1.0, %v1388_v10  ;;  %v1069_v60 = vsel %vm1068_vm15, %v3640_v23, %v1067_v49  ;;  %v3871_v6 = vadd.s32 24, %v3475_v54  ;;  %1495 = vmax.xlane.f32.xlu0 %v3865_v41  ;;  %v1153_v5 = vsel %vm1152_vm3, %v3730_v26, %v1151_v52 }
 0x145   :  { %v3876_v39 = vsel %vm1428_vm2, %v1412_v62, -1e+30  ;;  %v1247_v53 = vmul.f32 %v1246_v33, %v3747_v3  ;;  %v975_v7 = vand.u32 2147483648, %v3661_v18  ;;  %vm4934_vm0 = vcmp.eq.f32.partialorder %v3745_v24, inf  ;;  %v4944_v62 = vld [vmem:[#allocation22_spill] sm:$0xff] }
 0x146   :  { %1493 = vmax.xlane.f32.xlu2 %v3876_v39  ;;  %v3886_v19 = vsel %vm1428_vm2, %v1420_v56, -1e+30  ;;  %v1237_v40 = vsel %vm4934_vm0, %v3745_v24, %v1235_v17  ;;  %v973_v63 = vsel %vm972_vm12, %v3661_v18, %v971_v9  ;;  %v884_v44 = vsub.f32 %v820_v16, %v3497_v1 }
 0x147   :  { %1509 = vmax.xlane.f32.xlu1 %v3886_v19  ;;  %v1249_v51 = vsel %vm1248_vm7, %v3747_v3, %v1247_v53  ;;  %v4935_v35 = vand.u32 2147483648, %v3640_v23  ;;  %v821_v12 = vadd.f32 %v3672_v29, %v4936_v47  ;;  %v1074_v59 = vmul.f32 %v3809_v57, %v3768_v14 }
 0x148   :  { %v4937_v9 = vand.u32 2147483648, %v3730_v26  ;;  %vm974_vm1 = vcmp.eq.f32.partialorder %v3661_v18, 0.0  ;;  %vm1351_vm7 = vcmp.eq.s32.totalorder %v3871_v6, %v3329_v43  ;;  %v3912_v22 = vmax.f32 %v884_v44, 1e-12 }
 0x149   :  { %v1072_v49 = vsel %vm1070_vm13, %v4935_v35, %v1069_v60  ;;  %v1240_v23 = vsel %vm1238_vm6, %v1239_v50, %v1237_v40  ;;  %v976_v0 = vsel %vm974_vm1, %v975_v7, %v973_v63  ;;  %v885_v52 = vsub.f32 %v821_v12, %v3521_v25  ;;  %v4941_v50 = vld [vmem:[#allocation23_spill] sm:$0xff]  ;;  %v4946_v60 = vld [vmem:[#allocation9_spill] sm:$0xff] }
 0x14a   :  { %v1156_v1 = vsel %vm1154_vm5, %v4937_v9, %v1153_v5  ;;  %v828_v16 = vadd.f32 %v3672_v29, %v4938_v15  ;;  %v1252_v26 = vsel %vm1250_vm8, %v1251_v34, %v1249_v51  ;;  %v1375_v18 = vsel %vm1359_vm4, 0.0, %v1072_v49  ;;  %v4945_v34 = vld [vmem:[#allocation20_spill] sm:$0xff] }
 0x14b   :  { %2382 = vrsqrt.f32 %v3912_v22  ;;  %v805_v4 = vadd.f32 %v3430_v31, %v4939_v55  ;;  %vm4940_vm13 = vcmp.eq.s32.totalorder %v3676_v32, %v3329_v43  ;;  %v3930_v25 = vmax.f32 %v885_v52, 1e-12 }
 0x14c   :  { %v1382_v24 = vsel %vm4940_vm13, 0.0, %v1156_v1  ;;  %v892_v58 = vsub.f32 %v828_v16, %v4941_v50  ;;  %v1075_v3 = vmul.f32 %v3809_v57, %v1074_v59  ;;  %v888_v33 = vsub.f32 %v3788_v2, %v3735_v37  ;;  %1465 = vmax.xlane.f32.xlu0 %v3780_v30  ;;  %v4947_v59 = vld [vmem:[#allocation24_spill] sm:$0xff]  ;;  %v4948_v1 = vld [vmem:[#allocation13_spill] sm:$0xff] }
 0x14d   :  { %vm4942_vm5 = vcmp.eq.s32.totalorder %v3629_v11, %v3329_v43  ;;  %v1406_v38 = vmul.f32 -1.0, %v3817_v61  ;;  %v1367_v32 = vsel %vm1351_vm7, 0.0, %v976_v0  ;;  %v3946_v21 = vsel %vm1428_vm2, %v3774_v36, -1e+30 }
 0x14e   :  { %v1389_v42 = vsel %vm4942_vm5, 0.0, %v1240_v23  ;;  %vm4943_vm9 = vcmp.eq.s32.totalorder %v3733_v13, %v3329_v43  ;;  %v1407_v2 = vmul.f32 -1.0, %v1375_v18  ;;  %2384 = vrsqrt.f32 %v3930_v25  ;;  %1463 = vmax.xlane.f32.xlu2 %v3946_v21 }
 0x14f   :  { %v1390_v37 = vsel %vm4943_vm9, 0.0, %v1252_v26  ;;  %v1414_v11 = vmul.f32 -1.0, %v1382_v24  ;;  %v3954_v61 = vmax.f32 %v892_v58, 1e-12  ;;  %v1076_v17 = vmul.f32 0.5, %v1075_v3  ;;  %1479 = vmax.xlane.f32.xlu1 %v3772_v45 }
 0x150   :  { %v869_v10 = vsub.f32 %v805_v4, %v4944_v62  ;;  %v3959_v36 = vadd.f32 %v3672_v29, %v4945_v34  ;;  %v1421_v56 = vmul.f32 -1.0, %v1389_v42  ;;  %v1399_v13 = vmul.f32 -1.0, %v1367_v32 }
 0x151   :  { %v806_v5 = vadd.f32 %v3430_v31, %v4946_v60  ;;  %v2383_v53 = vpop.eup %2382  ;;  %v3964_v7 = vmax.f32 %v888_v33, 1e-12  ;;  %v1422_v40 = vmul.f32 -1.0, %v1390_v37  ;;  %v3968_v63 = vsel %vm1428_vm2, %v1406_v38, -1e+30  ;;  %v4950_v60 = vld [vmem:[#allocation17_spill] sm:$0xff] }
 0x152   :  { %2386 = vrsqrt.f32 %v3954_v61  ;;  %v1158_v44 = vmul.f32 %v2383_v53, %v3912_v22  ;;  %v3973_v51 = vadd.s32 32, %v3475_v54  ;;  %v1077_v35 = vsub.f32 1.5, %v1076_v17  ;;  %v4949_v17 = vld [vmem:[#allocation11_spill] sm:$0xff] }
 0x153   :  { %v3975_v49 = vmax.f32 %v869_v10, 1e-12  ;;  %v3979_v47 = vsel %vm1428_vm2, %v1414_v11, -1e+30  ;;  %v3983_v12 = vsel %vm1428_vm2, %v1407_v2, -1e+30  ;;  %v870_v9 = vsub.f32 %v806_v5, %v4947_v59 }
 0x154   :  { %v822_v23 = vadd.f32 %v3672_v29, %v4948_v1  ;;  %v2385_v0 = vpop.eup %2384  ;;  %v3990_v52 = vsel %vm1428_vm2, %v1421_v56, -1e+30  ;;  %v3994_v15 = vsel %vm1428_vm2, %v1399_v13, -1e+30  ;;  %v1159_v16 = vmul.f32 %v2383_v53, %v1158_v44 }
 0x155   :  { %2388 = vrsqrt.f32 %v3975_v49  ;;  %v3999_v26 = vsel %vm1428_vm2, %v1422_v40, -1e+30  ;;  %vm1164_vm10 = vcmp.eq.f32.partialorder %v3912_v22, inf  ;;  %v1170_v18 = vmul.f32 %v2385_v0, %v3930_v25 }
 0x156   :  { %v1078_v55 = vmul.f32 %v3809_v57, %v1077_v35  ;;  %v4004_v4 = vmax.f32 %v870_v9, 1e-12  ;;  %1513 = vmax.xlane.f32.xlu0 %v3999_v26  ;;  %v1160_v24 = vmul.f32 0.5, %v1159_v16  ;;  %vm1166_vm11 = vcmp.eq.f32.partialorder %v3912_v22, 0.0  ;;  %1511 = vmax.xlane.f32.xlu2 %v3990_v52 }
 0x157   :  { %v1167_v50 = vand.u32 2147483648, %v3912_v22  ;;  %v886_v58 = vsub.f32 %v822_v23, %v3623_v46  ;;  %v1171_v33 = vmul.f32 %v2385_v0, %v1170_v18  ;;  %vm1080_vm14 = vcmp.eq.f32.partialorder %v3768_v14, inf  ;;  %1497 = vmax.xlane.f32.xlu1 %v3979_v47 }
 0x158   :  { %v2387_v3 = vpop.eup %2386  ;;  %v1083_v42 = vand.u32 2147483648, %v3768_v14  ;;  %2390 = vrsqrt.f32 %v4004_v4  ;;  %v1161_v57 = vsub.f32 1.5, %v1160_v24  ;;  %vm1176_vm15 = vcmp.eq.f32.partialorder %v3930_v25, inf }
 0x159   :  { %v1179_v38 = vand.u32 2147483648, %v3930_v25  ;;  %v1254_v32 = vmul.f32 %v2387_v3, %v3954_v61  ;;  %v4019_v46 = vadd.s32 96, %v3475_v54  ;;  %v1172_v37 = vmul.f32 0.5, %v1171_v33 }
 0x15a   :  { %vm1178_vm3 = vcmp.eq.f32.partialorder %v3930_v25, 0.0  ;;  %v1079_v2 = vmul.f32 %v1078_v55, %v3768_v14  ;;  %v4023_v11 = vmax.f32 %v886_v58, 1e-12  ;;  %v814_v62 = vadd.f32 %v3430_v31, %v4949_v17  ;;  %v4951_v55 = vld [vmem:[#allocation25_spill] sm:$0xff] }
 0x15b   :  { %v2389_v10 = vpop.eup %2388  ;;  %v1162_v34 = vmul.f32 %v2383_v53, %v1161_v57  ;;  %vm1352_vm6 = vcmp.eq.s32.totalorder %v3973_v51, %v3329_v43  ;;  %v1255_v56 = vmul.f32 %v2387_v3, %v1254_v32  ;;  %v4030_v13 = vadd.s32 40, %v3475_v54  ;;  %v4952_v57 = vld [vmem:[#allocation26_spill] sm:$0xff] }
 0x15c   :  { %v829_v5 = vadd.f32 %v3672_v29, %v4950_v60  ;;  %v1173_v40 = vsub.f32 1.5, %v1172_v37  ;;  %vm1260_vm8 = vcmp.eq.f32.partialorder %v3954_v61, inf  ;;  %v978_v44 = vmul.f32 %v2389_v10, %v3975_v49 }
 0x15d   :  { %2392 = vrsqrt.f32 %v4023_v11  ;;  %v1163_v35 = vmul.f32 %v1162_v34, %v3912_v22  ;;  %v1256_v53 = vmul.f32 0.5, %v1255_v56  ;;  %vm1262_vm12 = vcmp.eq.f32.partialorder %v3954_v61, 0.0 }
 0x15e   :  { %v1263_v59 = vand.u32 2147483648, %v3954_v61  ;;  %vm1082_vm0 = vcmp.eq.f32.partialorder %v3768_v14, 0.0  ;;  %v987_v9 = vand.u32 2147483648, %v3975_v49  ;;  %v2391_v1 = vpop.eup %2390  ;;  %v1174_v23 = vmul.f32 %v2385_v0, %v1173_v40  ;;  %1483 = vmax.xlane.f32.xlu0 %v3983_v12  ;;  %1481 = vmax.xlane.f32.xlu2 %v3968_v63 }
 0x15f   :  { %v1081_v16 = vsel %vm1080_vm14, %v3768_v14, %v1079_v2  ;;  %v979_v18 = vmul.f32 %v2389_v10, %v978_v44  ;;  %v878_v24 = vsub.f32 %v814_v62, %v4951_v55  ;;  %v1165_v58 = vsel %vm1164_vm10, %v3912_v22, %v1163_v35  ;;  %v4953_v62 = vld [vmem:[#allocation19_spill] sm:$0xff]  ;;  %1467 = vmax.xlane.f32.xlu1 %v3994_v15 }
 0x160   :  { %v1257_v33 = vsub.f32 1.5, %v1256_v53  ;;  %vm1360_vm1 = vcmp.eq.s32.totalorder %v4019_v46, %v3329_v43  ;;  %vm984_vm13 = vcmp.eq.f32.partialorder %v3975_v49, inf  ;;  %v990_v0 = vmul.f32 %v2391_v1, %v4004_v4 }
 0x161   :  { %v893_v32 = vsub.f32 %v829_v5, %v4952_v57  ;;  %v1168_v37 = vsel %vm1166_vm11, %v1167_v50, %v1165_v58  ;;  %v1175_v2 = vmul.f32 %v1174_v23, %v3930_v25  ;;  %v980_v17 = vmul.f32 0.5, %v979_v18 }
 0x162   :  { %vm986_vm5 = vcmp.eq.f32.partialorder %v3975_v49, 0.0  ;;  %v830_v34 = vadd.f32 %v3672_v29, %v4953_v62  ;;  %v1383_v56 = vsel %vm1351_vm7, 0.0, %v1168_v37  ;;  %v1258_v60 = vmul.f32 %v2387_v3, %v1257_v33 }
 0x163   :  { %v991_v5 = vmul.f32 %v2391_v1, %v990_v0  ;;  %v4066_v40 = vmax.f32 %v893_v32, 1e-12  ;;  %v2393_v22 = vpop.eup %2392  ;;  %v1415_v50 = vmul.f32 -1.0, %v1383_v56  ;;  %v1177_v44 = vsel %vm1176_vm15, %v3930_v25, %v1175_v2 }
 0x164   :  { %v981_v35 = vsub.f32 1.5, %v980_v17  ;;  %vm996_vm9 = vcmp.eq.f32.partialorder %v4004_v4, inf  ;;  %vm1353_vm10 = vcmp.eq.s32.totalorder %v4030_v13, %v3329_v43  ;;  %v4074_v53 = vmax.f32 %v878_v24, 1e-12  ;;  %v4955_v13 = vld [vmem:[#allocation27_spill] sm:$0xff] }
 0x165   :  { %v1180_v6 = vsel %vm1178_vm3, %v1179_v38, %v1177_v44  ;;  %v1259_v3 = vmul.f32 %v1258_v60, %v3954_v61  ;;  %v992_v23 = vmul.f32 0.5, %v991_v5  ;;  %vm998_vm7 = vcmp.eq.f32.partialorder %v4004_v4, 0.0 }
 0x166   :  { %v1182_v18 = vmul.f32 %v2393_v22, %v4023_v11  ;;  %v1384_v55 = vsel %vm1352_vm6, 0.0, %v1180_v6  ;;  %v982_v58 = vmul.f32 %v2389_v10, %v981_v35  ;;  %2394 = vrsqrt.f32 %v4066_v40 }
 0x167   :  { %v894_v24 = vsub.f32 %v830_v34, %v3632_v8  ;;  %v1416_v33 = vmul.f32 -1.0, %v1384_v55  ;;  %v1261_v25 = vsel %vm1260_vm8, %v3954_v61, %v1259_v3  ;;  %v993_v38 = vsub.f32 1.5, %v992_v23 }
 0x168   :  { %v1183_v0 = vmul.f32 %v2393_v22, %v1182_v18  ;;  %v4091_v57 = vsel %vm1428_vm2, %v1415_v50, -1e+30  ;;  %v1264_v32 = vsel %vm1262_vm12, %v1263_v59, %v1261_v25  ;;  %v1084_v10 = vsel %vm1082_vm0, %v1083_v42, %v1081_v16 }
 0x169   :  { %v983_v8 = vmul.f32 %v982_v58, %v3975_v49  ;;  %v4102_v37 = vsel %vm1428_vm2, %v1416_v33, -1e+30  ;;  %v1391_v2 = vsel %vm1359_vm4, 0.0, %v1264_v32  ;;  %v994_v17 = vmul.f32 %v2391_v1, %v993_v38  ;;  %1499 = vmax.xlane.f32.xlu2 %v4091_v57 }
 0x16a   :  { %v1184_v62 = vmul.f32 0.5, %v1183_v0  ;;  %1501 = vmax.xlane.f32.xlu0 %v4102_v37  ;;  %v1423_v61 = vmul.f32 -1.0, %v1391_v2  ;;  %v999_v42 = vand.u32 2147483648, %v4004_v4  ;;  %v4113_v59 = vmax.f32 %v894_v24, 1e-12 }
 0x16b   :  { %v985_v14 = vsel %vm984_vm13, %v3975_v49, %v983_v8  ;;  %v995_v27 = vmul.f32 %v994_v17, %v4004_v4  ;;  %2396 = vrsqrt.f32 %v4074_v53  ;;  %v1376_v60 = vsel %vm1360_vm1, 0.0, %v1084_v10 }
 0x16c   :  { %v988_v16 = vsel %vm986_vm5, %v987_v9, %v985_v14  ;;  %v1185_v1 = vsub.f32 1.5, %v1184_v62  ;;  %v2395_v34 = vpop.eup %2394  ;;  %v4121_v56 = vsel %vm1428_vm2, %v1423_v61, -1e+30  ;;  %2398 = vrsqrt.f32 %v4113_v59 }
 0x16d   :  { %v1368_v5 = vsel %vm1352_vm6, 0.0, %v988_v16  ;;  %1515 = vmax.xlane.f32.xlu1 %v4121_v56  ;;  %v997_v9 = vsel %vm996_vm9, %v4004_v4, %v995_v27  ;;  %v1266_v44 = vmul.f32 %v2395_v34, %v4066_v40  ;;  %2400 = vrsqrt.f32 %v3964_v7 }
 0x16e   :  { %v1400_v49 = vmul.f32 -1.0, %v1368_v5  ;;  %v1186_v50 = vmul.f32 %v2393_v22, %v1185_v1  ;;  %v896_v35 = vsub.f32 %v3959_v36, %v3756_v48  ;;  %v1000_v51 = vsel %vm998_vm7, %v999_v42, %v997_v9  ;;  %v4954_v5 = vld [vmem:[#allocation10_spill] sm:$0xff] }
 0x16f   :  { %v4141_v6 = vadd.s32 104, %v3475_v54  ;;  %v1408_v3 = vmul.f32 -1.0, %v1376_v60  ;;  %v1369_v23 = vsel %vm1353_vm10, 0.0, %v1000_v51  ;;  %v1267_v18 = vmul.f32 %v2395_v34, %v1266_v44 }
 0x170   :  { %v1187_v22 = vmul.f32 %v1186_v50, %v4023_v11  ;;  %v1401_v55 = vmul.f32 -1.0, %v1369_v23  ;;  %vm1188_vm4 = vcmp.eq.f32.partialorder %v4023_v11, inf  ;;  %v1191_v58 = vand.u32 2147483648, %v4023_v11 }
 0x171   :  { %v1098_v4 = vmul.f32 %v3667_v20, %v3617_v28  ;;  %v2397_v24 = vpop.eup %2396  ;;  %v4153_v33 = vsel %vm1428_vm2, %v1400_v49, -1e+30  ;;  %vm1190_vm11 = vcmp.eq.f32.partialorder %v4023_v11, 0.0  ;;  %v1268_v38 = vmul.f32 0.5, %v1267_v18 }
 0x172   :  { %v1189_v25 = vsel %vm1188_vm4, %v4023_v11, %v1187_v22  ;;  %v2399_v0 = vpop.eup %2398  ;;  %1469 = vmax.xlane.f32.xlu2 %v4153_v33  ;;  %v4160_v32 = vsel %vm1428_vm2, %v1401_v55, -1e+30  ;;  %v1086_v8 = vmul.f32 %v2397_v24, %v4074_v53  ;;  %v4166_v17 = vsel %vm1428_vm2, %v1408_v3, -1e+30 }
 0x173   :  { %v1192_v10 = vsel %vm1190_vm11, %v1191_v58, %v1189_v25  ;;  %v1099_v2 = vmul.f32 %v3667_v20, %v1098_v4  ;;  %1471 = vmax.xlane.f32.xlu0 %v4160_v32  ;;  %v1269_v11 = vsub.f32 1.5, %v1268_v38  ;;  %vm1272_vm14 = vcmp.eq.f32.partialorder %v4066_v40, inf  ;;  %v4171_v61 = vpop.eup %2400 }
 0x174   :  { %v1278_v62 = vmul.f32 %v2399_v0, %v4113_v59  ;;  %vm1274_vm15 = vcmp.eq.f32.partialorder %v4066_v40, 0.0  ;;  %v1275_v14 = vand.u32 2147483648, %v4066_v40  ;;  %v1087_v42 = vmul.f32 %v2397_v24, %v1086_v8 }
 0x175   :  { %v1100_v16 = vmul.f32 0.5, %v1099_v2  ;;  %1485 = vmax.xlane.f32.xlu1 %v4166_v17  ;;  %v1385_v27 = vsel %vm1353_vm10, 0.0, %v1192_v10  ;;  %v1270_v1 = vmul.f32 %v2395_v34, %v1269_v11  ;;  %vm1361_vm3 = vcmp.eq.s32.totalorder %v4141_v6, %v3329_v43  ;;  %v4960_v6 = vld [vmem:[#allocation32_spill] sm:$0xff] }
 0x176   :  { %v1279_v60 = vmul.f32 %v2399_v0, %v1278_v62  ;;  %v807_v49 = vadd.f32 %v3430_v31, %v4954_v5  ;;  %vm1284_vm6 = vcmp.eq.f32.partialorder %v4113_v59, inf  ;;  %v1287_v9 = vand.u32 2147483648, %v4113_v59  ;;  %v4956_v31 = vld [vmem:[#allocation5_spill] sm:$0xff] }
 0x177   :  { %v1088_v50 = vmul.f32 0.5, %v1087_v42  ;;  %v1101_v44 = vsub.f32 1.5, %v1100_v16  ;;  %v1271_v51 = vmul.f32 %v1270_v1, %v4066_v40  ;;  %vm1286_vm8 = vcmp.eq.f32.partialorder %v4113_v59, 0.0 }
 0x178   :  { %v1280_v3 = vmul.f32 0.5, %v1279_v60  ;;  %vm1092_vm12 = vcmp.eq.f32.partialorder %v4074_v53, inf  ;;  %v871_v34 = vsub.f32 %v807_v49, %v4955_v13  ;;  %v1417_v23 = vmul.f32 -1.0, %v1385_v27 }
 0x179   :  { %v1089_v22 = vsub.f32 1.5, %v1088_v50  ;;  %v1102_v18 = vmul.f32 %v3667_v20, %v1101_v44  ;;  %v823_v55 = vadd.f32 %v3672_v29, %v4956_v31  ;;  %v1273_v58 = vsel %vm1272_vm14, %v4066_v40, %v1271_v51  ;;  %v4957_v20 = vld [vmem:[#allocation31_spill] sm:$0xff] }
 0x17a   :  { %v1281_v4 = vsub.f32 1.5, %v1280_v3  ;;  %v4195_v25 = vmax.f32 %v871_v34, 1e-12  ;;  %v1206_v38 = vmul.f32 %v4171_v61, %v3964_v7  ;;  %v1276_v10 = vsel %vm1274_vm15, %v1275_v14, %v1273_v58  ;;  %v4958_v3 = vld [vmem:[#allocation33_spill] sm:$0xff] }
 0x17b   :  { %v1090_v8 = vmul.f32 %v2397_v24, %v1089_v22  ;;  %v1103_v2 = vmul.f32 %v1102_v18, %v3617_v28  ;;  %v887_v11 = vsub.f32 %v823_v55, %v4957_v20  ;;  %v1392_v62 = vsel %vm1360_vm1, 0.0, %v1276_v10 }
 0x17c   :  { %v1282_v42 = vmul.f32 %v2399_v0, %v1281_v4  ;;  %vm1094_vm0 = vcmp.eq.f32.partialorder %v4074_v53, 0.0  ;;  %2402 = vrsqrt.f32 %v4195_v25  ;;  %v4210_v16 = vsel %vm1428_vm2, %v1417_v23, -1e+30 }
 0x17d   :  { %v1424_v40 = vmul.f32 -1.0, %v1392_v62  ;;  %v1091_v24 = vmul.f32 %v1090_v8, %v4074_v53  ;;  %v1095_v14 = vand.u32 2147483648, %v4074_v53  ;;  %1503 = vmax.xlane.f32.xlu1 %v4210_v16  ;;  %vm1104_vm1 = vcmp.eq.f32.partialorder %v3617_v28, inf }
 0x17e   :  { %v1283_v27 = vmul.f32 %v1282_v42, %v4113_v59  ;;  %v4218_v46 = vadd.s32 112, %v3475_v54  ;;  %v4220_v0 = vmax.f32 %v887_v11, 1e-12  ;;  %v1105_v5 = vsel %vm1104_vm1, %v3617_v28, %v1103_v2 }
 0x17f   :  { %v4224_v1 = vsel %vm1428_vm2, %v1424_v40, -1e+30  ;;  %v1093_v60 = vsel %vm1092_vm12, %v4074_v53, %v1091_v24  ;;  %v1207_v49 = vmul.f32 %v4171_v61, %v1206_v38  ;;  %v1107_v51 = vand.u32 2147483648, %v3617_v28  ;;  %v4961_v38 = vld [vmem:[#allocation15_spill] sm:$0xff] }
 0x180   :  { %1517 = vmax.xlane.f32.xlu2 %v4224_v1  ;;  %v1285_v50 = vsel %vm1284_vm6, %v4113_v59, %v1283_v27  ;;  %v1096_v44 = vsel %vm1094_vm0, %v1095_v14, %v1093_v60  ;;  %2404 = vrsqrt.f32 %v4220_v0  ;;  %v863_v13 = vmul.f32 2.0, %v4958_v3  ;;  %v4962_v27 = vld [vmem:[#allocation30_spill] sm:$0xff] }
 0x181   :  { %v1288_v34 = vsel %vm1286_vm8, %v1287_v9, %v1285_v50  ;;  %v1377_v23 = vsel %vm1361_vm3, 0.0, %v1096_v44  ;;  %vm1106_vm13 = vcmp.eq.f32.partialorder %v3617_v28, 0.0  ;;  %v4249_v53 = vmax.f32 %v896_v35, 1e-12  ;;  %v4959_v28 = vld [vmem:[#allocation21_spill] sm:$0xff]  ;;  %v4963_v60 = vld [vmem:[#allocation34_spill] sm:$0xff] }
 0x182   :  { %v2403_v22 = vpop.eup %2402  ;;  %v1393_v18 = vsel %vm1361_vm3, 0.0, %v1288_v34  ;;  %v1108_v31 = vsel %vm1106_vm13, %v1107_v51, %v1105_v5  ;;  %vm1362_vm5 = vcmp.eq.s32.totalorder %v4218_v46, %v3329_v43  ;;  %v1409_v9 = vmul.f32 -1.0, %v1377_v23 }
 0x183   :  { %v1425_v59 = vmul.f32 -1.0, %v1393_v18  ;;  %v1002_v55 = vmul.f32 %v2403_v22, %v4195_v25  ;;  %v1208_v58 = vmul.f32 0.5, %v1207_v49  ;;  %v831_v4 = vadd.f32 %v3672_v29, %v4959_v28 }
 0x184   :  { %v1110_v10 = vmul.f32 %v4961_v38, %v4960_v6  ;;  %2406 = vrsqrt.f32 %v4249_v53  ;;  %v1378_v2 = vsel %vm1362_vm5, 0.0, %v1108_v31  ;;  %v4272_v29 = vsel %vm1428_vm2, %v1409_v9, -1e+30 }
 0x185   :  { %v4261_v48 = vsel %vm1428_vm2, %v1425_v59, -1e+30  ;;  %v1003_v36 = vmul.f32 %v2403_v22, %v1002_v55  ;;  %v1209_v35 = vsub.f32 1.5, %v1208_v58  ;;  %v895_v20 = vsub.f32 %v831_v4, %v863_v13 }
 0x186   :  { %v2405_v8 = vpop.eup %2404  ;;  %1519 = vmax.xlane.f32.xlu0 %v4261_v48  ;;  %v4278_v40 = vadd.s32 56, %v3475_v54  ;;  %v1111_v14 = vmul.f32 %v4961_v38, %v1110_v10  ;;  %v1014_v5 = vmul.f32 %v4963_v60, %v4962_v27  ;;  %v1410_v49 = vmul.f32 -1.0, %v1378_v2 }
 0x187   :  { %v1004_v11 = vmul.f32 0.5, %v1003_v36  ;;  %v1194_v62 = vmul.f32 %v2405_v8, %v4220_v0  ;;  %v1210_v42 = vmul.f32 %v4171_v61, %v1209_v35  ;;  %v4280_v24 = vmax.f32 %v895_v20, 1e-12 }
 0x188   :  { %1487 = vmax.xlane.f32.xlu2 %v4272_v29  ;;  %v1320_v3 = vadd.s32 48, %v3475_v54  ;;  %vm1212_vm9 = vcmp.eq.f32.partialorder %v3964_v7, inf  ;;  %v1215_v61 = vand.u32 2147483648, %v3964_v7  ;;  %vm1214_vm10 = vcmp.eq.f32.partialorder %v3964_v7, 0.0 }
 0x189   :  { %v1005_v50 = vsub.f32 1.5, %v1004_v11  ;;  %v1195_v44 = vmul.f32 %v2405_v8, %v1194_v62  ;;  %v1211_v51 = vmul.f32 %v1210_v42, %v3964_v7  ;;  %2408 = vrsqrt.f32 %v4280_v24  ;;  %v1462_v11 = vpop.xlane.xlu1 %1461 }
 0x18a   :  { %v4292_v18 = vpop.eup %2406  ;;  %vm1355_vm7 = vcmp.eq.s32.totalorder %v4278_v40, %v3329_v43  ;;  %v1112_v59 = vmul.f32 0.5, %v1111_v14  ;;  %v1015_v9 = vmul.f32 %v4963_v60, %v1014_v5  ;;  %v4299_v55 = vsel %vm1428_vm2, %v1410_v49, -1e+30 }
 0x18b   :  { %v1006_v13 = vmul.f32 %v2403_v22, %v1005_v50  ;;  %v1196_v34 = vmul.f32 0.5, %v1195_v44  ;;  %v1213_v23 = vsel %vm1212_vm9, %v3964_v7, %v1211_v51  ;;  %vm1008_vm4 = vcmp.eq.f32.partialorder %v4195_v25, inf  ;;  %v4964_v50 = vld [vmem:[#allocation29_spill] sm:$0xff] }
 0x18c   :  { %v1216_v31 = vsel %vm1214_vm10, %v1215_v61, %v1213_v23  ;;  %v1011_v28 = vand.u32 2147483648, %v4195_v25  ;;  %vm1354_vm11 = vcmp.eq.s32.totalorder %v1320_v3, %v3329_v43  ;;  %v1016_v4 = vmul.f32 0.5, %v1015_v9 }
 0x18d   :  { %v1007_v22 = vmul.f32 %v1006_v13, %v4195_v25  ;;  %v1197_v58 = vsub.f32 1.5, %v1196_v34  ;;  %v1387_v7 = vsel %vm1355_vm7, 0.0, %v1216_v31  ;;  %vm1010_vm14 = vcmp.eq.f32.partialorder %v4195_v25, 0.0 }
 0x18e   :  { %1489 = vmax.xlane.f32.xlu0 %v4299_v55  ;;  %vm1200_vm15 = vcmp.eq.f32.partialorder %v4220_v0, inf  ;;  %v1419_v20 = vmul.f32 -1.0, %v1387_v7  ;;  %v1113_v62 = vsub.f32 1.5, %v1112_v59  ;;  %v1017_v42 = vsub.f32 1.5, %v1016_v4 }
 0x18f   :  { %v1009_v36 = vsel %vm1008_vm4, %v4195_v25, %v1007_v22  ;;  %v1198_v35 = vmul.f32 %v2405_v8, %v1197_v58  ;;  %v2409_v10 = vpop.eup %2408  ;;  %v1525_v44 = vsub.f32 %v4964_v50, %v1462_v11  ;;  %v1203_v25 = vand.u32 2147483648, %v4220_v0 }
 0x190   :  { %v1012_v2 = vsel %vm1010_vm14, %v1011_v28, %v1009_v36  ;;  %v1290_v49 = vmul.f32 %v2409_v10, %v4280_v24  ;;  %v1018_v8 = vmul.f32 %v4963_v60, %v1017_v42  ;;  %v1302_v61 = vmul.f32 %v4292_v18, %v4249_v53 }
 0x191   :  { %v1370_v14 = vsel %vm1354_vm11, 0.0, %v1012_v2  ;;  %v1199_v5 = vmul.f32 %v1198_v35, %v4220_v0  ;;  %vm1202_vm3 = vcmp.eq.f32.partialorder %v4220_v0, 0.0  ;;  %v1557_v23 = vmul.f32 1.442695, %v1525_v44 }
 0x192   :  { %v1402_v51 = vmul.f32 -1.0, %v1370_v14  ;;  %v1291_v34 = vmul.f32 %v2409_v10, %v1290_v49  ;;  %v1114_v9 = vmul.f32 %v4961_v38, %v1113_v62  ;;  %v4333_v22 = vsel %vm1428_vm2, %v1419_v20, -1e+30 }
 0x193   :  { %v1201_v13 = vsel %vm1200_vm15, %v4220_v0, %v1199_v5  ;;  %2410 = vpow2.f32 %v1557_v23  ;;  %v1019_v7 = vmul.f32 %v1018_v8, %v4962_v27  ;;  %v1303_v28 = vmul.f32 %v4292_v18, %v1302_v61 }
 0x194   :  { %v4325_v31 = vsel %vm1428_vm2, %v1402_v51, -1e+30  ;;  %v1204_v59 = vsel %vm1202_vm3, %v1203_v25, %v1201_v13  ;;  %v1292_v58 = vmul.f32 0.5, %v1291_v34  ;;  %vm1020_vm6 = vcmp.eq.f32.partialorder %v4962_v27, inf }
 0x195   :  { %1473 = vmax.xlane.f32.xlu1 %v4325_v31  ;;  %v1386_v60 = vsel %vm1354_vm11, 0.0, %v1204_v59  ;;  %vm1022_vm8 = vcmp.eq.f32.partialorder %v4962_v27, 0.0  ;;  %v1023_v38 = vand.u32 2147483648, %v4962_v27  ;;  %v1115_v36 = vmul.f32 %v1114_v9, %v4960_v6  ;;  %v4965_v59 = vld [vmem:[#allocation28_spill] sm:$0xff] }
 0x196   :  { %v1418_v0 = vmul.f32 -1.0, %v1386_v60  ;;  %1507 = vmax.xlane.f32.xlu0 %v4333_v22  ;;  %v1293_v4 = vsub.f32 1.5, %v1292_v58  ;;  %v1021_v35 = vsel %vm1020_vm6, %v4962_v27, %v1019_v7  ;;  %v1304_v2 = vmul.f32 0.5, %v1303_v28 }
 0x197   :  { %v1024_v11 = vsel %vm1022_vm8, %v1023_v38, %v1021_v35  ;;  %v1329_v62 = vadd.s32 120, %v3475_v54  ;;  %vm1296_vm12 = vcmp.eq.f32.partialorder %v4280_v24, inf  ;;  %vm1116_vm0 = vcmp.eq.f32.partialorder %v4960_v6, inf }
 0x198   :  { %v4343_v3 = vsel %vm1428_vm2, %v1418_v0, -1e+30  ;;  %v1294_v20 = vmul.f32 %v2409_v10, %v1293_v4  ;;  %v1371_v42 = vsel %vm1355_vm7, 0.0, %v1024_v11  ;;  %v1305_v14 = vsub.f32 1.5, %v1304_v2 }
 0x199   :  { %1505 = vmax.xlane.f32.xlu2 %v4343_v3  ;;  %v4352_v5 = vpop.eup %2410  ;;  %v1299_v27 = vand.u32 2147483648, %v4280_v24  ;;  %v1117_v10 = vsel %vm1116_vm0, %v4960_v6, %v1115_v36  ;;  %v1403_v50 = vmul.f32 -1.0, %v1371_v42  ;;  %vm1298_vm1 = vcmp.eq.f32.partialorder %v4280_v24, 0.0 }
 0x19a   :  { %v1295_v49 = vmul.f32 %v1294_v20, %v4280_v24  ;;  %v1306_v54 = vmul.f32 %v4292_v18, %v1305_v14  ;;  %v1119_v40 = vand.u32 2147483648, %v4960_v6  ;;  %vm1118_vm13 = vcmp.eq.f32.partialorder %v4960_v6, 0.0  ;;  %v1478_v18 = vpop.xlane.xlu0 %1477 }
 0x19b   :  { %vm1363_vm9 = vcmp.eq.s32.totalorder %v1329_v62, %v3329_v43  ;;  %vm1308_vm10 = vcmp.eq.f32.partialorder %v4249_v53, inf  ;;  %v4374_v6 = vsel %vm1428_vm2, %v1403_v50, -1e+30  ;;  %vm1310_vm7 = vcmp.eq.f32.partialorder %v4249_v53, 0.0 }
 0x19c   :  { %v1297_v44 = vsel %vm1296_vm12, %v4280_v24, %v1295_v49  ;;  %v1307_v25 = vmul.f32 %v1306_v54, %v4249_v53  ;;  %v1120_v61 = vsel %vm1118_vm13, %v1119_v40, %v1117_v10  ;;  %v1311_v24 = vand.u32 2147483648, %v4249_v53 }
 0x19d   :  { %v1300_v51 = vsel %vm1298_vm1, %v1299_v27, %v1297_v44  ;;  %v1533_v9 = vsub.f32 %v4965_v59, %v1478_v18  ;;  %v1379_v58 = vsel %vm1363_vm9, 0.0, %v1120_v61 }
 0x19e   :  { %1621 = vadd.xlane.f32.xlu0 %v4352_v5  ;;  %v1394_v8 = vsel %vm1362_vm5, 0.0, %v1300_v51  ;;  %v1309_v34 = vsel %vm1308_vm10, %v4249_v53, %v1307_v25  ;;  %v1411_v53 = vmul.f32 -1.0, %v1379_v58 }
 0x19f   :  { %v1426_v13 = vmul.f32 -1.0, %v1394_v8  ;;  %v1312_v23 = vsel %vm1310_vm7, %v1311_v24, %v1309_v34  ;;  %v1573_v7 = vmul.f32 1.442695, %v1533_v9 }
 0x1a0   :  { %v1395_v60 = vsel %vm1363_vm9, 0.0, %v1312_v23  ;;  %v4396_v4 = vsel %vm1428_vm2, %v1411_v53, -1e+30 }
 0x1a1   :  { %1475 = vmax.xlane.f32.xlu2 %v4374_v6  ;;  %v4381_v46 = vsel %vm1428_vm2, %v1426_v13, -1e+30  ;;  %v1427_v0 = vmul.f32 -1.0, %v1395_v60  ;;  %2412 = vpow2.f32 %v1573_v7 }
 0x1a2   :  { %1521 = vmax.xlane.f32.xlu1 %v4381_v46 }
 0x1a3   :  { %v4391_v28 = vsel %vm1428_vm2, %v1427_v0, -1e+30 }
 0x1a7   :  { %v4399_v38 = vpop.eup %2412 }
 0x1a9   :  { %1523 = vmax.xlane.f32.xlu2 %v4391_v28 }
 0x1aa   :  { %1491 = vmax.xlane.f32.xlu1 %v4396_v4 }
 0x1b1   :  { %1637 = vadd.xlane.f32.xlu2 %v4399_v38 }
 0x1b7   :  { %v1496_v36 = vpop.xlane.xlu0 %1495 }
 0x1b8   :  { %v1542_v2 = vsub.f32 %v3865_v41, %v1496_v36 }
 0x1b9   :  { %v1494_v35 = vpop.xlane.xlu2 %1493 }
 0x1ba   :  { %v1541_v20 = vsub.f32 %v3876_v39, %v1494_v35  ;;  %v1510_v11 = vpop.xlane.xlu1 %1509  ;;  %v1591_v62 = vmul.f32 1.442695, %v1542_v2 }
 0x1bb   :  { %v1549_v42 = vsub.f32 %v3886_v19, %v1510_v11 }
 0x1bc   :  { %v1589_v14 = vmul.f32 1.442695, %v1541_v20  ;;  %2414 = vpow2.f32 %v1591_v62 }
 0x1bd   :  { %v1605_v43 = vmul.f32 1.442695, %v1549_v42 }
 0x1be   :  { %2416 = vpow2.f32 %v1589_v14 }
 0x1bf   :  { %2418 = vpow2.f32 %v1605_v43  ;;  %v1466_v49 = vpop.xlane.xlu0 %1465 }
 0x1c0   :  { %v1527_v10 = vsub.f32 %v3780_v30, %v1466_v49 }
 0x1c1   :  { %v1464_v27 = vpop.xlane.xlu2 %1463 }
 0x1c2   :  { %v1480_v50 = vpop.xlane.xlu1 %1479  ;;  %v1526_v54 = vsub.f32 %v3946_v21, %v1464_v27  ;;  %v4407_v44 = vpop.eup %2414  ;;  %v1561_v39 = vmul.f32 1.442695, %v1527_v10 }
 0x1c3   :  { %v1534_v41 = vsub.f32 %v3772_v45, %v1480_v50  ;;  %1655 = vadd.xlane.f32.xlu2 %v4407_v44 }
 0x1c4   :  { %v4410_v40 = vpop.eup %2416  ;;  %v1559_v19 = vmul.f32 1.442695, %v1526_v54  ;;  %2420 = vpow2.f32 %v1561_v39 }
 0x1c5   :  { %v4413_v51 = vpop.eup %2418  ;;  %v1575_v25 = vmul.f32 1.442695, %v1534_v41  ;;  %1653 = vadd.xlane.f32.xlu1 %v4410_v40 }
 0x1c6   :  { %2422 = vpow2.f32 %v1559_v19  ;;  %1669 = vadd.xlane.f32.xlu0 %v4413_v51 }
 0x1c7   :  { %2424 = vpow2.f32 %v1575_v25 }
 0x1c9   :  { %v1514_v30 = vpop.xlane.xlu0 %1513  ;;  %v1512_v21 = vpop.xlane.xlu2 %1511 }
 0x1ca   :  { %v1551_v45 = vsub.f32 %v3999_v26, %v1514_v30  ;;  %v1498_v8 = vpop.xlane.xlu1 %1497  ;;  %v1550_v18 = vsub.f32 %v3990_v52, %v1512_v21  ;;  %v4419_v61 = vpop.eup %2420 }
 0x1cb   :  { %v1543_v24 = vsub.f32 %v3979_v47, %v1498_v8  ;;  %1625 = vadd.xlane.f32.xlu2 %v4419_v61 }
 0x1cc   :  { %v1609_v13 = vmul.f32 1.442695, %v1551_v45  ;;  %v4422_v34 = vpop.eup %2422  ;;  %v1607_v23 = vmul.f32 1.442695, %v1550_v18 }
 0x1cd   :  { %v4425_v59 = vpop.eup %2424  ;;  %v1593_v9 = vmul.f32 1.442695, %v1543_v24  ;;  %1623 = vadd.xlane.f32.xlu1 %v4422_v34 }
 0x1ce   :  { %2426 = vpow2.f32 %v1609_v13  ;;  %1639 = vadd.xlane.f32.xlu0 %v4425_v59 }
 0x1cf   :  { %2428 = vpow2.f32 %v1607_v23 }
 0x1d0   :  { %2430 = vpow2.f32 %v1593_v9 }
 0x1d1   :  { %v1484_v52 = vpop.xlane.xlu0 %1483  ;;  %v1482_v26 = vpop.xlane.xlu2 %1481 }
 0x1d2   :  { %v1536_v47 = vsub.f32 %v3983_v12, %v1484_v52  ;;  %v1535_v60 = vsub.f32 %v3968_v63, %v1482_v26  ;;  %v1468_v58 = vpop.xlane.xlu1 %1467 }
 0x1d3   :  { %v1528_v53 = vsub.f32 %v3994_v15, %v1468_v58 }
 0x1d4   :  { %v4431_v0 = vpop.eup %2426  ;;  %v1579_v7 = vmul.f32 1.442695, %v1536_v47  ;;  %v1577_v35 = vmul.f32 1.442695, %v1535_v60 }
 0x1d5   :  { %v4434_v36 = vpop.eup %2428  ;;  %1673 = vadd.xlane.f32.xlu2 %v4431_v0  ;;  %v1563_v20 = vmul.f32 1.442695, %v1528_v53 }
 0x1d6   :  { %v4437_v2 = vpop.eup %2430  ;;  %2432 = vpow2.f32 %v1579_v7  ;;  %1671 = vadd.xlane.f32.xlu1 %v4434_v36 }
 0x1d7   :  { %2434 = vpow2.f32 %v1577_v35  ;;  %1657 = vadd.xlane.f32.xlu0 %v4437_v2 }
 0x1d8   :  { %2436 = vpow2.f32 %v1563_v20 }
 0x1dc   :  { %v1500_v63 = vpop.xlane.xlu2 %1499  ;;  %v4443_v62 = vpop.eup %2432 }
 0x1dd   :  { %v1502_v12 = vpop.xlane.xlu0 %1501  ;;  %v1544_v11 = vsub.f32 %v4091_v57, %v1500_v63  ;;  %v4445_v42 = vpop.eup %2434  ;;  %1643 = vadd.xlane.f32.xlu2 %v4443_v62 }
 0x1de   :  { %v1545_v15 = vsub.f32 %v4102_v37, %v1502_v12  ;;  %v4448_v27 = vpop.eup %2436  ;;  %1641 = vadd.xlane.f32.xlu1 %v4445_v42 }
 0x1df   :  { %v1595_v14 = vmul.f32 1.442695, %v1544_v11  ;;  %1627 = vadd.xlane.f32.xlu0 %v4448_v27 }
 0x1e0   :  { %v1597_v43 = vmul.f32 1.442695, %v1545_v15  ;;  %v1516_v49 = vpop.xlane.xlu1 %1515 }
 0x1e1   :  { %v1552_v10 = vsub.f32 %v4121_v56, %v1516_v49  ;;  %2438 = vpow2.f32 %v1595_v14 }
 0x1e2   :  { %2440 = vpow2.f32 %v1597_v43 }
 0x1e3   :  { %v1611_v57 = vmul.f32 1.442695, %v1552_v10 }
 0x1e5   :  { %2442 = vpow2.f32 %v1611_v57  ;;  %v1470_v37 = vpop.xlane.xlu2 %1469 }
 0x1e6   :  { %v1529_v50 = vsub.f32 %v4153_v33, %v1470_v37  ;;  %v1472_v54 = vpop.xlane.xlu0 %1471 }
 0x1e7   :  { %v1530_v41 = vsub.f32 %v4160_v32, %v1472_v54  ;;  %v4455_v39 = vpop.eup %2438 }
 0x1e8   :  { %v1486_v19 = vpop.xlane.xlu1 %1485  ;;  %v1565_v25 = vmul.f32 1.442695, %v1529_v50  ;;  %v4457_v30 = vpop.eup %2440  ;;  %1659 = vadd.xlane.f32.xlu1 %v4455_v39 }
 0x1e9   :  { %v1537_v56 = vsub.f32 %v4166_v17, %v1486_v19  ;;  %v1567_v21 = vmul.f32 1.442695, %v1530_v41  ;;  %1661 = vadd.xlane.f32.xlu2 %v4457_v30 }
 0x1ea   :  { %2444 = vpow2.f32 %v1565_v25 }
 0x1eb   :  { %v4462_v45 = vpop.eup %2442  ;;  %v1581_v33 = vmul.f32 1.442695, %v1537_v56  ;;  %2446 = vpow2.f32 %v1567_v21 }
 0x1ec   :  { %1675 = vadd.xlane.f32.xlu0 %v4462_v45 }
 0x1ed   :  { %2448 = vpow2.f32 %v1581_v33 }
 0x1f0   :  { %v4465_v32 = vpop.eup %2444  ;;  %v1504_v8 = vpop.xlane.xlu1 %1503 }
 0x1f1   :  { %v4467_v18 = vpop.eup %2446  ;;  %v1546_v17 = vsub.f32 %v4210_v16, %v1504_v8  ;;  %1629 = vadd.xlane.f32.xlu1 %v4465_v32 }
 0x1f2   :  { %1631 = vadd.xlane.f32.xlu2 %v4467_v18 }
 0x1f3   :  { %v1518_v24 = vpop.xlane.xlu2 %1517  ;;  %v4472_v13 = vpop.eup %2448  ;;  %v1599_v23 = vmul.f32 1.442695, %v1546_v17 }
 0x1f4   :  { %v1553_v9 = vsub.f32 %v4224_v1, %v1518_v24  ;;  %1645 = vadd.xlane.f32.xlu0 %v4472_v13 }
 0x1f5   :  { %2450 = vpow2.f32 %v1599_v23 }
 0x1f6   :  { %v1613_v52 = vmul.f32 1.442695, %v1553_v9 }
 0x1f8   :  { %2452 = vpow2.f32 %v1613_v52 }
 0x1f9   :  { %v1520_v26 = vpop.xlane.xlu0 %1519 }
 0x1fa   :  { %v1554_v10 = vsub.f32 %v4261_v48, %v1520_v26 }
 0x1fb   :  { %v1488_v47 = vpop.xlane.xlu2 %1487  ;;  %v4476_v60 = vpop.eup %2450 }
 0x1fc   :  { %v1538_v16 = vsub.f32 %v4272_v29, %v1488_v47  ;;  %1663 = vadd.xlane.f32.xlu0 %v4476_v60 }
 0x1fe   :  { %v4480_v58 = vpop.eup %2452  ;;  %v1583_v7 = vmul.f32 1.442695, %v1538_v16 }
 0x1ff   :  { %1677 = vadd.xlane.f32.xlu1 %v4480_v58 }
 0x200   :  { %2454 = vpow2.f32 %v1583_v7 }
 0x201   :  { %v1490_v1 = vpop.xlane.xlu0 %1489 }
 0x202   :  { %v1539_v53 = vsub.f32 %v4299_v55, %v1490_v1 }
 0x204   :  { %v1585_v35 = vmul.f32 1.442695, %v1539_v53 }
 0x206   :  { %v4484_v20 = vpop.eup %2454  ;;  %2456 = vpow2.f32 %v1585_v35 }
 0x207   :  { %1647 = vadd.xlane.f32.xlu1 %v4484_v20 }
 0x208   :  { %v1474_v63 = vpop.xlane.xlu1 %1473 }
 0x209   :  { %v1531_v29 = vsub.f32 %v4325_v31, %v1474_v63  ;;  %v1508_v12 = vpop.xlane.xlu0 %1507  ;;  %v1615_v31 = vmul.f32 1.442695, %v1554_v10 }
 0x20a   :  { %v1548_v11 = vsub.f32 %v4333_v22, %v1508_v12 }
 0x20b   :  { %v1569_v15 = vmul.f32 1.442695, %v1531_v29 }
 0x20c   :  { %v4489_v14 = vpop.eup %2456  ;;  %v1506_v43 = vpop.xlane.xlu2 %1505  ;;  %v1603_v49 = vmul.f32 1.442695, %v1548_v11 }
 0x20d   :  { %2458 = vpow2.f32 %v1569_v15  ;;  %v1547_v55 = vsub.f32 %v4343_v3, %v1506_v43  ;;  %1649 = vadd.xlane.f32.xlu2 %v4489_v14 }
 0x20e   :  { %2460 = vpow2.f32 %v1603_v49 }
 0x20f   :  { %v1601_v57 = vmul.f32 1.442695, %v1547_v55 }
 0x211   :  { %2462 = vpow2.f32 %v1601_v57  ;;  %v1622_v37 = vpop.xlane.xlu0 %1621 }
 0x212   :  { %2464 = vrcp.f32 %v1622_v37  ;;  %v1696_v17 = vand.u32 2147483648, %v1622_v37  ;;  %v1694_v23 = vand.u32 2147483647, %v1622_v37  ;;  %vm1690_vm5 = vweird.f32 %v1622_v37 }
 0x213   :  { %v4494_v50 = vpop.eup %2458  ;;  %2466 = vpow2.f32 %v1615_v31 }
 0x214   :  { %v4496_v22 = vpop.eup %2460  ;;  %1633 = vadd.xlane.f32.xlu0 %v4494_v50  ;;  %v1476_v54 = vpop.xlane.xlu2 %1475  ;;  %v1697_v7 = vor.u32 1.1754944e-38, %v1696_v17  ;;  %vm1695_vm11 = vcmp.eq.f32.partialorder %v1694_v23, 8.507059e+37 }
 0x215   :  { %v1532_v41 = vsub.f32 %v4374_v6, %v1476_v54  ;;  %1667 = vadd.xlane.f32.xlu2 %v4496_v22  ;;  %v1522_v3 = vpop.xlane.xlu1 %1521 }
 0x216   :  { %v1555_v35 = vsub.f32 %v4381_v46, %v1522_v3 }
 0x217   :  { %v4501_v48 = vpop.eup %2462  ;;  %v1571_v19 = vmul.f32 1.442695, %v1532_v41 }
 0x218   :  { %v2465_v25 = vpop.eup %2464  ;;  %1665 = vadd.xlane.f32.xlu1 %v4501_v48  ;;  %v1617_v12 = vmul.f32 1.442695, %v1555_v35 }
 0x219   :  { %2468 = vpow2.f32 %v1571_v19  ;;  %v1686_v56 = vmul.f32 %v2465_v25, %v1622_v37  ;;  %v4504_v33 = vpop.eup %2466  ;;  %vm1691_vm2 = vweird.f32 %v2465_v25 }
 0x21a   :  { %vm1692_vm4 = vmor %vm1690_vm5, %vm1691_vm2 }
 0x21b   :  { %v1687_v21 = vsub.f32 1.0, %v1686_v56 }
 0x21c   :  { %v1524_v8 = vpop.xlane.xlu2 %1523 }
 0x21d   :  { %v1556_v24 = vsub.f32 %v4391_v28, %v1524_v8  ;;  %v1688_v6 = vmul.f32 %v2465_v25, %v1687_v21  ;;  %1679 = vadd.xlane.f32.xlu2 %v4504_v33  ;;  %v1492_v9 = vpop.xlane.xlu1 %1491 }
 0x21e   :  { %v1540_v26 = vsub.f32 %v4396_v4, %v1492_v9 }
 0x21f   :  { %v4508_v52 = vpop.eup %2468  ;;  %v1619_v47 = vmul.f32 1.442695, %v1556_v24  ;;  %v1689_v16 = vadd.f32 %v2465_v25, %v1688_v6 }
 0x220   :  { %1635 = vadd.xlane.f32.xlu1 %v4508_v52  ;;  %v1587_v1 = vmul.f32 1.442695, %v1540_v26 }
 0x221   :  { %2470 = vpow2.f32 %v1619_v47  ;;  %v1693_v28 = vsel %vm1692_vm4, %v2465_v25, %v1689_v16 }
 0x222   :  { %v1698_v53 = vsel %vm1695_vm11, %v1697_v7, %v1693_v28  ;;  %2472 = vpow2.f32 %v1587_v1 }
 0x223   :  { %v2165_v63 = vmul.f32 %v4352_v5, %v1698_v53 }
 0x224   :  { %v1638_v29 = vpop.xlane.xlu2 %1637 }
 0x225   :  { %2197 = vst [vmem:[#allocation2] sm:$0xff] %v2165_v63  ;;  %2474 = vrcp.f32 %v1638_v29  ;;  %v1816_v46 = vand.u32 2147483648, %v1638_v29  ;;  %v1814_v5 = vand.u32 2147483647, %v1638_v29  ;;  %vm1810_vm15 = vweird.f32 %v1638_v29 }
 0x226   :  { %2476 = vpow2.f32 %v1617_v12 }
 0x227   :  { %v4514_v4 = vpop.eup %2470  ;;  %v1817_v37 = vor.u32 1.1754944e-38, %v1816_v46  ;;  %vm1815_vm6 = vcmp.eq.f32.partialorder %v1814_v5, 8.507059e+37 }
 0x228   :  { %1683 = vadd.xlane.f32.xlu1 %v4514_v4  ;;  %v4517_v11 = vpop.eup %2472 }
 0x229   :  { %1651 = vadd.xlane.f32.xlu0 %v4517_v11 }
 0x22b   :  { %v2475_v15 = vpop.eup %2474 }
 0x22c   :  { %v1806_v43 = vmul.f32 %v2475_v15, %v1638_v29  ;;  %vm1811_vm14 = vweird.f32 %v2475_v15  ;;  %v4520_v10 = vpop.eup %2476 }
 0x22d   :  { %vm1812_vm3 = vmor %vm1810_vm15, %vm1811_vm14 }
 0x22e   :  { %v1807_v49 = vsub.f32 1.0, %v1806_v43 }
 0x230   :  { %v1808_v55 = vmul.f32 %v2475_v15, %v1807_v49 }
 0x231   :  { %1681 = vadd.xlane.f32.xlu0 %v4520_v10 }
 0x232   :  { %v1809_v57 = vadd.f32 %v2475_v15, %v1808_v55 }
 0x234   :  { %v1813_v31 = vsel %vm1812_vm3, %v2475_v15, %v1809_v57 }
 0x235   :  { %v1818_v54 = vsel %vm1815_vm6, %v1817_v37, %v1813_v31 }
 0x236   :  { %v2173_v41 = vmul.f32 %v4399_v38, %v1818_v54  ;;  %v1656_v3 = vpop.xlane.xlu2 %1655 }
 0x237   :  { %2478 = vrcp.f32 %v1656_v3  ;;  %vm1945_vm8 = vweird.f32 %v1656_v3  ;;  %v1949_v6 = vand.u32 2147483647, %v1656_v3  ;;  %v1951_v23 = vand.u32 2147483648, %v1656_v3 }
 0x238   :  { %2205 = vst [vmem:[#allocation2 + $0x40] sm:$0xff] %v2173_v41  ;;  %v1654_v19 = vpop.xlane.xlu1 %1653 }
 0x239   :  { %v1670_v25 = vpop.xlane.xlu0 %1669  ;;  %2480 = vrcp.f32 %v1654_v19  ;;  %v1934_v21 = vand.u32 2147483647, %v1654_v19  ;;  %v1936_v8 = vand.u32 2147483648, %v1654_v19  ;;  %vm1930_vm12 = vweird.f32 %v1654_v19 }
 0x23a   :  { %2482 = vrcp.f32 %v1670_v25  ;;  %vm2050_vm0 = vweird.f32 %v1670_v25  ;;  %v2054_v38 = vand.u32 2147483647, %v1670_v25  ;;  %v2056_v1 = vand.u32 2147483648, %v1670_v25 }
 0x23b   :  { %vm4532_vm1 = vcmp.eq.f32.partialorder %v1934_v21, 8.507059e+37  ;;  %v1937_v29 = vor.u32 1.1754944e-38, %v1936_v8  ;;  %vm4537_vm9 = vcmp.eq.f32.partialorder %v1949_v6, 8.507059e+37  ;;  %v1952_v55 = vor.u32 1.1754944e-38, %v1951_v23 }
 0x23c   :  { %vm4541_vm10 = vcmp.eq.f32.partialorder %v2054_v38, 8.507059e+37  ;;  %v2057_v57 = vor.u32 1.1754944e-38, %v2056_v1 }
 0x23d   :  { %v2479_v56 = vpop.eup %2478 }
 0x23e   :  { %v1941_v24 = vmul.f32 %v2479_v56, %v1656_v3  ;;  %v4524_v9 = vpop.xlane.xlu2 %1625  ;;  %vm1946_vm13 = vweird.f32 %v2479_v56 }
 0x23f   :  { %v2481_v17 = vpop.eup %2480  ;;  %2484 = vrcp.f32 %v4524_v9  ;;  %vm1947_vm5 = vmor %vm1945_vm8, %vm1946_vm13  ;;  %vm1720_vm4 = vweird.f32 %v4524_v9 }
 0x240   :  { %v2483_v26 = vpop.eup %2482  ;;  %v1926_v47 = vmul.f32 %v2481_v17, %v1654_v19  ;;  %v4526_v16 = vpop.xlane.xlu1 %1623  ;;  %v1942_v28 = vsub.f32 1.0, %v1941_v24  ;;  %vm1931_vm7 = vweird.f32 %v2481_v17 }
 0x241   :  { %v2046_v7 = vmul.f32 %v2483_v26, %v1670_v25  ;;  %v4529_v53 = vpop.xlane.xlu0 %1639  ;;  %2486 = vrcp.f32 %v4526_v16  ;;  %vm2051_vm2 = vweird.f32 %v2483_v26  ;;  %vm1932_vm11 = vmor %vm1930_vm12, %vm1931_vm7  ;;  %v1709_v23 = vand.u32 2147483647, %v4526_v16 }
 0x242   :  { %v1927_v35 = vsub.f32 1.0, %v1926_v47  ;;  %2488 = vrcp.f32 %v4529_v53  ;;  %v1943_v15 = vmul.f32 %v2479_v56, %v1942_v28  ;;  %v1829_v41 = vand.u32 2147483647, %v4529_v53  ;;  %vm2052_vm15 = vmor %vm2050_vm0, %vm2051_vm2 }
 0x243   :  { %v2047_v12 = vsub.f32 1.0, %v2046_v7  ;;  %v1831_v21 = vand.u32 2147483648, %v4529_v53  ;;  %vm1825_vm14 = vweird.f32 %v4529_v53  ;;  %v1711_v19 = vand.u32 2147483648, %v4526_v16 }
 0x244   :  { %v1928_v46 = vmul.f32 %v2481_v17, %v1927_v35  ;;  %v1944_v37 = vadd.f32 %v2479_v56, %v1943_v15  ;;  %vm1705_vm12 = vweird.f32 %v4526_v16  ;;  %vm4582_vm0 = vcmp.eq.f32.partialorder %v1829_v41, 8.507059e+37 }
 0x245   :  { %v2048_v5 = vmul.f32 %v2483_v26, %v2047_v12  ;;  %v4545_v31 = vpop.eup %2484  ;;  %v1712_v41 = vor.u32 1.1754944e-38, %v1711_v19 }
 0x246   :  { %v1929_v54 = vadd.f32 %v2481_v17, %v1928_v46  ;;  %v1948_v6 = vsel %vm1947_vm5, %v2479_v56, %v1944_v37  ;;  %v1716_v38 = vmul.f32 %v4545_v31, %v4524_v9  ;;  %vm1721_vm3 = vweird.f32 %v4545_v31 }
 0x247   :  { %v2487_v8 = vpop.eup %2486  ;;  %v2049_v24 = vadd.f32 %v2483_v26, %v2048_v5  ;;  %v1953_v7 = vsel %vm4537_vm9, %v1952_v55, %v1948_v6  ;;  %v1724_v55 = vand.u32 2147483647, %v4524_v9  ;;  %v1832_v37 = vor.u32 1.1754944e-38, %v1831_v21 }
 0x248   :  { %v2489_v3 = vpop.eup %2488  ;;  %v1933_v47 = vsel %vm1932_vm11, %v2481_v17, %v1929_v54  ;;  %v1701_v1 = vmul.f32 %v2487_v8, %v4526_v16  ;;  %v2182_v12 = vmul.f32 %v4407_v44, %v1953_v7  ;;  %v1717_v63 = vsub.f32 1.0, %v1716_v38 }
 0x249   :  { %v4562_v56 = vpop.xlane.xlu1 %1671  ;;  %v2053_v28 = vsel %vm2052_vm15, %v2483_v26, %v2049_v24  ;;  %v1938_v35 = vsel %vm4532_vm1, %v1937_v29, %v1933_v47  ;;  %v1821_v15 = vmul.f32 %v2489_v3, %v4529_v53  ;;  %vm1706_vm6 = vweird.f32 %v2487_v8  ;;  %vm4590_vm1 = vmor %vm1720_vm4, %vm1721_vm3 }
 0x24a   :  { %v4568_v25 = vpop.xlane.xlu0 %1657  ;;  %v2058_v17 = vsel %vm4541_vm10, %v2057_v57, %v2053_v28  ;;  %v2181_v43 = vmul.f32 %v4410_v40, %v1938_v35  ;;  %v1702_v46 = vsub.f32 1.0, %v1701_v1  ;;  %2214 = vst [vmem:[#allocation2 + $0x88] sm:$0xff] %v2182_v12  ;;  %v1726_v29 = vand.u32 2147483648, %v4524_v9  ;;  %vm1707_vm13 = vmor %vm1705_vm12, %vm1706_vm6 }
 0x24b   :  { %v2189_v5 = vmul.f32 %v4413_v51, %v2058_v17  ;;  %v1822_v26 = vsub.f32 1.0, %v1821_v15  ;;  %2490 = vrcp.f32 %v4568_v25  ;;  %vm1826_vm8 = vweird.f32 %v2489_v3  ;;  %v4580_v51 = vpop.xlane.xlu2 %1673 }
 0x24c   :  { %2213 = vst [vmem:[#allocation2 + $0x80] sm:$0xff] %v2181_v43  ;;  %v1703_v44 = vmul.f32 %v2487_v8, %v1702_v46  ;;  %v1718_v40 = vmul.f32 %v4545_v31, %v1717_v63  ;;  %2492 = vrcp.f32 %v4562_v56  ;;  %vm1710_vm9 = vcmp.eq.f32.partialorder %v1709_v23, 8.507059e+37  ;;  %vm1827_vm10 = vmor %vm1825_vm14, %vm1826_vm8 }
 0x24d   :  { %2221 = vst [vmem:[#allocation2 + $0xc0] sm:$0xff] %v2189_v5  ;;  %v1823_v49 = vmul.f32 %v2489_v3, %v1822_v26  ;;  %vm1725_vm7 = vcmp.eq.f32.partialorder %v1724_v55, 8.507059e+37  ;;  %v1727_v38 = vor.u32 1.1754944e-38, %v1726_v29  ;;  %2494 = vrcp.f32 %v4580_v51 }
 0x24e   :  { %v1704_v54 = vadd.f32 %v2487_v8, %v1703_v44  ;;  %v1719_v6 = vadd.f32 %v4545_v31, %v1718_v40  ;;  %v1964_v23 = vand.u32 2147483647, %v4568_v25  ;;  %v1966_v12 = vand.u32 2147483648, %v4568_v25 }
 0x24f   :  { %v1824_v16 = vadd.f32 %v2489_v3, %v1823_v49  ;;  %v2069_v43 = vand.u32 2147483647, %v4562_v56  ;;  %vm1960_vm2 = vweird.f32 %v4568_v25  ;;  %vm2065_vm5 = vweird.f32 %v4562_v56 }
 0x250   :  { %v1708_v21 = vsel %vm1707_vm13, %v2487_v8, %v1704_v54  ;;  %v1723_v1 = vsel %vm4590_vm1, %v4545_v31, %v1719_v6  ;;  %vm4620_vm4 = vcmp.eq.f32.partialorder %v1964_v23, 8.507059e+37  ;;  %v2071_v5 = vand.u32 2147483648, %v4562_v56 }
 0x251   :  { %v4600_v9 = vpop.xlane.xlu1 %1641  ;;  %v1828_v47 = vsel %vm1827_vm10, %v2489_v3, %v1824_v16  ;;  %v1713_v7 = vsel %vm1710_vm9, %v1712_v41, %v1708_v21  ;;  %v2491_v28 = vpop.eup %2490  ;;  %v1728_v35 = vsel %vm1725_vm7, %v1727_v38, %v1723_v1  ;;  %vm4629_vm14 = vcmp.eq.f32.partialorder %v2069_v43, 8.507059e+37 }
 0x252   :  { %v4606_v19 = vpop.xlane.xlu0 %1627  ;;  %v1833_v53 = vsel %vm4582_vm0, %v1832_v37, %v1828_v47  ;;  %v2166_v8 = vmul.f32 %v4422_v34, %v1713_v7  ;;  %v2167_v15 = vmul.f32 %v4419_v61, %v1728_v35  ;;  %v1956_v17 = vmul.f32 %v2491_v28, %v4568_v25  ;;  %v2493_v31 = vpop.eup %2492 }
 0x253   :  { %v2174_v3 = vmul.f32 %v4425_v59, %v1833_v53  ;;  %2496 = vrcp.f32 %v4606_v19  ;;  %v2061_v34 = vmul.f32 %v2493_v31, %v4562_v56  ;;  %v2495_v55 = vpop.eup %2494  ;;  %v1967_v59 = vor.u32 1.1754944e-38, %v1966_v12  ;;  %v4627_v29 = vpop.xlane.xlu2 %1643 }
 0x254   :  { %2198 = vst [vmem:[#allocation2 + $0x8] sm:$0xff] %v2166_v8  ;;  %v1957_v46 = vsub.f32 1.0, %v1956_v17  ;;  %2498 = vrcp.f32 %v4600_v9  ;;  %vm1961_vm11 = vweird.f32 %v2491_v28  ;;  %v2076_v44 = vmul.f32 %v2495_v55, %v4580_v51 }
 0x255   :  { %2206 = vst [vmem:[#allocation2 + $0x48] sm:$0xff] %v2174_v3  ;;  %v2062_v63 = vsub.f32 1.0, %v2061_v34  ;;  %vm2080_vm15 = vweird.f32 %v4580_v51  ;;  %v2084_v40 = vand.u32 2147483647, %v4580_v51  ;;  %v2086_v57 = vand.u32 2147483648, %v4580_v51  ;;  %vm1962_vm6 = vmor %vm1960_vm2, %vm1961_vm11 }
 0x256   :  { %2199 = vst [vmem:[#allocation2 + $0x10] sm:$0xff] %v2167_v15  ;;  %v1958_v26 = vmul.f32 %v2491_v28, %v1957_v46  ;;  %vm2066_vm3 = vweird.f32 %v2493_v31  ;;  %v2077_v24 = vsub.f32 1.0, %v2076_v44  ;;  %v2072_v6 = vor.u32 1.1754944e-38, %v2071_v5 }
 0x257   :  { %v2063_v54 = vmul.f32 %v2493_v31, %v2062_v63  ;;  %vm2081_vm8 = vweird.f32 %v2495_v55  ;;  %vm1735_vm12 = vweird.f32 %v4606_v19  ;;  %2500 = vrcp.f32 %v4627_v29  ;;  %vm2067_vm0 = vmor %vm2065_vm5, %vm2066_vm3 }
 0x258   :  { %v1959_v37 = vadd.f32 %v2491_v28, %v1958_v26  ;;  %v2078_v47 = vmul.f32 %v2495_v55, %v2077_v24  ;;  %vm4648_vm1 = vcmp.eq.f32.partialorder %v2084_v40, 8.507059e+37  ;;  %v2087_v53 = vor.u32 1.1754944e-38, %v2086_v57  ;;  %vm2082_vm13 = vmor %vm2080_vm15, %vm2081_vm8 }
 0x259   :  { %v2497_v41 = vpop.eup %2496  ;;  %v2064_v38 = vadd.f32 %v2493_v31, %v2063_v54  ;;  %v1739_v8 = vand.u32 2147483647, %v4606_v19  ;;  %v1741_v56 = vand.u32 2147483648, %v4606_v19  ;;  %v1844_v5 = vand.u32 2147483647, %v4600_v9 }
 0x25a   :  { %v1963_v21 = vsel %vm1962_vm6, %v2491_v28, %v1959_v37  ;;  %v1731_v7 = vmul.f32 %v2497_v41, %v4606_v19  ;;  %v2499_v1 = vpop.eup %2498  ;;  %v2079_v3 = vadd.f32 %v2495_v55, %v2078_v47  ;;  %vm1736_vm9 = vweird.f32 %v2497_v41 }
 0x25b   :  { %v4636_v16 = vpop.xlane.xlu1 %1659  ;;  %v1968_v23 = vsel %vm4620_vm4, %v1967_v59, %v1963_v21  ;;  %v2068_v12 = vsel %vm2067_vm0, %v2493_v31, %v2064_v38  ;;  %v1836_v43 = vmul.f32 %v2499_v1, %v4600_v9  ;;  %vm4667_vm10 = vcmp.eq.f32.partialorder %v1739_v8, 8.507059e+37  ;;  %vm1737_vm7 = vmor %vm1735_vm12, %vm1736_vm9 }
 0x25c   :  { %v2183_v35 = vmul.f32 %v4437_v2, %v1968_v23  ;;  %v1732_v15 = vsub.f32 1.0, %v1731_v7  ;;  %v2073_v17 = vsel %vm4629_vm14, %v2072_v6, %v2068_v12  ;;  %v2083_v34 = vsel %vm2082_vm13, %v2495_v55, %v2079_v3  ;;  %v4679_v40 = vpop.xlane.xlu2 %1661 }
 0x25d   :  { %v2190_v46 = vmul.f32 %v4434_v36, %v2073_v17  ;;  %v2501_v31 = vpop.eup %2500  ;;  %v2088_v61 = vsel %vm4648_vm1, %v2087_v53, %v2083_v34  ;;  %v1837_v51 = vsub.f32 1.0, %v1836_v43  ;;  %v1846_v36 = vand.u32 2147483648, %v4600_v9 }
 0x25e   :  { %2215 = vst [vmem:[#allocation2 + $0x90] sm:$0xff] %v2183_v35  ;;  %v1733_v2 = vmul.f32 %v2497_v41, %v1732_v15  ;;  %v2191_v26 = vmul.f32 %v4431_v0, %v2088_v61  ;;  %v1851_v55 = vmul.f32 %v2501_v31, %v4627_v29  ;;  %v1742_v44 = vor.u32 1.1754944e-38, %v1741_v56 }
 0x25f   :  { %v4653_v28 = vpop.xlane.xlu0 %1675  ;;  %2222 = vst [vmem:[#allocation2 + $0xc8] sm:$0xff] %v2190_v46  ;;  %v1838_v49 = vmul.f32 %v2499_v1, %v1837_v51  ;;  %vm1841_vm2 = vweird.f32 %v2499_v1  ;;  %v1859_v0 = vand.u32 2147483647, %v4627_v29  ;;  %v1861_v54 = vand.u32 2147483648, %v4627_v29 }
 0x260   :  { %2502 = vrcp.f32 %v4653_v28  ;;  %v1734_v63 = vadd.f32 %v2497_v41, %v1733_v2  ;;  %2223 = vst [vmem:[#allocation2 + $0xd0] sm:$0xff] %v2191_v26  ;;  %v1852_v37 = vsub.f32 1.0, %v1851_v55  ;;  %vm1840_vm5 = vweird.f32 %v4600_v9 }
 0x261   :  { %2504 = vrcp.f32 %v4636_v16  ;;  %v1839_v6 = vadd.f32 %v2499_v1, %v1838_v49  ;;  %vm1845_vm4 = vcmp.eq.f32.partialorder %v1844_v5, 8.507059e+37  ;;  %vm1842_vm11 = vmor %vm1840_vm5, %vm1841_vm2  ;;  %vm1856_vm14 = vweird.f32 %v2501_v31 }
 0x262   :  { %v1738_v57 = vsel %vm1737_vm7, %v2497_v41, %v1734_v63  ;;  %v1847_v41 = vor.u32 1.1754944e-38, %v1846_v36  ;;  %v1853_v47 = vmul.f32 %v2501_v31, %v1852_v37  ;;  %vm1855_vm15 = vweird.f32 %v4627_v29 }
 0x263   :  { %v1743_v19 = vsel %vm4667_vm10, %v1742_v44, %v1738_v57  ;;  %v1843_v7 = vsel %vm1842_vm11, %v2499_v1, %v1839_v6  ;;  %2506 = vrcp.f32 %v4679_v40  ;;  %vm1860_vm3 = vcmp.eq.f32.partialorder %v1859_v0, 8.507059e+37  ;;  %vm1857_vm6 = vmor %vm1855_vm15, %vm1856_vm14 }
 0x264   :  { %v4683_v24 = vpop.xlane.xlu1 %1629  ;;  %v2168_v38 = vmul.f32 %v4448_v27, %v1743_v19  ;;  %v1848_v9 = vsel %vm1845_vm4, %v1847_v41, %v1843_v7  ;;  %v1854_v53 = vadd.f32 %v2501_v31, %v1853_v47  ;;  %v1862_v8 = vor.u32 1.1754944e-38, %v1861_v54 }
 0x265   :  { %v2175_v35 = vmul.f32 %v4445_v42, %v1848_v9  ;;  %v2099_v1 = vand.u32 2147483647, %v4653_v28  ;;  %v2101_v29 = vand.u32 2147483648, %v4653_v28  ;;  %v1979_v17 = vand.u32 2147483647, %v4636_v16  ;;  %v4711_v51 = vpop.xlane.xlu2 %1631 }
 0x266   :  { %v2503_v21 = vpop.eup %2502  ;;  %2200 = vst [vmem:[#allocation2 + $0x18] sm:$0xff] %v2168_v38  ;;  %v1858_v3 = vsel %vm1857_vm6, %v2501_v31, %v1854_v53  ;;  %v1981_v46 = vand.u32 2147483648, %v4636_v16  ;;  %vm2095_vm12 = vweird.f32 %v4653_v28  ;;  %vm1975_vm0 = vweird.f32 %v4636_v16 }
 0x267   :  { %v2091_v23 = vmul.f32 %v2503_v21, %v4653_v28  ;;  %v4693_v25 = vpop.xlane.xlu0 %1645  ;;  %v2505_v27 = vpop.eup %2504  ;;  %2207 = vst [vmem:[#allocation2 + $0x50] sm:$0xff] %v2175_v35  ;;  %v1863_v56 = vsel %vm1860_vm3, %v1862_v8, %v1858_v3  ;;  %vm2096_vm8 = vweird.f32 %v2503_v21  ;;  %vm4705_vm1 = vcmp.eq.f32.partialorder %v2099_v1, 8.507059e+37 }
 0x268   :  { %v1971_v15 = vmul.f32 %v2505_v27, %v4636_v16  ;;  %2508 = vrcp.f32 %v4693_v25  ;;  %v2176_v42 = vmul.f32 %v4443_v62, %v1863_v56  ;;  %v1994_v59 = vand.u32 2147483647, %v4679_v40  ;;  %vm2097_vm13 = vmor %vm2095_vm12, %vm2096_vm8 }
 0x269   :  { %v2092_v12 = vsub.f32 1.0, %v2091_v23  ;;  %v2507_v2 = vpop.eup %2506  ;;  %2510 = vrcp.f32 %v4683_v24  ;;  %v2102_v62 = vor.u32 1.1754944e-38, %v2101_v29  ;;  %vm1976_vm9 = vweird.f32 %v2505_v27 }
 0x26a   :  { %v1972_v34 = vsub.f32 1.0, %v1971_v15  ;;  %2208 = vst [vmem:[#allocation2 + $0x58] sm:$0xff] %v2176_v42  ;;  %v1986_v28 = vmul.f32 %v2507_v2, %v4679_v40  ;;  %vm4716_vm10 = vcmp.eq.f32.partialorder %v1979_v17, 8.507059e+37  ;;  %v1982_v55 = vor.u32 1.1754944e-38, %v1981_v46  ;;  %vm1977_vm7 = vmor %vm1975_vm0, %vm1976_vm9 }
 0x26b   :  { %v2093_v43 = vmul.f32 %v2503_v21, %v2092_v12  ;;  %v1996_v44 = vand.u32 2147483648, %v4679_v40  ;;  %2512 = vrcp.f32 %v4711_v51  ;;  %vm1990_vm2 = vweird.f32 %v4679_v40 }
 0x26c   :  { %v1973_v5 = vmul.f32 %v2505_v27, %v1972_v34  ;;  %v1987_v0 = vsub.f32 1.0, %v1986_v28  ;;  %vm4728_vm5 = vcmp.eq.f32.partialorder %v1994_v59, 8.507059e+37  ;;  %vm1991_vm4 = vweird.f32 %v2507_v2 }
 0x26d   :  { %v2094_v31 = vadd.f32 %v2503_v21, %v2093_v43  ;;  %v1874_v41 = vand.u32 2147483647, %v4693_v25  ;;  %v1997_v16 = vor.u32 1.1754944e-38, %v1996_v44  ;;  %v1876_v9 = vand.u32 2147483648, %v4693_v25  ;;  %vm1992_vm14 = vmor %vm1990_vm2, %vm1991_vm4 }
 0x26e   :  { %v2509_v49 = vpop.eup %2508  ;;  %v1974_v37 = vadd.f32 %v2505_v27, %v1973_v5  ;;  %v1988_v38 = vmul.f32 %v2507_v2, %v1987_v0  ;;  %vm1870_vm11 = vweird.f32 %v4693_v25  ;;  %v1756_v12 = vand.u32 2147483648, %v4683_v24 }
 0x26f   :  { %v2098_v63 = vsel %vm2097_vm13, %v2503_v21, %v2094_v31  ;;  %v1866_v6 = vmul.f32 %v2509_v49, %v4693_v25  ;;  %v4734_v47 = vpop.xlane.xlu0 %1663  ;;  %v2511_v7 = vpop.eup %2510  ;;  %vm1871_vm15 = vweird.f32 %v2509_v49  ;;  %vm4746_vm3 = vcmp.eq.f32.partialorder %v1874_v41, 8.507059e+37 }
 0x270   :  { %v2103_v57 = vsel %vm4705_vm1, %v2102_v62, %v2098_v63  ;;  %v1978_v21 = vsel %vm1977_vm7, %v2505_v27, %v1974_v37  ;;  %v1989_v8 = vadd.f32 %v2507_v2, %v1988_v38  ;;  %v1746_v27 = vmul.f32 %v2511_v7, %v4683_v24  ;;  %vm1872_vm8 = vmor %vm1870_vm11, %vm1871_vm15 }
 0x271   :  { %v2192_v54 = vmul.f32 %v4462_v45, %v2103_v57  ;;  %v1983_v45 = vsel %vm4716_vm10, %v1982_v55, %v1978_v21  ;;  %v1867_v23 = vsub.f32 1.0, %v1866_v6  ;;  %2514 = vrcp.f32 %v4734_v47  ;;  %v2513_v1 = vpop.eup %2512 }
 0x272   :  { %v4714_v26 = vpop.xlane.xlu1 %1677  ;;  %v2184_v53 = vmul.f32 %v4455_v39, %v1983_v45  ;;  %v1993_v29 = vsel %vm1992_vm14, %v2507_v2, %v1989_v8  ;;  %v1747_v39 = vsub.f32 1.0, %v1746_v27  ;;  %vm1750_vm6 = vweird.f32 %v4683_v24 }
 0x273   :  { %2224 = vst [vmem:[#allocation2 + $0xd8] sm:$0xff] %v2192_v54  ;;  %v1868_v35 = vmul.f32 %v2509_v49, %v1867_v23  ;;  %v1998_v40 = vsel %vm4728_vm5, %v1997_v16, %v1993_v29  ;;  %v1877_v17 = vor.u32 1.1754944e-38, %v1876_v9  ;;  %v1761_v56 = vmul.f32 %v2513_v1, %v4711_v51 }
 0x274   :  { %2216 = vst [vmem:[#allocation2 + $0x98] sm:$0xff] %v2184_v53  ;;  %v2185_v43 = vmul.f32 %v4457_v30, %v1998_v40  ;;  %v1748_v46 = vmul.f32 %v2511_v7, %v1747_v39  ;;  %vm1751_vm12 = vweird.f32 %v2511_v7  ;;  %v1754_v42 = vand.u32 2147483647, %v4683_v24 }
 0x275   :  { %v1869_v15 = vadd.f32 %v2509_v49, %v1868_v35  ;;  %v1757_v31 = vor.u32 1.1754944e-38, %v1756_v12  ;;  %v1762_v61 = vsub.f32 1.0, %v1761_v56  ;;  %2516 = vrcp.f32 %v4714_v26  ;;  %vm1752_vm0 = vmor %vm1750_vm6, %vm1751_vm12 }
 0x276   :  { %2217 = vst [vmem:[#allocation2 + $0xa0] sm:$0xff] %v2185_v43  ;;  %v1749_v62 = vadd.f32 %v2511_v7, %v1748_v46  ;;  %v1769_v30 = vand.u32 2147483647, %v4711_v51  ;;  %v1771_v25 = vand.u32 2147483648, %v4711_v51  ;;  %vm1766_vm1 = vweird.f32 %v2513_v1 }
 0x277   :  { %v1873_v2 = vsel %vm1872_vm8, %v2509_v49, %v1869_v15  ;;  %v2515_v5 = vpop.eup %2514  ;;  %v1763_v63 = vmul.f32 %v2513_v1, %v1762_v61  ;;  %vm1755_vm13 = vcmp.eq.f32.partialorder %v1754_v42, 8.507059e+37  ;;  %vm1765_vm9 = vweird.f32 %v4711_v51 }
 0x278   :  { %v1878_v59 = vsel %vm4746_vm3, %v1877_v17, %v1873_v2  ;;  %v1753_v36 = vsel %vm1752_vm0, %v2511_v7, %v1749_v62  ;;  %v2001_v55 = vmul.f32 %v2515_v5, %v4734_v47  ;;  %vm1767_vm10 = vmor %vm1765_vm9, %vm1766_vm1  ;;  %vm1770_vm7 = vcmp.eq.f32.partialorder %v1769_v30, 8.507059e+37 }
 0x279   :  { %v2177_v28 = vmul.f32 %v4472_v13, %v1878_v59  ;;  %v1758_v49 = vsel %vm1755_vm13, %v1757_v31, %v1753_v36  ;;  %v1764_v57 = vadd.f32 %v2513_v1, %v1763_v63  ;;  %v1772_v24 = vor.u32 1.1754944e-38, %v1771_v25 }
 0x27a   :  { %v4758_v34 = vpop.xlane.xlu1 %1647  ;;  %v2169_v13 = vmul.f32 %v4465_v32, %v1758_v49  ;;  %v2002_v37 = vsub.f32 1.0, %v2001_v55  ;;  %v2009_v19 = vand.u32 2147483647, %v4734_v47  ;;  %v2011_v6 = vand.u32 2147483648, %v4734_v47 }
 0x27b   :  { %2518 = vrcp.f32 %v4758_v34  ;;  %2209 = vst [vmem:[#allocation2 + $0x60] sm:$0xff] %v2177_v28  ;;  %v2517_v0 = vpop.eup %2516  ;;  %v1768_v54 = vsel %vm1767_vm10, %v2513_v1, %v1764_v57  ;;  %vm2006_vm2 = vweird.f32 %v2515_v5  ;;  %vm2005_vm5 = vweird.f32 %v4734_v47 }
 0x27c   :  { %2201 = vst [vmem:[#allocation2 + $0x20] sm:$0xff] %v2169_v13  ;;  %v1773_v21 = vsel %vm1770_vm7, %v1772_v24, %v1768_v54  ;;  %v2003_v38 = vmul.f32 %v2515_v5, %v2002_v37  ;;  %v2106_v51 = vmul.f32 %v2517_v0, %v4714_v26  ;;  %v2114_v7 = vand.u32 2147483647, %v4714_v26  ;;  %vm2007_vm4 = vmor %vm2005_vm5, %vm2006_vm2 }
 0x27d   :  { %v2170_v32 = vmul.f32 %v4467_v18, %v1773_v21  ;;  %v2116_v23 = vand.u32 2147483648, %v4714_v26  ;;  %vm2010_vm11 = vcmp.eq.f32.partialorder %v2009_v19, 8.507059e+37  ;;  %v2012_v53 = vor.u32 1.1754944e-38, %v2011_v6 }
 0x27e   :  { %v2004_v45 = vadd.f32 %v2515_v5, %v2003_v38  ;;  %v2107_v16 = vsub.f32 1.0, %v2106_v51  ;;  %vm2110_vm14 = vweird.f32 %v4714_v26  ;;  %vm2111_vm15 = vweird.f32 %v2517_v0 }
 0x27f   :  { %2202 = vst [vmem:[#allocation2 + $0x28] sm:$0xff] %v2170_v32  ;;  %vm4789_vm3 = vcmp.eq.f32.partialorder %v2114_v7, 8.507059e+37  ;;  %v1891_v3 = vand.u32 2147483648, %v4758_v34  ;;  %v2117_v15 = vor.u32 1.1754944e-38, %v2116_v23  ;;  %vm2112_vm6 = vmor %vm2110_vm14, %vm2111_vm15  ;;  %vm1885_vm8 = vweird.f32 %v4758_v34 }
 0x280   :  { %v4770_v44 = vpop.xlane.xlu2 %1649  ;;  %v2008_v27 = vsel %vm2007_vm4, %v2515_v5, %v2004_v45  ;;  %v2108_v18 = vmul.f32 %v2517_v0, %v2107_v16  ;;  %v1889_v43 = vand.u32 2147483647, %v4758_v34 }
 0x281   :  { %2520 = vrcp.f32 %v4770_v44  ;;  %v2519_v41 = vpop.eup %2518  ;;  %v2013_v12 = vsel %vm2010_vm11, %v2012_v53, %v2008_v27  ;;  %v1892_v61 = vor.u32 1.1754944e-38, %v1891_v3  ;;  %v1906_v59 = vand.u32 2147483648, %v4770_v44 }
 0x282   :  { %v1881_v9 = vmul.f32 %v2519_v41, %v4758_v34  ;;  %v2186_v39 = vmul.f32 %v4476_v60, %v2013_v12  ;;  %v2109_v40 = vadd.f32 %v2517_v0, %v2108_v18  ;;  %vm1886_vm12 = vweird.f32 %v2519_v41 }
 0x283   :  { %v1904_v60 = vand.u32 2147483647, %v4770_v44  ;;  %vm1887_vm0 = vmor %vm1885_vm8, %vm1886_vm12  ;;  %vm1890_vm13 = vcmp.eq.f32.partialorder %v1889_v43, 8.507059e+37  ;;  %vm1900_vm9 = vweird.f32 %v4770_v44  ;;  %v1907_v34 = vor.u32 1.1754944e-38, %v1906_v59 }
 0x284   :  { %v1882_v29 = vsub.f32 1.0, %v1881_v9  ;;  %2218 = vst [vmem:[#allocation2 + $0xa8] sm:$0xff] %v2186_v39  ;;  %v2113_v42 = vsel %vm2112_vm6, %v2517_v0, %v2109_v40 }
 0x285   :  { %v2118_v31 = vsel %vm4789_vm3, %v2117_v15, %v2113_v42  ;;  %vm1905_vm7 = vcmp.eq.f32.partialorder %v1904_v60, 8.507059e+37 }
 0x286   :  { %v1883_v56 = vmul.f32 %v2519_v41, %v1882_v29  ;;  %v2193_v30 = vmul.f32 %v4480_v58, %v2118_v31 }
 0x287   :  { %v4784_v8 = vpop.xlane.xlu0 %1633  ;;  %v2521_v35 = vpop.eup %2520 }
 0x288   :  { %2522 = vrcp.f32 %v4784_v8  ;;  %v4787_v47 = vpop.xlane.xlu2 %1667  ;;  %v1896_v17 = vmul.f32 %v2521_v35, %v4770_v44  ;;  %v1884_v26 = vadd.f32 %v2519_v41, %v1883_v56  ;;  %vm1901_vm1 = vweird.f32 %v2521_v35  ;;  %2225 = vst [vmem:[#allocation2 + $0xe0] sm:$0xff] %v2193_v30 }
 0x289   :  { %v1784_v63 = vand.u32 2147483647, %v4784_v8  ;;  %vm1902_vm10 = vmor %vm1900_vm9, %vm1901_vm1  ;;  %v1786_v24 = vand.u32 2147483648, %v4784_v8  ;;  %vm1780_vm5 = vweird.f32 %v4784_v8  ;;  %v2039_v16 = vand.u32 2147483647, %v4787_v47 }
 0x28a   :  { %v1897_v2 = vsub.f32 1.0, %v1896_v17  ;;  %v1888_v28 = vsel %vm1887_vm0, %v2519_v41, %v1884_v26  ;;  %v2041_v23 = vand.u32 2147483648, %v4787_v47  ;;  %vm2035_vm3 = vweird.f32 %v4787_v47 }
 0x28b   :  { %v4800_v46 = vpop.xlane.xlu1 %1665  ;;  %v1893_v36 = vsel %vm1890_vm13, %v1892_v61, %v1888_v28  ;;  %vm4823_vm4 = vcmp.eq.f32.partialorder %v1784_v63, 8.507059e+37  ;;  %v1787_v7 = vor.u32 1.1754944e-38, %v1786_v24  ;;  %vm4840_vm0 = vcmp.eq.f32.partialorder %v2039_v16, 8.507059e+37 }
 0x28c   :  { %2524 = vrcp.f32 %v4800_v46  ;;  %v1898_v25 = vmul.f32 %v2521_v35, %v1897_v2  ;;  %v2178_v58 = vmul.f32 %v4484_v20, %v1893_v36  ;;  %v2024_v41 = vand.u32 2147483647, %v4800_v46 }
 0x28d   :  { %2526 = vrcp.f32 %v4787_v47  ;;  %v2026_v45 = vand.u32 2147483648, %v4800_v46  ;;  %vm2020_vm15 = vweird.f32 %v4800_v46  ;;  %v2042_v40 = vor.u32 1.1754944e-38, %v2041_v23 }
 0x28e   :  { %v2523_v62 = vpop.eup %2522  ;;  %v1899_v55 = vadd.f32 %v2521_v35, %v1898_v25  ;;  %2210 = vst [vmem:[#allocation2 + $0x68] sm:$0xff] %v2178_v58  ;;  %vm2025_vm12 = vcmp.eq.f32.partialorder %v2024_v41, 8.507059e+37 }
 0x28f   :  { %v1776_v5 = vmul.f32 %v2523_v62, %v4784_v8  ;;  %vm1781_vm2 = vweird.f32 %v2523_v62  ;;  %v2027_v3 = vor.u32 1.1754944e-38, %v2026_v45 }
 0x290   :  { %v4815_v57 = vpop.xlane.xlu2 %1679  ;;  %v1903_v37 = vsel %vm1902_vm10, %v2521_v35, %v1899_v55  ;;  %vm1782_vm11 = vmor %vm1780_vm5, %vm1781_vm2 }
 0x291   :  { %v1777_v49 = vsub.f32 1.0, %v1776_v5  ;;  %2528 = vrcp.f32 %v4815_v57  ;;  %v1908_v54 = vsel %vm1905_vm7, %v1907_v34, %v1903_v37  ;;  %v2129_v59 = vand.u32 2147483647, %v4815_v57 }
 0x292   :  { %v2525_v13 = vpop.eup %2524  ;;  %v2179_v21 = vmul.f32 %v4489_v14, %v1908_v54  ;;  %vm2125_vm10 = vweird.f32 %v4815_v57 }
 0x293   :  { %v1778_v0 = vmul.f32 %v2523_v62, %v1777_v49  ;;  %v2016_v44 = vmul.f32 %v2525_v13, %v4800_v46  ;;  %v4820_v19 = vpop.xlane.xlu1 %1635  ;;  %v2527_v20 = vpop.eup %2526  ;;  %vm2021_vm14 = vweird.f32 %v2525_v13 }
 0x294   :  { %2530 = vrcp.f32 %v4820_v19  ;;  %v2031_v32 = vmul.f32 %v2527_v20, %v4787_v47  ;;  %2211 = vst [vmem:[#allocation2 + $0x70] sm:$0xff] %v2179_v21  ;;  %vm2036_vm6 = vweird.f32 %v2527_v20  ;;  %vm2022_vm8 = vmor %vm2020_vm15, %vm2021_vm14  ;;  %v1801_v42 = vand.u32 2147483648, %v4820_v19 }
 0x295   :  { %v1779_v38 = vadd.f32 %v2523_v62, %v1778_v0  ;;  %v2017_v51 = vsub.f32 1.0, %v2016_v44  ;;  %vm2037_vm1 = vmor %vm2035_vm3, %vm2036_vm6  ;;  %v2131_v47 = vand.u32 2147483648, %v4815_v57  ;;  %vm1795_vm7 = vweird.f32 %v4820_v19 }
 0x296   :  { %v2032_v14 = vsub.f32 1.0, %v2031_v32  ;;  %v1802_v36 = vor.u32 1.1754944e-38, %v1801_v42 }
 0x297   :  { %v1783_v9 = vsel %vm1782_vm11, %v2523_v62, %v1779_v38  ;;  %v2018_v53 = vmul.f32 %v2525_v13, %v2017_v51  ;;  %v2529_v8 = vpop.eup %2528  ;;  %v2132_v55 = vor.u32 1.1754944e-38, %v2131_v47  ;;  %vm2130_vm11 = vcmp.eq.f32.partialorder %v2129_v59, 8.507059e+37 }
 0x298   :  { %v1788_v27 = vsel %vm4823_vm4, %v1787_v7, %v1783_v9  ;;  %v2033_v12 = vmul.f32 %v2527_v20, %v2032_v14  ;;  %v2121_v1 = vmul.f32 %v2529_v8, %v4815_v57  ;;  %vm2126_vm13 = vweird.f32 %v2529_v8 }
 0x299   :  { %v2171_v18 = vmul.f32 %v4494_v50, %v1788_v27  ;;  %v2019_v35 = vadd.f32 %v2525_v13, %v2018_v53  ;;  %v1799_v50 = vand.u32 2147483647, %v4820_v19  ;;  %vm2127_vm2 = vmor %vm2125_vm10, %vm2126_vm13 }
 0x29a   :  { %v2531_v29 = vpop.eup %2530  ;;  %v2034_v17 = vadd.f32 %v2527_v20, %v2033_v12  ;;  %v2122_v2 = vsub.f32 1.0, %v2121_v1 }
 0x29b   :  { %2203 = vst [vmem:[#allocation2 + $0x30] sm:$0xff] %v2171_v18  ;;  %v2023_v15 = vsel %vm2022_vm8, %v2525_v13, %v2019_v35  ;;  %v1791_v56 = vmul.f32 %v2531_v29, %v4820_v19  ;;  %v4846_v43 = vpop.xlane.xlu1 %1683  ;;  %vm1796_vm9 = vweird.f32 %v2531_v29  ;;  %vm1800_vm4 = vcmp.eq.f32.partialorder %v1799_v50, 8.507059e+37 }
 0x29c   :  { %v2028_v46 = vsel %vm2025_vm12, %v2027_v3, %v2023_v15  ;;  %2532 = vrcp.f32 %v4846_v43  ;;  %v2038_v31 = vsel %vm2037_vm1, %v2527_v20, %v2034_v17  ;;  %v1652_v26 = vpop.xlane.xlu0 %1651  ;;  %v2123_v5 = vmul.f32 %v2529_v8, %v2122_v2  ;;  %vm1797_vm5 = vmor %vm1795_vm7, %vm1796_vm9 }
 0x29d   :  { %v2187_v60 = vmul.f32 %v4501_v48, %v2028_v46  ;;  %v1792_v61 = vsub.f32 1.0, %v1791_v56  ;;  %v2043_v62 = vsel %vm4840_vm0, %v2042_v40, %v2038_v31  ;;  %2534 = vrcp.f32 %v1652_v26 }
 0x29e   :  { %v2188_v30 = vmul.f32 %v4496_v22, %v2043_v62  ;;  %v2124_v28 = vadd.f32 %v2529_v8, %v2123_v5  ;;  %v1919_v20 = vand.u32 2147483647, %v1652_v26  ;;  %v1921_v6 = vand.u32 2147483648, %v1652_v26 }
 0x29f   :  { %2219 = vst [vmem:[#allocation2 + $0xb0] sm:$0xff] %v2187_v60  ;;  %v1793_v25 = vmul.f32 %v2531_v29, %v1792_v61  ;;  %v2161_v21 = vand.u32 2147483648, %v4846_v43  ;;  %v2159_v41 = vand.u32 2147483647, %v4846_v43  ;;  %vm2155_vm3 = vweird.f32 %v4846_v43 }
 0x2a0   :  { %2220 = vst [vmem:[#allocation2 + $0xb8] sm:$0xff] %v2188_v30  ;;  %v2128_v58 = vsel %vm2127_vm2, %v2529_v8, %v2124_v28  ;;  %vm1915_vm6 = vweird.f32 %v1652_v26  ;;  %vm1920_vm0 = vcmp.eq.f32.partialorder %v1919_v20, 8.507059e+37  ;;  %v1922_v7 = vor.u32 1.1754944e-38, %v1921_v6 }
 0x2a1   :  { %v1794_v48 = vadd.f32 %v2531_v29, %v1793_v25  ;;  %v2133_v24 = vsel %vm2130_vm11, %v2132_v55, %v2128_v58  ;;  %v2162_v45 = vor.u32 1.1754944e-38, %v2161_v21  ;;  %vm2160_vm1 = vcmp.eq.f32.partialorder %v2159_v41, 8.507059e+37 }
 0x2a2   :  { %v2533_v63 = vpop.eup %2532  ;;  %v2194_v0 = vmul.f32 %v4504_v33, %v2133_v24 }
 0x2a3   :  { %v1798_v49 = vsel %vm1797_vm5, %v2531_v29, %v1794_v48  ;;  %v2151_v22 = vmul.f32 %v2533_v63, %v4846_v43  ;;  %v2535_v34 = vpop.eup %2534  ;;  %vm2156_vm14 = vweird.f32 %v2533_v63 }
 0x2a4   :  { %v1803_v13 = vsel %vm1800_vm4, %v1802_v36, %v1798_v49  ;;  %v1911_v57 = vmul.f32 %v2535_v34, %v1652_v26  ;;  %v1682_v54 = vpop.xlane.xlu0 %1681  ;;  %2226 = vst [vmem:[#allocation2 + $0xe8] sm:$0xff] %v2194_v0  ;;  %vm1916_vm15 = vweird.f32 %v2535_v34  ;;  %vm2157_vm8 = vmor %vm2155_vm3, %vm2156_vm14 }
 0x2a5   :  { %v2172_v37 = vmul.f32 %v4508_v52, %v1803_v13  ;;  %2536 = vrcp.f32 %v1682_v54  ;;  %v2152_v19 = vsub.f32 1.0, %v2151_v22  ;;  %vm1917_vm12 = vmor %vm1915_vm6, %vm1916_vm15  ;;  %v2146_v35 = vand.u32 2147483648, %v1682_v54 }
 0x2a6   :  { %v1912_v44 = vsub.f32 1.0, %v1911_v57  ;;  %v2144_v1 = vand.u32 2147483647, %v1682_v54  ;;  %vm2140_vm9 = vweird.f32 %v1682_v54 }
 0x2a7   :  { %2204 = vst [vmem:[#allocation2 + $0x38] sm:$0xff] %v2172_v37  ;;  %v2153_v51 = vmul.f32 %v2533_v63, %v2152_v19  ;;  %v2147_v3 = vor.u32 1.1754944e-38, %v2146_v35 }
 0x2a8   :  { %v1913_v38 = vmul.f32 %v2535_v34, %v1912_v44  ;;  %vm2145_vm7 = vcmp.eq.f32.partialorder %v2144_v1, 8.507059e+37 }
 0x2a9   :  { %v2154_v33 = vadd.f32 %v2533_v63, %v2153_v51 }
 0x2aa   :  { %v1914_v52 = vadd.f32 %v2535_v34, %v1913_v38 }
 0x2ab   :  { %v2537_v32 = vpop.eup %2536  ;;  %v2158_v9 = vsel %vm2157_vm8, %v2533_v63, %v2154_v33 }
 0x2ac   :  { %v1918_v16 = vsel %vm1917_vm12, %v2535_v34, %v1914_v52  ;;  %v2136_v23 = vmul.f32 %v2537_v32, %v1682_v54  ;;  %v2163_v14 = vsel %vm2160_vm1, %v2162_v45, %v2158_v9  ;;  %vm2141_vm13 = vweird.f32 %v2537_v32 }
 0x2ad   :  { %v1923_v53 = vsel %vm1920_vm0, %v1922_v7, %v1918_v16  ;;  %v2196_v18 = vmul.f32 %v4514_v4, %v2163_v14  ;;  %vm2142_vm10 = vmor %vm2140_vm9, %vm2141_vm13 }
 0x2ae   :  { %v2180_v8 = vmul.f32 %v4517_v11, %v1923_v53  ;;  %v2137_v27 = vsub.f32 1.0, %v2136_v23 }
 0x2af   :  { %2228 = vst [vmem:[#allocation2 + $0xf8] sm:$0xff] %v2196_v18 }
 0x2b0   :  { %2212 = vst [vmem:[#allocation2 + $0x78] sm:$0xff] %v2180_v8  ;;  %v2138_v12 = vmul.f32 %v2537_v32, %v2137_v27 }
 0x2b2   :  { %v2139_v29 = vadd.f32 %v2537_v32, %v2138_v12 }
 0x2b4   :  { %v2143_v11 = vsel %vm2142_vm10, %v2537_v32, %v2139_v29 }
 0x2b5   :  { %v2148_v39 = vsel %vm2145_vm7, %v2147_v3, %v2143_v11 }
 0x2b6   :  { %v2195_v4 = vmul.f32 %v4520_v10, %v2148_v39 }
 0x2b8   :  { %2227 = vst [vmem:[#allocation2 + $0xf0] sm:$0xff] %v2195_v4 }
 0x2b9   :  { %2241 = dma.vmem_to_hbm [thread:$0]  %s2234_s24, 4096, %s2236_s27, [#allocation3], %s2565_s28, %s2565_s28, %s2566_s29  }
 0x2ba   :  { %2562 = dma.done.wait [#allocation3], 4096  }
 0x2bb   :  { %2563 = vsyncadd [#allocation3], 4294963200 }
 0x2bc   :  { %2246 = vsyncpa [#allocation3], 1 }

</bundles_post_ra>
